<compile_context>
chip_gen: v5e
topology: v5e:2x2
jax: 0.10.0
libtpu: 0.0.40
codegen_flags: <defaults>
</compile_context>

<pallas_src>
import functools

import jax
import jax.numpy as jnp
from jax import lax
from jax.experimental import pallas as pl
from jax.experimental.pallas import tpu as pltpu

K_NEIGHBORS = 9  # DyGraphConv2d(kernel_size=9, dilation=1)


def mh_graph_kernel(x_ref, y_ref, yt_ref, wx_ref, wd_ref, sh_ref,
                    out_ref, pool_ref, *, k):
    """One (batch, head) grid step: KNN graph + EdgeConv (3x3 conv over the (N, k)
    edge-feature image + BN(eval) + ReLU + max over k) + global max pool.

    In-kernel layouts (Ch on sublanes, N / k*N on lanes):
      x   : (Ch, N)        raw head features (the x_i of the edge feature)
      y   : (Ch, T)        raw candidate features (gathered as x_j)
      y_t : (T, Ch)        same data, used for the KNN scores
      wx  : (3[p], 3[variant]*Ch, Ch)  x_i weights (BN + (-x_i) half of (x_j-x_i) folded)
      wd  : (3[p], 3[q]*Ch, Ch)        x_j weights per width tap q
      sh  : (Ch, 1)        conv_bias*bn_scale + bn_shift
    """
    Ch, N = x_ref.shape[2], x_ref.shape[3]
    T = y_ref.shape[3]
    kN = k * N

    x = x_ref[0, 0]        # (Ch, N)
    y = y_ref[0, 0]        # (Ch, T)
    y_t = yt_ref[0, 0]     # (T, Ch)
    sh = sh_ref[0]         # (Ch, 1)

    # ---- KNN (F.normalize + xy_pairwise_distance + topk) ---------------------
    # dist = 2 - 2*inner on normalized vectors -> argmin(dist) == argmax(inner).
    # Ranking over candidates t is invariant to positive scaling of the query
    # column, so only y is normalized.
    yn = y_t * lax.rsqrt(jnp.maximum(
        jnp.sum(y_t * y_t, axis=1, keepdims=True), 1e-24))               # (T, Ch)
    s = jnp.dot(yn, x, preferred_element_type=jnp.float32)               # (T, N)

    rows = lax.broadcasted_iota(jnp.int32, (T, N), 0)
    colN = lax.broadcasted_iota(jnp.int32, (1, N), 1)

    # iterative top-k (largest inner product), first-occurrence tie-break
    sels, ohs = [], []
    for _ in range(k):
        m = jnp.max(s, axis=0, keepdims=True)                            # (1, N)
        sel = jnp.min(jnp.where(s >= m, rows, T), axis=0, keepdims=True)  # (1, N) i32
        oh = rows == sel                                                  # (T, N)
        sels.append(sel)
        ohs.append(oh.astype(jnp.float32))
        s = jnp.where(oh, -jnp.inf, s)

    # ---- one-hot selection matrices for the three height (p) taps ------------
    # Columns are laid out kk*N + n.  Shifts are applied to the (1, k*N) int32
    # index row (tiny) rather than to (Ch, k*N) feature buffers; sentinel index T
    # never matches a row -> all-zero column == zero padding of the conv.
    OH1 = jnp.concatenate(ohs, axis=1)                                    # (T, kN)
    sel_all = jnp.concatenate(sels, axis=1)                               # (1, kN)
    pos = jnp.concatenate([colN] * k, axis=1)                             # (1, kN)
    sel_prev = jnp.where(pos == 0, T,
                         jnp.concatenate([sel_all[:, :1],
                                          sel_all[:, :kN - 1]], axis=1))
    sel_next = jnp.where(pos == N - 1, T,
                         jnp.concatenate([sel_all[:, 1:],
                                          sel_all[:, :1]], axis=1))
    rows_big = lax.broadcasted_iota(jnp.int32, (T, kN), 0)
    OH0 = (rows_big == sel_prev).astype(jnp.float32)                      # (T, kN)
    OH2 = (rows_big == sel_next).astype(jnp.float32)

    # ---- x_j half: neighbour gather + conv fused into (wd_p @ y) @ OH_p ------
    M = None
    for p, OHp in enumerate((OH0, OH1, OH2)):
        wy = jnp.dot(wd_ref[0, p], y, preferred_element_type=jnp.float32)  # (3Ch, T)
        t = jnp.dot(wy, OHp, preferred_element_type=jnp.float32)           # (3Ch, kN)
        M = t if M is None else M + t

    # ---- x_i half (identical for every neighbour column) ---------------------
    zc = jnp.zeros((Ch, 1), jnp.float32)
    x_prev = jnp.concatenate([zc, x[:, :N - 1]], axis=1)                  # (Ch, N) tiny copy
    x_next = jnp.concatenate([x[:, 1:], zc], axis=1)
    XP = None
    for p, xs in enumerate((x_prev, x, x_next)):
        t = jnp.dot(wx_ref[0, p], xs, preferred_element_type=jnp.float32)  # (3Ch, N)
        XP = t if XP is None else XP + t

    # bias / BN shift folded in once (not once per neighbour column)
    x_first = XP[:Ch] + sh          # output column kk == 0     (valid q in {1,2})
    x_mid = XP[Ch:2 * Ch] + sh      # interior kk               (all q)
    x_last = XP[2 * Ch:] + sh       # output column kk == k-1   (valid q in {0,1})

    m0, m1, m2 = M[:Ch], M[Ch:2 * Ch], M[2 * Ch:]                         # width taps q

    # ---- conv width (k) axis, ReLU, max over neighbours -----------------------
    best = None
    for kk in range(k):
        acc = m1[:, kk * N:(kk + 1) * N]
        acc = acc + (x_first if kk == 0 else x_last if kk == k - 1 else x_mid)
        if kk >= 1:
            acc = acc + m0[:, (kk - 1) * N:kk * N]
        if kk <= k - 2:
            acc = acc + m2[:, (kk + 1) * N:(kk + 2) * N]
        acc = jnp.maximum(acc, 0.0)                                       # ReLU
        best = acc if best is None else jnp.maximum(best, acc)

    out_ref[0, 0] = best
    pool_ref[0, 0] = jnp.max(best, axis=1, keepdims=True)                 # global max pool


def _prepare_conv_params(params, Ch):
    """Fold eval-mode BatchNorm into the per-head Conv2d weights and build the
    im2col layouts used by the kernel (p = conv tap along the flattened N axis)."""
    heads = params["num_heads"]
    w = params["w_conv"].astype(jnp.float32)          # (heads, Ch, 2Ch, 3, 3)
    scale = params["bn_scale"].astype(jnp.float32)    # (heads, Ch)  gamma / sqrt(var+eps)
    shift = params["bn_shift"].astype(jnp.float32)    # (heads, Ch)  beta - mean*scale
    bias = params["b_conv"].astype(jnp.float32)       # (heads, Ch)

    w = w * scale[:, :, None, None, None]              # exact fold (applied before ReLU)
    sh = (bias * scale + shift).reshape(heads, Ch, 1)

    w_x = w[:, :, :Ch]                                 # (heads, co, ci, p, q)  x_i half
    w_d = w[:, :, Ch:]                                 # (x_j - x_i) half
    w_xe = w_x - w_d                                   # fold the -x_i part of (x_j - x_i)

    def arrange(w4):                                   # (heads, co, ci, p) -> (heads, p, co, ci)
        return jnp.transpose(w4, (0, 3, 1, 2))

    wx = jnp.concatenate([
        arrange(w_xe[..., 1:].sum(-1)),                # output col kk == 0   : q in {1,2}
        arrange(w_xe.sum(-1)),                         # interior kk          : q in {0,1,2}
        arrange(w_xe[..., :2].sum(-1)),                # output col kk == k-1 : q in {0,1}
    ], axis=2)                                         # (heads, 3, 3Ch, Ch)

    # (heads, co, ci, p, q) -> (heads, p, q*Ch + co, ci)
    wd = jnp.transpose(w_d, (0, 3, 4, 1, 2)).reshape(heads, 3, 3 * Ch, Ch)
    return wx, wd, sh


def mh_dygraphconv2d(x, y, params):
    heads = params["num_heads"]
    B, C, H, W = x.shape
    T = y.shape[2]
    Ch = C // heads
    N = H * W
    k = K_NEIGHBORS
    assert T >= k, "need at least k candidate points in y"

    xh = x.reshape(B, heads, Ch, N).astype(jnp.float32)
    yh = y.reshape(B, heads, Ch, T).astype(jnp.float32)
    yt = jnp.swapaxes(yh, 2, 3)                        # (B, heads, T, Ch) for the KNN scores
    wx, wd, sh = _prepare_conv_params(params, Ch)

    kernel = functools.partial(mh_graph_kernel, k=k)
    out, pooled = pl.pallas_call(
        kernel,
        out_shape=(jax.ShapeDtypeStruct((B, heads, Ch, N), jnp.float32),
                   jax.ShapeDtypeStruct((B, heads, Ch, 1), jnp.float32)),
        grid=(B, heads),
        in_specs=[
            pl.BlockSpec((1, 1, Ch, N), lambda b, h: (b, h, 0, 0)),
            pl.BlockSpec((1, 1, Ch, T), lambda b, h: (b, h, 0, 0)),
            pl.BlockSpec((1, 1, T, Ch), lambda b, h: (b, h, 0, 0)),
            pl.BlockSpec((1, 3, 3 * Ch, Ch), lambda b, h: (h, 0, 0, 0)),
            pl.BlockSpec((1, 3, 3 * Ch, Ch), lambda b, h: (h, 0, 0, 0)),
            pl.BlockSpec((1, Ch, 1), lambda b, h: (h, 0, 0)),
        ],
        out_specs=(
            pl.BlockSpec((1, 1, Ch, N), lambda b, h: (b, h, 0, 0)),
            pl.BlockSpec((1, 1, Ch, 1), lambda b, h: (b, h, 0, 0)),
        ),
        compiler_params=pltpu.CompilerParams(
            dimension_semantics=("parallel", "parallel")),
    )(xh, yh, yt, wx, wd, sh)

    # ---- tiny per-head attention over globally max-pooled features (JAX glue) ----
    f = pooled[..., 0]                                       # (B, heads, Ch)
    fl = f @ params["w_lin"].T + params["b_lin"]             # (B, heads, 3Ch)
    fT = jnp.swapaxes(fl, 1, 2)                              # (B, 3Ch, heads)
    f_k, f_q, f_v = fT[:, :Ch], fT[:, Ch:2 * Ch], fT[:, 2 * Ch:]
    logits = jnp.einsum("bch,bck->bhk", f_q, f_k)            # f_q^T @ f_k
    att = jax.nn.softmax(logits, axis=-2)                    # softmax over dim=-2
    wt = jnp.einsum("bch,bhk->bck", f_v, att)                # f_v @ att -> (B, Ch, heads)
    wt = jnp.swapaxes(wt, 1, 2)[..., None]                   # (B, heads, Ch, 1)

    # head re-weighting: broadcast multiply, fused by XLA with the final reshape
    return (out * wt).reshape(B, C, H, W)


if __name__ == "__main__":
    B, dim, H, W, T = 2, 32, 16, 16, 16      # T >= k (=9) required by the top-k
    heads = 4
    Ch = dim // heads

    key = jax.random.PRNGKey(0)
    kx, ky, kw, kb, kl, klb = jax.random.split(key, 6)
    x = jax.random.normal(kx, (B, dim, H, W), jnp.float32)
    y = jax.random.normal(ky, (B, dim, T), jnp.float32)

    # deterministic synthetic parameters (per-head Conv2d(2*Ch -> Ch, 3x3, bias=True))
    fan_in = 2 * Ch * 9
    w_conv = jax.random.normal(kw, (heads, Ch, 2 * Ch, 3, 3), jnp.float32) * (2.0 / fan_in) ** 0.5
    b_conv = jax.random.normal(kb, (heads, Ch), jnp.float32) * 0.01
    # BatchNorm2d in eval mode with default running stats / affine params.
    eps = 1e-5
    bn_scale = jnp.ones((heads, Ch), jnp.float32) / jnp.sqrt(1.0 + eps)
    bn_shift = jnp.zeros((heads, Ch), jnp.float32)
    # shared Linear(Ch -> 3*Ch)
    w_lin = jax.random.normal(kl, (3 * Ch, Ch), jnp.float32) * (1.0 / Ch) ** 0.5
    b_lin = jax.random.normal(klb, (3 * Ch,), jnp.float32) * 0.01

    params = dict(w_conv=w_conv, b_conv=b_conv, bn_scale=bn_scale,
                  bn_shift=bn_shift, w_lin=w_lin, b_lin=b_lin, num_heads=heads)

    fwd = jax.jit(lambda xx, yy: mh_dygraphconv2d(xx, yy, params))
    out = jax.block_until_ready(fwd(x, y))
    assert out.shape == (B, dim, H, W)
    assert bool(jnp.all(jnp.isfinite(out)))
    print("KERNEL_OK")
</pallas_src>

<mosaic_0001>
module attributes {stable_mosaic.version = 11 : i64} {
  func.func @mh_graph_kernel(%arg0: i32, %arg1: i32, %arg2: memref<1x1x8x256xf32, #tpu.memory_space<vmem>>, %arg3: memref<1x1x8x16xf32, #tpu.memory_space<vmem>>, %arg4: memref<1x1x16x8xf32, #tpu.memory_space<vmem>>, %arg5: memref<1x3x24x8xf32, #tpu.memory_space<vmem>>, %arg6: memref<1x3x24x8xf32, #tpu.memory_space<vmem>>, %arg7: memref<1x8x1xf32, #tpu.memory_space<vmem>>, %arg8: memref<1x1x8x256xf32, #tpu.memory_space<vmem>>, %arg9: memref<1x1x8x1xf32, #tpu.memory_space<vmem>>) attributes {dimension_semantics = [#tpu.dimension_semantics<parallel>, #tpu.dimension_semantics<parallel>], iteration_bounds = array<i64: 2, 4>, scalar_prefetch = 0 : i64, scratch_operands = 0 : i64, tpu.core_type = #tpu.core_type<tc>, window_params = [{transform_indices = @transform_0, window_bounds = array<i64: 1, 1, 8, 256>}, {transform_indices = @transform_1, window_bounds = array<i64: 1, 1, 8, 16>}, {transform_indices = @transform_2, window_bounds = array<i64: 1, 1, 16, 8>}, {transform_indices = @transform_3, window_bounds = array<i64: 1, 3, 24, 8>}, {transform_indices = @transform_4, window_bounds = array<i64: 1, 3, 24, 8>}, {transform_indices = @transform_5, window_bounds = array<i64: 1, 8, 1>}, {transform_indices = @transform_6, window_bounds = array<i64: 1, 1, 8, 256>}, {transform_indices = @transform_7, window_bounds = array<i64: 1, 1, 8, 1>}]} {
    %c0 = arith.constant 0 : index
    %c0_0 = arith.constant 0 : index
    %c0_1 = arith.constant 0 : index
    %c0_2 = arith.constant 0 : index
    %0 = vector.load %arg2[%c0, %c0_0, %c0_1, %c0_2] : memref<1x1x8x256xf32, #tpu.memory_space<vmem>>, vector<1x1x8x256xf32>
    %1 = vector.shape_cast %0 : vector<1x1x8x256xf32> to vector<8x256xf32>
    %c0_3 = arith.constant 0 : index
    %c0_4 = arith.constant 0 : index
    %c0_5 = arith.constant 0 : index
    %c0_6 = arith.constant 0 : index
    %2 = vector.load %arg3[%c0_3, %c0_4, %c0_5, %c0_6] : memref<1x1x8x16xf32, #tpu.memory_space<vmem>>, vector<1x1x8x16xf32>
    %3 = vector.shape_cast %2 : vector<1x1x8x16xf32> to vector<8x16xf32>
    %c0_7 = arith.constant 0 : index
    %c0_8 = arith.constant 0 : index
    %c0_9 = arith.constant 0 : index
    %c0_10 = arith.constant 0 : index
    %4 = vector.load %arg4[%c0_7, %c0_8, %c0_9, %c0_10] : memref<1x1x16x8xf32, #tpu.memory_space<vmem>>, vector<1x1x16x8xf32>
    %5 = vector.shape_cast %4 : vector<1x1x16x8xf32> to vector<16x8xf32>
    %c0_11 = arith.constant 0 : index
    %c0_12 = arith.constant 0 : index
    %c0_13 = arith.constant 0 : index
    %6 = vector.load %arg7[%c0_11, %c0_12, %c0_13] : memref<1x8x1xf32, #tpu.memory_space<vmem>>, vector<1x8x1xf32>
    %7 = vector.shape_cast %6 : vector<1x8x1xf32> to vector<8x1xf32>
    %8 = arith.mulf %5, %5 : vector<16x8xf32>
    %cst = arith.constant dense<0.000000e+00> : vector<16xf32>
    %9 = vector.multi_reduction <add>, %8, %cst [1] : vector<16x8xf32> to vector<16xf32>
    %10 = vector.shape_cast %9 : vector<16xf32> to vector<16x1xf32>
    %cst_14 = arith.constant 1.000000e-24 : f32
    %11 = vector.broadcast %cst_14 : f32 to vector<16x1xf32>
    %12 = arith.maximumf %10, %11 : vector<16x1xf32>
    %13 = math.rsqrt %12 : vector<16x1xf32>
    %14 = vector.broadcast %13 : vector<16x1xf32> to vector<16x8xf32>
    %15 = arith.mulf %5, %14 : vector<16x8xf32>
    %cst_15 = arith.constant dense<0.000000e+00> : vector<16x256xf32>
    %16 = tpu.matmul %15, %1, %cst_15 {dimension_numbers = #tpu.dot_dimension_numbers<[1], [0], [0], [1], [0, 0, 1, 1], [], []>} : vector<16x8xf32>, vector<8x256xf32>, vector<16x256xf32> -> vector<16x256xf32>
    %17 = tpu.iota {dimensions = array<i32: 0>} : vector<16x256xi32>
    %18 = tpu.iota {dimensions = array<i32: 1>} : vector<1x256xi32>
    %cst_16 = arith.constant dense<0xFF800000> : vector<256xf32>
    %19 = vector.multi_reduction <maximumf>, %16, %cst_16 [0] : vector<16x256xf32> to vector<256xf32>
    %20 = vector.shape_cast %19 : vector<256xf32> to vector<1x256xf32>
    %21 = vector.broadcast %20 : vector<1x256xf32> to vector<16x256xf32>
    %22 = arith.cmpf oge, %16, %21 : vector<16x256xf32>
    %c16_i32 = arith.constant 16 : i32
    %23 = vector.broadcast %c16_i32 : i32 to vector<16x256xi32>
    %24 = arith.select %22, %17, %23 : vector<16x256xi1>, vector<16x256xi32>
    %cst_17 = arith.constant dense<2147483647> : vector<256xi32>
    %25 = vector.multi_reduction <minsi>, %24, %cst_17 [0] : vector<16x256xi32> to vector<256xi32>
    %26 = vector.shape_cast %25 : vector<256xi32> to vector<1x256xi32>
    %27 = vector.broadcast %26 : vector<1x256xi32> to vector<16x256xi32>
    %28 = arith.cmpi eq, %17, %27 : vector<16x256xi32>
    %29 = arith.extui %28 : vector<16x256xi1> to vector<16x256xi32>
    %30 = arith.sitofp %29 : vector<16x256xi32> to vector<16x256xf32>
    %cst_18 = arith.constant 0xFF800000 : f32
    %31 = vector.broadcast %cst_18 : f32 to vector<16x256xf32>
    %32 = arith.select %28, %31, %16 : vector<16x256xi1>, vector<16x256xf32>
    %cst_19 = arith.constant dense<0xFF800000> : vector<256xf32>
    %33 = vector.multi_reduction <maximumf>, %32, %cst_19 [0] : vector<16x256xf32> to vector<256xf32>
    %34 = vector.shape_cast %33 : vector<256xf32> to vector<1x256xf32>
    %35 = vector.broadcast %34 : vector<1x256xf32> to vector<16x256xf32>
    %36 = arith.cmpf oge, %32, %35 : vector<16x256xf32>
    %c16_i32_20 = arith.constant 16 : i32
    %37 = vector.broadcast %c16_i32_20 : i32 to vector<16x256xi32>
    %38 = arith.select %36, %17, %37 : vector<16x256xi1>, vector<16x256xi32>
    %cst_21 = arith.constant dense<2147483647> : vector<256xi32>
    %39 = vector.multi_reduction <minsi>, %38, %cst_21 [0] : vector<16x256xi32> to vector<256xi32>
    %40 = vector.shape_cast %39 : vector<256xi32> to vector<1x256xi32>
    %41 = vector.broadcast %40 : vector<1x256xi32> to vector<16x256xi32>
    %42 = arith.cmpi eq, %17, %41 : vector<16x256xi32>
    %43 = arith.extui %42 : vector<16x256xi1> to vector<16x256xi32>
    %44 = arith.sitofp %43 : vector<16x256xi32> to vector<16x256xf32>
    %cst_22 = arith.constant 0xFF800000 : f32
    %45 = vector.broadcast %cst_22 : f32 to vector<16x256xf32>
    %46 = arith.select %42, %45, %32 : vector<16x256xi1>, vector<16x256xf32>
    %cst_23 = arith.constant dense<0xFF800000> : vector<256xf32>
    %47 = vector.multi_reduction <maximumf>, %46, %cst_23 [0] : vector<16x256xf32> to vector<256xf32>
    %48 = vector.shape_cast %47 : vector<256xf32> to vector<1x256xf32>
    %49 = vector.broadcast %48 : vector<1x256xf32> to vector<16x256xf32>
    %50 = arith.cmpf oge, %46, %49 : vector<16x256xf32>
    %c16_i32_24 = arith.constant 16 : i32
    %51 = vector.broadcast %c16_i32_24 : i32 to vector<16x256xi32>
    %52 = arith.select %50, %17, %51 : vector<16x256xi1>, vector<16x256xi32>
    %cst_25 = arith.constant dense<2147483647> : vector<256xi32>
    %53 = vector.multi_reduction <minsi>, %52, %cst_25 [0] : vector<16x256xi32> to vector<256xi32>
    %54 = vector.shape_cast %53 : vector<256xi32> to vector<1x256xi32>
    %55 = vector.broadcast %54 : vector<1x256xi32> to vector<16x256xi32>
    %56 = arith.cmpi eq, %17, %55 : vector<16x256xi32>
    %57 = arith.extui %56 : vector<16x256xi1> to vector<16x256xi32>
    %58 = arith.sitofp %57 : vector<16x256xi32> to vector<16x256xf32>
    %cst_26 = arith.constant 0xFF800000 : f32
    %59 = vector.broadcast %cst_26 : f32 to vector<16x256xf32>
    %60 = arith.select %56, %59, %46 : vector<16x256xi1>, vector<16x256xf32>
    %cst_27 = arith.constant dense<0xFF800000> : vector<256xf32>
    %61 = vector.multi_reduction <maximumf>, %60, %cst_27 [0] : vector<16x256xf32> to vector<256xf32>
    %62 = vector.shape_cast %61 : vector<256xf32> to vector<1x256xf32>
    %63 = vector.broadcast %62 : vector<1x256xf32> to vector<16x256xf32>
    %64 = arith.cmpf oge, %60, %63 : vector<16x256xf32>
    %c16_i32_28 = arith.constant 16 : i32
    %65 = vector.broadcast %c16_i32_28 : i32 to vector<16x256xi32>
    %66 = arith.select %64, %17, %65 : vector<16x256xi1>, vector<16x256xi32>
    %cst_29 = arith.constant dense<2147483647> : vector<256xi32>
    %67 = vector.multi_reduction <minsi>, %66, %cst_29 [0] : vector<16x256xi32> to vector<256xi32>
    %68 = vector.shape_cast %67 : vector<256xi32> to vector<1x256xi32>
    %69 = vector.broadcast %68 : vector<1x256xi32> to vector<16x256xi32>
    %70 = arith.cmpi eq, %17, %69 : vector<16x256xi32>
    %71 = arith.extui %70 : vector<16x256xi1> to vector<16x256xi32>
    %72 = arith.sitofp %71 : vector<16x256xi32> to vector<16x256xf32>
    %cst_30 = arith.constant 0xFF800000 : f32
    %73 = vector.broadcast %cst_30 : f32 to vector<16x256xf32>
    %74 = arith.select %70, %73, %60 : vector<16x256xi1>, vector<16x256xf32>
    %cst_31 = arith.constant dense<0xFF800000> : vector<256xf32>
    %75 = vector.multi_reduction <maximumf>, %74, %cst_31 [0] : vector<16x256xf32> to vector<256xf32>
    %76 = vector.shape_cast %75 : vector<256xf32> to vector<1x256xf32>
    %77 = vector.broadcast %76 : vector<1x256xf32> to vector<16x256xf32>
    %78 = arith.cmpf oge, %74, %77 : vector<16x256xf32>
    %c16_i32_32 = arith.constant 16 : i32
    %79 = vector.broadcast %c16_i32_32 : i32 to vector<16x256xi32>
    %80 = arith.select %78, %17, %79 : vector<16x256xi1>, vector<16x256xi32>
    %cst_33 = arith.constant dense<2147483647> : vector<256xi32>
    %81 = vector.multi_reduction <minsi>, %80, %cst_33 [0] : vector<16x256xi32> to vector<256xi32>
    %82 = vector.shape_cast %81 : vector<256xi32> to vector<1x256xi32>
    %83 = vector.broadcast %82 : vector<1x256xi32> to vector<16x256xi32>
    %84 = arith.cmpi eq, %17, %83 : vector<16x256xi32>
    %85 = arith.extui %84 : vector<16x256xi1> to vector<16x256xi32>
    %86 = arith.sitofp %85 : vector<16x256xi32> to vector<16x256xf32>
    %cst_34 = arith.constant 0xFF800000 : f32
    %87 = vector.broadcast %cst_34 : f32 to vector<16x256xf32>
    %88 = arith.select %84, %87, %74 : vector<16x256xi1>, vector<16x256xf32>
    %cst_35 = arith.constant dense<0xFF800000> : vector<256xf32>
    %89 = vector.multi_reduction <maximumf>, %88, %cst_35 [0] : vector<16x256xf32> to vector<256xf32>
    %90 = vector.shape_cast %89 : vector<256xf32> to vector<1x256xf32>
    %91 = vector.broadcast %90 : vector<1x256xf32> to vector<16x256xf32>
    %92 = arith.cmpf oge, %88, %91 : vector<16x256xf32>
    %c16_i32_36 = arith.constant 16 : i32
    %93 = vector.broadcast %c16_i32_36 : i32 to vector<16x256xi32>
    %94 = arith.select %92, %17, %93 : vector<16x256xi1>, vector<16x256xi32>
    %cst_37 = arith.constant dense<2147483647> : vector<256xi32>
    %95 = vector.multi_reduction <minsi>, %94, %cst_37 [0] : vector<16x256xi32> to vector<256xi32>
    %96 = vector.shape_cast %95 : vector<256xi32> to vector<1x256xi32>
    %97 = vector.broadcast %96 : vector<1x256xi32> to vector<16x256xi32>
    %98 = arith.cmpi eq, %17, %97 : vector<16x256xi32>
    %99 = arith.extui %98 : vector<16x256xi1> to vector<16x256xi32>
    %100 = arith.sitofp %99 : vector<16x256xi32> to vector<16x256xf32>
    %cst_38 = arith.constant 0xFF800000 : f32
    %101 = vector.broadcast %cst_38 : f32 to vector<16x256xf32>
    %102 = arith.select %98, %101, %88 : vector<16x256xi1>, vector<16x256xf32>
    %cst_39 = arith.constant dense<0xFF800000> : vector<256xf32>
    %103 = vector.multi_reduction <maximumf>, %102, %cst_39 [0] : vector<16x256xf32> to vector<256xf32>
    %104 = vector.shape_cast %103 : vector<256xf32> to vector<1x256xf32>
    %105 = vector.broadcast %104 : vector<1x256xf32> to vector<16x256xf32>
    %106 = arith.cmpf oge, %102, %105 : vector<16x256xf32>
    %c16_i32_40 = arith.constant 16 : i32
    %107 = vector.broadcast %c16_i32_40 : i32 to vector<16x256xi32>
    %108 = arith.select %106, %17, %107 : vector<16x256xi1>, vector<16x256xi32>
    %cst_41 = arith.constant dense<2147483647> : vector<256xi32>
    %109 = vector.multi_reduction <minsi>, %108, %cst_41 [0] : vector<16x256xi32> to vector<256xi32>
    %110 = vector.shape_cast %109 : vector<256xi32> to vector<1x256xi32>
    %111 = vector.broadcast %110 : vector<1x256xi32> to vector<16x256xi32>
    %112 = arith.cmpi eq, %17, %111 : vector<16x256xi32>
    %113 = arith.extui %112 : vector<16x256xi1> to vector<16x256xi32>
    %114 = arith.sitofp %113 : vector<16x256xi32> to vector<16x256xf32>
    %cst_42 = arith.constant 0xFF800000 : f32
    %115 = vector.broadcast %cst_42 : f32 to vector<16x256xf32>
    %116 = arith.select %112, %115, %102 : vector<16x256xi1>, vector<16x256xf32>
    %cst_43 = arith.constant dense<0xFF800000> : vector<256xf32>
    %117 = vector.multi_reduction <maximumf>, %116, %cst_43 [0] : vector<16x256xf32> to vector<256xf32>
    %118 = vector.shape_cast %117 : vector<256xf32> to vector<1x256xf32>
    %119 = vector.broadcast %118 : vector<1x256xf32> to vector<16x256xf32>
    %120 = arith.cmpf oge, %116, %119 : vector<16x256xf32>
    %c16_i32_44 = arith.constant 16 : i32
    %121 = vector.broadcast %c16_i32_44 : i32 to vector<16x256xi32>
    %122 = arith.select %120, %17, %121 : vector<16x256xi1>, vector<16x256xi32>
    %cst_45 = arith.constant dense<2147483647> : vector<256xi32>
    %123 = vector.multi_reduction <minsi>, %122, %cst_45 [0] : vector<16x256xi32> to vector<256xi32>
    %124 = vector.shape_cast %123 : vector<256xi32> to vector<1x256xi32>
    %125 = vector.broadcast %124 : vector<1x256xi32> to vector<16x256xi32>
    %126 = arith.cmpi eq, %17, %125 : vector<16x256xi32>
    %127 = arith.extui %126 : vector<16x256xi1> to vector<16x256xi32>
    %128 = arith.sitofp %127 : vector<16x256xi32> to vector<16x256xf32>
    %cst_46 = arith.constant 0xFF800000 : f32
    %129 = vector.broadcast %cst_46 : f32 to vector<16x256xf32>
    %130 = arith.select %126, %129, %116 : vector<16x256xi1>, vector<16x256xf32>
    %cst_47 = arith.constant dense<0xFF800000> : vector<256xf32>
    %131 = vector.multi_reduction <maximumf>, %130, %cst_47 [0] : vector<16x256xf32> to vector<256xf32>
    %132 = vector.shape_cast %131 : vector<256xf32> to vector<1x256xf32>
    %133 = vector.broadcast %132 : vector<1x256xf32> to vector<16x256xf32>
    %134 = arith.cmpf oge, %130, %133 : vector<16x256xf32>
    %c16_i32_48 = arith.constant 16 : i32
    %135 = vector.broadcast %c16_i32_48 : i32 to vector<16x256xi32>
    %136 = arith.select %134, %17, %135 : vector<16x256xi1>, vector<16x256xi32>
    %cst_49 = arith.constant dense<2147483647> : vector<256xi32>
    %137 = vector.multi_reduction <minsi>, %136, %cst_49 [0] : vector<16x256xi32> to vector<256xi32>
    %138 = vector.shape_cast %137 : vector<256xi32> to vector<1x256xi32>
    %139 = vector.broadcast %138 : vector<1x256xi32> to vector<16x256xi32>
    %140 = arith.cmpi eq, %17, %139 : vector<16x256xi32>
    %141 = arith.extui %140 : vector<16x256xi1> to vector<16x256xi32>
    %142 = arith.sitofp %141 : vector<16x256xi32> to vector<16x256xf32>
    %143 = tpu.concatenate %30, %44, %58, %72, %86, %100, %114, %128, %142 in 1 : vector<16x256xf32>, vector<16x256xf32>, vector<16x256xf32>, vector<16x256xf32>, vector<16x256xf32>, vector<16x256xf32>, vector<16x256xf32>, vector<16x256xf32>, vector<16x256xf32> -> vector<16x2304xf32>
    %144 = tpu.concatenate %26, %40, %54, %68, %82, %96, %110, %124, %138 in 1 : vector<1x256xi32>, vector<1x256xi32>, vector<1x256xi32>, vector<1x256xi32>, vector<1x256xi32>, vector<1x256xi32>, vector<1x256xi32>, vector<1x256xi32>, vector<1x256xi32> -> vector<1x2304xi32>
    %145 = tpu.concatenate %18, %18, %18, %18, %18, %18, %18, %18, %18 in 1 : vector<1x256xi32>, vector<1x256xi32>, vector<1x256xi32>, vector<1x256xi32>, vector<1x256xi32>, vector<1x256xi32>, vector<1x256xi32>, vector<1x256xi32>, vector<1x256xi32> -> vector<1x2304xi32>
    %c0_i32 = arith.constant 0 : i32
    %146 = vector.broadcast %c0_i32 : i32 to vector<1x2304xi32>
    %147 = arith.cmpi eq, %145, %146 : vector<1x2304xi32>
    %148 = vector.extract_strided_slice %144 {offsets = [0, 0], sizes = [1, 1], strides = [1, 1]} : vector<1x2304xi32> to vector<1x1xi32>
    %149 = vector.extract_strided_slice %144 {offsets = [0, 0], sizes = [1, 2303], strides = [1, 1]} : vector<1x2304xi32> to vector<1x2303xi32>
    %150 = tpu.concatenate %148, %149 in 1 : vector<1x1xi32>, vector<1x2303xi32> -> vector<1x2304xi32>
    %c16_i32_50 = arith.constant 16 : i32
    %151 = vector.broadcast %c16_i32_50 : i32 to vector<1x2304xi32>
    %152 = arith.select %147, %151, %150 : vector<1x2304xi1>, vector<1x2304xi32>
    %c255_i32 = arith.constant 255 : i32
    %153 = vector.broadcast %c255_i32 : i32 to vector<1x2304xi32>
    %154 = arith.cmpi eq, %145, %153 : vector<1x2304xi32>
    %155 = vector.extract_strided_slice %144 {offsets = [0, 1], sizes = [1, 2303], strides = [1, 1]} : vector<1x2304xi32> to vector<1x2303xi32>
    %156 = vector.extract_strided_slice %144 {offsets = [0, 0], sizes = [1, 1], strides = [1, 1]} : vector<1x2304xi32> to vector<1x1xi32>
    %157 = tpu.concatenate %155, %156 in 1 : vector<1x2303xi32>, vector<1x1xi32> -> vector<1x2304xi32>
    %c16_i32_51 = arith.constant 16 : i32
    %158 = vector.broadcast %c16_i32_51 : i32 to vector<1x2304xi32>
    %159 = arith.select %154, %158, %157 : vector<1x2304xi1>, vector<1x2304xi32>
    %160 = tpu.iota {dimensions = array<i32: 0>} : vector<16x2304xi32>
    %161 = vector.broadcast %152 : vector<1x2304xi32> to vector<16x2304xi32>
    %162 = arith.cmpi eq, %160, %161 : vector<16x2304xi32>
    %163 = arith.extui %162 : vector<16x2304xi1> to vector<16x2304xi32>
    %164 = arith.sitofp %163 : vector<16x2304xi32> to vector<16x2304xf32>
    %165 = vector.broadcast %159 : vector<1x2304xi32> to vector<16x2304xi32>
    %166 = arith.cmpi eq, %160, %165 : vector<16x2304xi32>
    %167 = arith.extui %166 : vector<16x2304xi1> to vector<16x2304xi32>
    %168 = arith.sitofp %167 : vector<16x2304xi32> to vector<16x2304xf32>
    %c0_52 = arith.constant 0 : index
    %c0_53 = arith.constant 0 : index
    %c0_54 = arith.constant 0 : index
    %c0_55 = arith.constant 0 : index
    %169 = vector.load %arg6[%c0_52, %c0_53, %c0_54, %c0_55] : memref<1x3x24x8xf32, #tpu.memory_space<vmem>>, vector<1x1x24x8xf32>
    %170 = vector.shape_cast %169 : vector<1x1x24x8xf32> to vector<24x8xf32>
    %cst_56 = arith.constant dense<0.000000e+00> : vector<24x16xf32>
    %171 = tpu.matmul %170, %3, %cst_56 {dimension_numbers = #tpu.dot_dimension_numbers<[1], [0], [0], [1], [0, 0, 1, 1], [], []>} : vector<24x8xf32>, vector<8x16xf32>, vector<24x16xf32> -> vector<24x16xf32>
    %cst_57 = arith.constant dense<0.000000e+00> : vector<24x2304xf32>
    %172 = tpu.matmul %171, %164, %cst_57 {dimension_numbers = #tpu.dot_dimension_numbers<[1], [0], [0], [1], [0, 0, 1, 1], [], []>} : vector<24x16xf32>, vector<16x2304xf32>, vector<24x2304xf32> -> vector<24x2304xf32>
    %c0_58 = arith.constant 0 : index
    %c1 = arith.constant 1 : index
    %c0_59 = arith.constant 0 : index
    %c0_60 = arith.constant 0 : index
    %173 = vector.load %arg6[%c0_58, %c1, %c0_59, %c0_60] : memref<1x3x24x8xf32, #tpu.memory_space<vmem>>, vector<1x1x24x8xf32>
    %174 = vector.shape_cast %173 : vector<1x1x24x8xf32> to vector<24x8xf32>
    %cst_61 = arith.constant dense<0.000000e+00> : vector<24x16xf32>
    %175 = tpu.matmul %174, %3, %cst_61 {dimension_numbers = #tpu.dot_dimension_numbers<[1], [0], [0], [1], [0, 0, 1, 1], [], []>} : vector<24x8xf32>, vector<8x16xf32>, vector<24x16xf32> -> vector<24x16xf32>
    %cst_62 = arith.constant dense<0.000000e+00> : vector<24x2304xf32>
    %176 = tpu.matmul %175, %143, %cst_62 {dimension_numbers = #tpu.dot_dimension_numbers<[1], [0], [0], [1], [0, 0, 1, 1], [], []>} : vector<24x16xf32>, vector<16x2304xf32>, vector<24x2304xf32> -> vector<24x2304xf32>
    %177 = arith.addf %172, %176 : vector<24x2304xf32>
    %c0_63 = arith.constant 0 : index
    %c2 = arith.constant 2 : index
    %c0_64 = arith.constant 0 : index
    %c0_65 = arith.constant 0 : index
    %178 = vector.load %arg6[%c0_63, %c2, %c0_64, %c0_65] : memref<1x3x24x8xf32, #tpu.memory_space<vmem>>, vector<1x1x24x8xf32>
    %179 = vector.shape_cast %178 : vector<1x1x24x8xf32> to vector<24x8xf32>
    %cst_66 = arith.constant dense<0.000000e+00> : vector<24x16xf32>
    %180 = tpu.matmul %179, %3, %cst_66 {dimension_numbers = #tpu.dot_dimension_numbers<[1], [0], [0], [1], [0, 0, 1, 1], [], []>} : vector<24x8xf32>, vector<8x16xf32>, vector<24x16xf32> -> vector<24x16xf32>
    %cst_67 = arith.constant dense<0.000000e+00> : vector<24x2304xf32>
    %181 = tpu.matmul %180, %168, %cst_67 {dimension_numbers = #tpu.dot_dimension_numbers<[1], [0], [0], [1], [0, 0, 1, 1], [], []>} : vector<24x16xf32>, vector<16x2304xf32>, vector<24x2304xf32> -> vector<24x2304xf32>
    %182 = arith.addf %177, %181 : vector<24x2304xf32>
    %cst_68 = arith.constant 0.000000e+00 : f32
    %183 = vector.broadcast %cst_68 : f32 to vector<8x1xf32>
    %184 = vector.extract_strided_slice %1 {offsets = [0, 0], sizes = [8, 255], strides = [1, 1]} : vector<8x256xf32> to vector<8x255xf32>
    %185 = tpu.concatenate %183, %184 in 1 : vector<8x1xf32>, vector<8x255xf32> -> vector<8x256xf32>
    %186 = vector.extract_strided_slice %1 {offsets = [0, 1], sizes = [8, 255], strides = [1, 1]} : vector<8x256xf32> to vector<8x255xf32>
    %187 = tpu.concatenate %186, %183 in 1 : vector<8x255xf32>, vector<8x1xf32> -> vector<8x256xf32>
    %c0_69 = arith.constant 0 : index
    %c0_70 = arith.constant 0 : index
    %c0_71 = arith.constant 0 : index
    %c0_72 = arith.constant 0 : index
    %188 = vector.load %arg5[%c0_69, %c0_70, %c0_71, %c0_72] : memref<1x3x24x8xf32, #tpu.memory_space<vmem>>, vector<1x1x24x8xf32>
    %189 = vector.shape_cast %188 : vector<1x1x24x8xf32> to vector<24x8xf32>
    %cst_73 = arith.constant dense<0.000000e+00> : vector<24x256xf32>
    %190 = tpu.matmul %189, %185, %cst_73 {dimension_numbers = #tpu.dot_dimension_numbers<[1], [0], [0], [1], [0, 0, 1, 1], [], []>} : vector<24x8xf32>, vector<8x256xf32>, vector<24x256xf32> -> vector<24x256xf32>
    %c0_74 = arith.constant 0 : index
    %c1_75 = arith.constant 1 : index
    %c0_76 = arith.constant 0 : index
    %c0_77 = arith.constant 0 : index
    %191 = vector.load %arg5[%c0_74, %c1_75, %c0_76, %c0_77] : memref<1x3x24x8xf32, #tpu.memory_space<vmem>>, vector<1x1x24x8xf32>
    %192 = vector.shape_cast %191 : vector<1x1x24x8xf32> to vector<24x8xf32>
    %cst_78 = arith.constant dense<0.000000e+00> : vector<24x256xf32>
    %193 = tpu.matmul %192, %1, %cst_78 {dimension_numbers = #tpu.dot_dimension_numbers<[1], [0], [0], [1], [0, 0, 1, 1], [], []>} : vector<24x8xf32>, vector<8x256xf32>, vector<24x256xf32> -> vector<24x256xf32>
    %194 = arith.addf %190, %193 : vector<24x256xf32>
    %c0_79 = arith.constant 0 : index
    %c2_80 = arith.constant 2 : index
    %c0_81 = arith.constant 0 : index
    %c0_82 = arith.constant 0 : index
    %195 = vector.load %arg5[%c0_79, %c2_80, %c0_81, %c0_82] : memref<1x3x24x8xf32, #tpu.memory_space<vmem>>, vector<1x1x24x8xf32>
    %196 = vector.shape_cast %195 : vector<1x1x24x8xf32> to vector<24x8xf32>
    %cst_83 = arith.constant dense<0.000000e+00> : vector<24x256xf32>
    %197 = tpu.matmul %196, %187, %cst_83 {dimension_numbers = #tpu.dot_dimension_numbers<[1], [0], [0], [1], [0, 0, 1, 1], [], []>} : vector<24x8xf32>, vector<8x256xf32>, vector<24x256xf32> -> vector<24x256xf32>
    %198 = arith.addf %194, %197 : vector<24x256xf32>
    %199 = vector.extract_strided_slice %198 {offsets = [0, 0], sizes = [8, 256], strides = [1, 1]} : vector<24x256xf32> to vector<8x256xf32>
    %200 = vector.broadcast %7 : vector<8x1xf32> to vector<8x256xf32>
    %201 = arith.addf %199, %200 : vector<8x256xf32>
    %202 = vector.extract_strided_slice %198 {offsets = [8, 0], sizes = [8, 256], strides = [1, 1]} : vector<24x256xf32> to vector<8x256xf32>
    %203 = vector.broadcast %7 : vector<8x1xf32> to vector<8x256xf32>
    %204 = arith.addf %202, %203 : vector<8x256xf32>
    %205 = vector.extract_strided_slice %198 {offsets = [16, 0], sizes = [8, 256], strides = [1, 1]} : vector<24x256xf32> to vector<8x256xf32>
    %206 = vector.broadcast %7 : vector<8x1xf32> to vector<8x256xf32>
    %207 = arith.addf %205, %206 : vector<8x256xf32>
    %208 = vector.extract_strided_slice %182 {offsets = [0, 0], sizes = [8, 2304], strides = [1, 1]} : vector<24x2304xf32> to vector<8x2304xf32>
    %209 = vector.extract_strided_slice %182 {offsets = [8, 0], sizes = [8, 2304], strides = [1, 1]} : vector<24x2304xf32> to vector<8x2304xf32>
    %210 = vector.extract_strided_slice %182 {offsets = [16, 0], sizes = [8, 2304], strides = [1, 1]} : vector<24x2304xf32> to vector<8x2304xf32>
    %211 = vector.extract_strided_slice %209 {offsets = [0, 0], sizes = [8, 256], strides = [1, 1]} : vector<8x2304xf32> to vector<8x256xf32>
    %212 = arith.addf %211, %201 : vector<8x256xf32>
    %213 = vector.extract_strided_slice %210 {offsets = [0, 256], sizes = [8, 256], strides = [1, 1]} : vector<8x2304xf32> to vector<8x256xf32>
    %214 = arith.addf %212, %213 : vector<8x256xf32>
    %cst_84 = arith.constant 0.000000e+00 : f32
    %215 = vector.broadcast %cst_84 : f32 to vector<8x256xf32>
    %216 = arith.maximumf %214, %215 : vector<8x256xf32>
    %217 = vector.extract_strided_slice %209 {offsets = [0, 256], sizes = [8, 256], strides = [1, 1]} : vector<8x2304xf32> to vector<8x256xf32>
    %218 = arith.addf %217, %204 : vector<8x256xf32>
    %219 = vector.extract_strided_slice %208 {offsets = [0, 0], sizes = [8, 256], strides = [1, 1]} : vector<8x2304xf32> to vector<8x256xf32>
    %220 = arith.addf %218, %219 : vector<8x256xf32>
    %221 = vector.extract_strided_slice %210 {offsets = [0, 512], sizes = [8, 256], strides = [1, 1]} : vector<8x2304xf32> to vector<8x256xf32>
    %222 = arith.addf %220, %221 : vector<8x256xf32>
    %cst_85 = arith.constant 0.000000e+00 : f32
    %223 = vector.broadcast %cst_85 : f32 to vector<8x256xf32>
    %224 = arith.maximumf %222, %223 : vector<8x256xf32>
    %225 = arith.maximumf %216, %224 : vector<8x256xf32>
    %226 = vector.extract_strided_slice %209 {offsets = [0, 512], sizes = [8, 256], strides = [1, 1]} : vector<8x2304xf32> to vector<8x256xf32>
    %227 = arith.addf %226, %204 : vector<8x256xf32>
    %228 = vector.extract_strided_slice %208 {offsets = [0, 256], sizes = [8, 256], strides = [1, 1]} : vector<8x2304xf32> to vector<8x256xf32>
    %229 = arith.addf %227, %228 : vector<8x256xf32>
    %230 = vector.extract_strided_slice %210 {offsets = [0, 768], sizes = [8, 256], strides = [1, 1]} : vector<8x2304xf32> to vector<8x256xf32>
    %231 = arith.addf %229, %230 : vector<8x256xf32>
    %cst_86 = arith.constant 0.000000e+00 : f32
    %232 = vector.broadcast %cst_86 : f32 to vector<8x256xf32>
    %233 = arith.maximumf %231, %232 : vector<8x256xf32>
    %234 = arith.maximumf %225, %233 : vector<8x256xf32>
    %235 = vector.extract_strided_slice %209 {offsets = [0, 768], sizes = [8, 256], strides = [1, 1]} : vector<8x2304xf32> to vector<8x256xf32>
    %236 = arith.addf %235, %204 : vector<8x256xf32>
    %237 = vector.extract_strided_slice %208 {offsets = [0, 512], sizes = [8, 256], strides = [1, 1]} : vector<8x2304xf32> to vector<8x256xf32>
    %238 = arith.addf %236, %237 : vector<8x256xf32>
    %239 = vector.extract_strided_slice %210 {offsets = [0, 1024], sizes = [8, 256], strides = [1, 1]} : vector<8x2304xf32> to vector<8x256xf32>
    %240 = arith.addf %238, %239 : vector<8x256xf32>
    %cst_87 = arith.constant 0.000000e+00 : f32
    %241 = vector.broadcast %cst_87 : f32 to vector<8x256xf32>
    %242 = arith.maximumf %240, %241 : vector<8x256xf32>
    %243 = arith.maximumf %234, %242 : vector<8x256xf32>
    %244 = vector.extract_strided_slice %209 {offsets = [0, 1024], sizes = [8, 256], strides = [1, 1]} : vector<8x2304xf32> to vector<8x256xf32>
    %245 = arith.addf %244, %204 : vector<8x256xf32>
    %246 = vector.extract_strided_slice %208 {offsets = [0, 768], sizes = [8, 256], strides = [1, 1]} : vector<8x2304xf32> to vector<8x256xf32>
    %247 = arith.addf %245, %246 : vector<8x256xf32>
    %248 = vector.extract_strided_slice %210 {offsets = [0, 1280], sizes = [8, 256], strides = [1, 1]} : vector<8x2304xf32> to vector<8x256xf32>
    %249 = arith.addf %247, %248 : vector<8x256xf32>
    %cst_88 = arith.constant 0.000000e+00 : f32
    %250 = vector.broadcast %cst_88 : f32 to vector<8x256xf32>
    %251 = arith.maximumf %249, %250 : vector<8x256xf32>
    %252 = arith.maximumf %243, %251 : vector<8x256xf32>
    %253 = vector.extract_strided_slice %209 {offsets = [0, 1280], sizes = [8, 256], strides = [1, 1]} : vector<8x2304xf32> to vector<8x256xf32>
    %254 = arith.addf %253, %204 : vector<8x256xf32>
    %255 = vector.extract_strided_slice %208 {offsets = [0, 1024], sizes = [8, 256], strides = [1, 1]} : vector<8x2304xf32> to vector<8x256xf32>
    %256 = arith.addf %254, %255 : vector<8x256xf32>
    %257 = vector.extract_strided_slice %210 {offsets = [0, 1536], sizes = [8, 256], strides = [1, 1]} : vector<8x2304xf32> to vector<8x256xf32>
    %258 = arith.addf %256, %257 : vector<8x256xf32>
    %cst_89 = arith.constant 0.000000e+00 : f32
    %259 = vector.broadcast %cst_89 : f32 to vector<8x256xf32>
    %260 = arith.maximumf %258, %259 : vector<8x256xf32>
    %261 = arith.maximumf %252, %260 : vector<8x256xf32>
    %262 = vector.extract_strided_slice %209 {offsets = [0, 1536], sizes = [8, 256], strides = [1, 1]} : vector<8x2304xf32> to vector<8x256xf32>
    %263 = arith.addf %262, %204 : vector<8x256xf32>
    %264 = vector.extract_strided_slice %208 {offsets = [0, 1280], sizes = [8, 256], strides = [1, 1]} : vector<8x2304xf32> to vector<8x256xf32>
    %265 = arith.addf %263, %264 : vector<8x256xf32>
    %266 = vector.extract_strided_slice %210 {offsets = [0, 1792], sizes = [8, 256], strides = [1, 1]} : vector<8x2304xf32> to vector<8x256xf32>
    %267 = arith.addf %265, %266 : vector<8x256xf32>
    %cst_90 = arith.constant 0.000000e+00 : f32
    %268 = vector.broadcast %cst_90 : f32 to vector<8x256xf32>
    %269 = arith.maximumf %267, %268 : vector<8x256xf32>
    %270 = arith.maximumf %261, %269 : vector<8x256xf32>
    %271 = vector.extract_strided_slice %209 {offsets = [0, 1792], sizes = [8, 256], strides = [1, 1]} : vector<8x2304xf32> to vector<8x256xf32>
    %272 = arith.addf %271, %204 : vector<8x256xf32>
    %273 = vector.extract_strided_slice %208 {offsets = [0, 1536], sizes = [8, 256], strides = [1, 1]} : vector<8x2304xf32> to vector<8x256xf32>
    %274 = arith.addf %272, %273 : vector<8x256xf32>
    %275 = vector.extract_strided_slice %210 {offsets = [0, 2048], sizes = [8, 256], strides = [1, 1]} : vector<8x2304xf32> to vector<8x256xf32>
    %276 = arith.addf %274, %275 : vector<8x256xf32>
    %cst_91 = arith.constant 0.000000e+00 : f32
    %277 = vector.broadcast %cst_91 : f32 to vector<8x256xf32>
    %278 = arith.maximumf %276, %277 : vector<8x256xf32>
    %279 = arith.maximumf %270, %278 : vector<8x256xf32>
    %280 = vector.extract_strided_slice %209 {offsets = [0, 2048], sizes = [8, 256], strides = [1, 1]} : vector<8x2304xf32> to vector<8x256xf32>
    %281 = arith.addf %280, %207 : vector<8x256xf32>
    %282 = vector.extract_strided_slice %208 {offsets = [0, 1792], sizes = [8, 256], strides = [1, 1]} : vector<8x2304xf32> to vector<8x256xf32>
    %283 = arith.addf %281, %282 : vector<8x256xf32>
    %cst_92 = arith.constant 0.000000e+00 : f32
    %284 = vector.broadcast %cst_92 : f32 to vector<8x256xf32>
    %285 = arith.maximumf %283, %284 : vector<8x256xf32>
    %286 = arith.maximumf %279, %285 : vector<8x256xf32>
    %c0_93 = arith.constant 0 : index
    %c0_94 = arith.constant 0 : index
    %c0_95 = arith.constant 0 : index
    %c0_96 = arith.constant 0 : index
    %287 = vector.load %arg8[%c0_93, %c0_94, %c0_95, %c0_96] : memref<1x1x8x256xf32, #tpu.memory_space<vmem>>, vector<1x1x8x256xf32>
    %288 = vector.shape_cast %287 : vector<1x1x8x256xf32> to vector<8x256xf32>
    %289 = vector.shape_cast %286 : vector<8x256xf32> to vector<1x1x8x256xf32>
    tpu.vector_store %arg8[%c0_93, %c0_94, %c0_95, %c0_96], %289 {strides = array<i32>} : memref<1x1x8x256xf32, #tpu.memory_space<vmem>>, vector<1x1x8x256xf32>,
    %cst_97 = arith.constant dense<0xFF800000> : vector<8xf32>
    %290 = vector.multi_reduction <maximumf>, %286, %cst_97 [1] : vector<8x256xf32> to vector<8xf32>
    %291 = vector.shape_cast %290 : vector<8xf32> to vector<8x1xf32>
    %c0_98 = arith.constant 0 : index
    %c0_99 = arith.constant 0 : index
    %c0_100 = arith.constant 0 : index
    %c0_101 = arith.constant 0 : index
    %292 = vector.load %arg9[%c0_98, %c0_99, %c0_100, %c0_101] : memref<1x1x8x1xf32, #tpu.memory_space<vmem>>, vector<1x1x8x1xf32>
    %293 = vector.shape_cast %292 : vector<1x1x8x1xf32> to vector<8x1xf32>
    %294 = vector.shape_cast %291 : vector<8x1xf32> to vector<1x1x8x1xf32>
    tpu.vector_store %arg9[%c0_98, %c0_99, %c0_100, %c0_101], %294 {strides = array<i32>} : memref<1x1x8x1xf32, #tpu.memory_space<vmem>>, vector<1x1x8x1xf32>,
    return
  }
  func.func @transform_0(%arg0: i32, %arg1: i32) -> (i32, i32, i32, i32) {
    %c0_i32 = arith.constant 0 : i32
    %c0_i32_0 = arith.constant 0 : i32
    %c0_i32_1 = arith.constant 0 : i32
    return %arg0, %arg1, %c0_i32, %c0_i32_0 : i32, i32, i32, i32
  }
  func.func @transform_1(%arg0: i32, %arg1: i32) -> (i32, i32, i32, i32) {
    %c0_i32 = arith.constant 0 : i32
    %c0_i32_0 = arith.constant 0 : i32
    %c0_i32_1 = arith.constant 0 : i32
    return %arg0, %arg1, %c0_i32, %c0_i32_0 : i32, i32, i32, i32
  }
  func.func @transform_2(%arg0: i32, %arg1: i32) -> (i32, i32, i32, i32) {
    %c0_i32 = arith.constant 0 : i32
    %c0_i32_0 = arith.constant 0 : i32
    %c0_i32_1 = arith.constant 0 : i32
    return %arg0, %arg1, %c0_i32, %c0_i32_0 : i32, i32, i32, i32
  }
  func.func @transform_3(%arg0: i32, %arg1: i32) -> (i32, i32, i32, i32) {
    %c0_i32 = arith.constant 0 : i32
    %c0_i32_0 = arith.constant 0 : i32
    %c0_i32_1 = arith.constant 0 : i32
    %c0_i32_2 = arith.constant 0 : i32
    return %arg1, %c0_i32, %c0_i32_0, %c0_i32_1 : i32, i32, i32, i32
  }
  func.func @transform_4(%arg0: i32, %arg1: i32) -> (i32, i32, i32, i32) {
    %c0_i32 = arith.constant 0 : i32
    %c0_i32_0 = arith.constant 0 : i32
    %c0_i32_1 = arith.constant 0 : i32
    %c0_i32_2 = arith.constant 0 : i32
    return %arg1, %c0_i32, %c0_i32_0, %c0_i32_1 : i32, i32, i32, i32
  }
  func.func @transform_5(%arg0: i32, %arg1: i32) -> (i32, i32, i32) {
    %c0_i32 = arith.constant 0 : i32
    %c0_i32_0 = arith.constant 0 : i32
    %c0_i32_1 = arith.constant 0 : i32
    return %arg1, %c0_i32, %c0_i32_0 : i32, i32, i32
  }
  func.func @transform_6(%arg0: i32, %arg1: i32) -> (i32, i32, i32, i32) {
    %c0_i32 = arith.constant 0 : i32
    %c0_i32_0 = arith.constant 0 : i32
    %c0_i32_1 = arith.constant 0 : i32
    return %arg0, %arg1, %c0_i32, %c0_i32_0 : i32, i32, i32, i32
  }
  func.func @transform_7(%arg0: i32, %arg1: i32) -> (i32, i32, i32, i32) {
    %c0_i32 = arith.constant 0 : i32
    %c0_i32_0 = arith.constant 0 : i32
    %c0_i32_1 = arith.constant 0 : i32
    return %arg0, %arg1, %c0_i32, %c0_i32_0 : i32, i32, i32, i32
  }
}

</mosaic_0001>

<bundles_post_ra>
// kernel: _lambda_.1
= control target key start
LH: loop header
LB: loop body
LE: loop exit
PB: predicated region body
PF: predicated region fallthrough
CT: control target
= control target key end

     0   :  { %s4200_s24 = smov 0   ;;  %s4202_s25 = smov 0   ;;  %s5946_s0 = inlined_call_operand.vmem [shape: f32[2,4,8,256], index: 0, kind: input, shape index: {}]   ;;  %s5947_s1 = inlined_call_operand.vmem [shape: f32[2,4,8,16], index: 1, kind: input, shape index: {}]   ;;  %s5948_s2 = inlined_call_operand.vmem [shape: f32[2,4,16,8], index: 2, kind: input, shape index: {}]   ;;  %s5949_s3 = inlined_call_operand.vmem [shape: f32[4,3,24,8], index: 3, kind: input, shape index: {}]   ;;  %s5950_s4 = inlined_call_operand.vmem [shape: f32[4,3,24,8], index: 4, kind: input, shape index: {}]   ;;  %s5951_s5 = inlined_call_operand.vmem [shape: f32[4,8,1], index: 5, kind: input, shape index: {}]   ;;  %s5952_s6 = inlined_call_operand.vmem [shape: f32[2,4,8,256], index: 6, kind: output, shape index: {0}]   ;;  %s5953_s7 = inlined_call_operand.vmem [shape: f32[2,4,8,1], index: 7, kind: output, shape index: {1}]  }
   0x1   :  { %s4204_s26 = smov 0   ;;  %s4206_s27 = smov 0  }
   0x2   :  { %s4208_s28 = smov 0  }
   0x3 LB: > { %s27_s29 = sadd.s32 1, %s4146_s26  ;;  %s30_s30 = sadd.s32 1, %s4150_s27  ;;  %s4154_s28 = sphi %s4208_s28, %s18_s28   ;;  %s4150_s27 = sphi %s4206_s27, %s6162_s27   ;;  %s4146_s26 = sphi %s4204_s26, %s6161_s26   ;;  %s4142_s25 = sphi %s4202_s25, %s6160_s25   ;;  %s4138_s24 = sphi %s4200_s24, %s6159_s24  }
   0x4   : > { %p28_p0 = scmp.ge.s32.totalorder %s27_s29, 4  ;;  %p3619_p1 = scmp.ge.s32.totalorder %s4154_s28, 1 }
   0x5   : > { %p322_p2 = scmp.lt.s32.totalorder %s4154_s28, 9 }
   0x6   : > { %s6164_s29 = smov (%p28_p0, %s27_s29), 0  ;;  %s6166_s30 = smov (!%p28_p0, %s30_s30), %s4150_s27 }
   0x7   : > { %p323_p3 = pnand %p3619_p1, %p322_p2  ;;  %p32_p4 = scmp.ge.s32.totalorder %s6166_s30, 2 }
   0x9   : > { %s6168_s30 = smov (%p32_p4, %s6166_s30), 0  ;;  %326 = sbr.rel (%p323_p3) target bundleno = 1245 (0x4dd), region = 44 }
   0xe   : > { %p401_p5 = scmp.lt.s32.totalorder %s4142_s25, 1  ;;  %p403_p6 = scmp.lt.s32.totalorder %s4138_s24, 3  ;;  %vm466_vm0 = vcmask 64512   ;;  %v549_v36 = vlaneseq }
   0xf   : > { %s4158_s13 = smov 127  }
  0x10   : > { %s6170_s25 = smov (!%p401_p5, %s4142_s25), 1  ;;  %s6172_s24 = smov (!%p403_p6, %s4138_s24), 3  ;;  %v4284_v39 = vshrl.u32 %v549_v36, 7 }
  0x11   : > { %s3621_s8 = sshll.u32 %s6170_s25, 3  ;;  %s3620_s9 = sshll.u32 %s6172_s24, 1 }
  0x12   : > { %s407_s10 = sadd.s32 %s3621_s8, %s3620_s9  ;;  %s3623_s18 = sshll.u32 %s6170_s25, 2  ;;  %v4289_v43 = vadd.s32 8, %v4284_v39 }
  0x13   : > { %s4236_s11 = sshll.u32 %s407_s10, 3  ;;  %s4258_s19 = sadd.s32 %s3623_s18, %s6172_s24 }
  0x14   : > { %s426_s14 = scalar_lea.vmem %s5948_s2, %s4236_s11  ;;  %s4248_s17 = scalar_lea.vmem %s5946_s0, %s4236_s11 }
  0x15   : > { %v461_v0 = vld [vmem:[%s426_s14] sm:$0xff]  ;;  %v462_v2 = vld [vmem:[%s426_s14 + $0x8] sm:$0xff]  ;;  %s4062_s20 = smul.u32 72, %s6172_s24  ;;  %s3624_s21 = sshll.u32 %s4258_s19, 3 }
  0x16   : > { %v464_v1 = vmul.f32 %v461_v0, %v461_v0  ;;  %v465_v4 = vmul.f32 %v462_v2, %v462_v2  ;;  %v458_v6 = vld [vmem:[%s4248_s17] sm:$0xff]  ;;  %v459_v7 = vld [vmem:[%s4248_s17 + $0x8] sm:$0xff]  ;;  %s4267_s8 = scalar_lea.vmem %s5947_s1, %s3624_s21  ;;  %s4157_s25 = smov 1  }
  0x17   : > { %518 = vmatpush.msra.mxu1 %v458_v6  ;;  %s4274_s12 = scalar_lea.vmem %s5950_s4, %s4062_s20  ;;  %v460_v28 = vld [vmem:[%s4267_s8] sm:$0xff]  ;;  %s5469_s16 = scalar_lea.vmem %s5949_s3, %s4062_s20 }
  0x18   : > { %v467_v3 = vsel %vm466_vm0, %v464_v1, 0.0  ;;  %v470_v5 = vsel %vm466_vm0, %v465_v4, 0.0  ;;  %1559 = vmatpush.msra.mxu3 %v460_v28  ;;  %v3751_v29 = vld [vmem:[%s4274_s12 + $0x18] sm:$0xff]  ;;  %1520 = vmatpush.msra.mxu2 %v460_v28  ;;  %v3752_v30 = vld [vmem:[%s4274_s12 + $0x20] sm:$0xff]  ;;  %v3753_v32 = vld [vmem:[%s4274_s12 + $0x28] sm:$0xff]  ;;  %v5954_v1 = vmov 1.0  }
  0x19   : > { %468 = vadd.xlane.f32.xlu0 %v467_v3  ;;  %541 = vmatpush.msrb.mxu1 %v459_v7 }
  0x1a   : > { %3754 = vmatmul.msk.f32.vlgmr.msra.gmra.mxu3 %vm466_vm0, %v3751_v29 }
  0x21   : > { %471 = vadd.xlane.f32.xlu0 %v470_v5 }
  0x22   : > { %3755 = vmatmul.msk.f32.gmra.mxu3 %vm466_vm0, %v3752_v30 }
  0x2a   : > { %3756 = vmatmul.msk.f32.gmra.mxu3 %vm466_vm0, %v3753_v32 }
  0x8c   : > { %v469_v8 = vpop.xlane.xlu0 %468 }
  0x8d   : > { %v473_v9 = vmax.f32 %v469_v8, 1e-24 }
  0x8f   : > { %4109 = vrsqrt.f32 %v473_v9  ;;  %vm481_vm2 = vweird.f32 %v473_v9 }
  0x94   : > { %v472_v10 = vpop.xlane.xlu0 %471 }
  0x95   : > { %v4110_v11 = vpop.eup %4109  ;;  %v474_v12 = vmax.f32 %v472_v10, 1e-24 }
  0x96   : > { %v476_v13 = vmul.f32 %v4110_v11, %v473_v9  ;;  %vm482_vm1 = vweird.f32 %v4110_v11 }
  0x97   : > { %4111 = vrsqrt.f32 %v474_v12  ;;  %vm483_vm3 = vmor %vm481_vm2, %vm482_vm1  ;;  %vm491_vm5 = vweird.f32 %v474_v12 }
  0x98   : > { %v477_v14 = vmul.f32 %v4110_v11, %v476_v13 }
  0x9a   : > { %v478_v15 = vmul.f32 0.5, %v477_v14 }
  0x9c   : > { %v479_v16 = vsub.f32 1.5, %v478_v15 }
  0x9d   : > { %v4112_v17 = vpop.eup %4111 }
  0x9e   : > { %v486_v18 = vmul.f32 %v4112_v17, %v474_v12  ;;  %v480_v19 = vmul.f32 %v4110_v11, %v479_v16  ;;  %vm492_vm4 = vweird.f32 %v4112_v17 }
  0x9f   : > { %vm493_vm6 = vmor %vm491_vm5, %vm492_vm4 }
  0xa0   : > { %v487_v20 = vmul.f32 %v4112_v17, %v486_v18  ;;  %v484_v21 = vsel %vm483_vm3, %v4110_v11, %v480_v19 }
  0xa1   : > { %v495_v22 = vmul.f32 %v484_v21, %v461_v0 }
  0xa2   : > { %v488_v23 = vmul.f32 0.5, %v487_v20 }
  0xa3   : > { %3636 = vmatmul.msk.f32.vlgmr.msra.gmra.mxu1 %vm466_vm0, %v495_v22 }
  0xa4   : > { %v489_v24 = vsub.f32 1.5, %v488_v23 }
  0xa6   : > { %v490_v25 = vmul.f32 %v4112_v17, %v489_v24 }
  0xa8   : > { %v494_v26 = vsel %vm493_vm6, %v4112_v17, %v490_v25 }
  0xa9   : > { %v496_v27 = vmul.f32 %v494_v26, %v462_v2 }
  0xab   : > { %3637 = vmatmul.msk.f32.gmra.mxu1 %vm466_vm0, %v496_v27 }
  0xb3   : > { %3638 = vmatmul.msk.f32.vlgmr.msrb.gmra.mxu1 %vm466_vm0, %v495_v22 }
  0xbb   : > { %3639 = vmatmul.msk.f32.gmra.mxu1 %vm466_vm0, %v496_v27 }
 0x120   : > { %v520_v31 = vpop.f32.mrf.mxu1 }
 0x128   : > { %v523_v33 = vpop.f32.mrf.mxu1 }
 0x129   : > { %v555_v34 = vmax.f32 %v520_v31, %v523_v33 }
 0x12b   : > { %v556_v35 = vrot.slane %v555_v34, 4 }
 0x12d   : > { %v557_v37 = vmax.f32 %v555_v34, %v556_v35 }
 0x12f   : > { %v558_v38 = vrot.slane %v557_v37, 2 }
 0x130   : > { %v4286_v40 = vpop.f32.mrf.mxu1 }
 0x131   : > { %v559_v41 = vmax.f32 %v557_v37, %v558_v38 }
 0x133   : > { %v560_v42 = vrot.slane %v559_v41, 1 }
 0x135   : > { %v561_v44 = vmax.f32 %v559_v41, %v560_v42 }
 0x137   : > { %vm569_vm7 = vcmp.ge.f32.partialorder %v520_v31, %v561_v44  ;;  %vm571_vm8 = vcmp.ge.f32.partialorder %v523_v33, %v561_v44 }
 0x138   : > { %v573_v45 = vsel %vm569_vm7, %v4284_v39, 16  ;;  %v575_v46 = vsel %vm571_vm8, %v4289_v43, 16  ;;  %v546_v47 = vpop.f32.mrf.mxu1 }
 0x139   : > { %vm577_vm9 = vcmp.lt.s32.totalorder %v573_v45, %v575_v46  ;;  %v562_v48 = vmax.f32 %v4286_v40, %v546_v47 }
 0x13a   : > { %v578_v49 = vsel %vm577_vm9, %v573_v45, %v575_v46 }
 0x13b   : > { %v579_v50 = vrot.slane %v578_v49, 4  ;;  %v563_v51 = vrot.slane %v562_v48, 4 }
 0x13d   : > { %vm580_vm10 = vcmp.lt.s32.totalorder %v578_v49, %v579_v50  ;;  %v564_v52 = vmax.f32 %v562_v48, %v563_v51 }
 0x13e   : > { %v581_v53 = vsel %vm580_vm10, %v578_v49, %v579_v50 }
 0x13f   : > { %v565_v54 = vrot.slane %v564_v52, 2  ;;  %v582_v55 = vrot.slane %v581_v53, 2 }
 0x141   : > { %v566_v56 = vmax.f32 %v564_v52, %v565_v54  ;;  %vm583_vm11 = vcmp.lt.s32.totalorder %v581_v53, %v582_v55 }
 0x142   : > { %v584_v57 = vsel %vm583_vm11, %v581_v53, %v582_v55 }
 0x143   : > { %v567_v58 = vrot.slane %v566_v56, 1  ;;  %v585_v59 = vrot.slane %v584_v57, 1 }
 0x145   : > { %v568_v60 = vmax.f32 %v566_v56, %v567_v58  ;;  %vm586_vm12 = vcmp.lt.s32.totalorder %v584_v57, %v585_v59 }
 0x146   : > { %v4294_v61 = vsel %vm586_vm12, %v584_v57, %v585_v59 }
 0x147   : > { %vm570_vm13 = vcmp.ge.f32.partialorder %v4286_v40, %v568_v60  ;;  %vm572_vm14 = vcmp.ge.f32.partialorder %v546_v47, %v568_v60  ;;  %vm601_vm15 = vcmp.eq.s32.totalorder %v4289_v43, %v4294_v61  ;;  %vm599_vm1 = vcmp.eq.s32.totalorder %v4284_v39, %v4294_v61 }
 0x148   : > { %v574_v62 = vsel %vm570_vm13, %v4284_v39, 16  ;;  %v576_v63 = vsel %vm572_vm14, %v4289_v43, 16  ;;  %v613_v0 = vsel %vm601_vm15, -inf, %v523_v33  ;;  %3757 = vmatpush.msk.msra.mxu0 %vm601_vm15, %v5954_v1  ;;  %v611_v2 = vsel %vm599_vm1, -inf, %v520_v31 }
 0x149   : > { %vm588_vm2 = vcmp.lt.s32.totalorder %v574_v62, %v576_v63  ;;  %v615_v3 = vmax.f32 %v611_v2, %v613_v0 }
 0x14a   : > { %v589_v4 = vsel %vm588_vm2, %v574_v62, %v576_v63  ;;  %3758 = vmatpush.msk.msra.mxu0 %vm599_vm1, %v5954_v1 }
 0x14b   : > { %v590_v5 = vrot.slane %v589_v4, 4  ;;  %v616_v6 = vrot.slane %v615_v3, 4 }
 0x14d   : > { %v617_v7 = vmax.f32 %v615_v3, %v616_v6  ;;  %vm591_vm3 = vcmp.lt.s32.totalorder %v589_v4, %v590_v5 }
 0x14e   : > { %v592_v8 = vsel %vm591_vm3, %v589_v4, %v590_v5 }
 0x14f   : > { %v618_v9 = vrot.slane %v617_v7, 2  ;;  %v593_v10 = vrot.slane %v592_v8, 2 }
 0x151   : > { %v619_v11 = vmax.f32 %v617_v7, %v618_v9  ;;  %vm594_vm4 = vcmp.lt.s32.totalorder %v592_v8, %v593_v10 }
 0x152   : > { %v595_v12 = vsel %vm594_vm4, %v592_v8, %v593_v10  ;;  %v1493_v8 = vld [vmem:[%s4274_s12] sm:$0xff] }
 0x153   : > { %v620_v13 = vrot.slane %v619_v11, 1  ;;  %v596_v14 = vrot.slane %v595_v12, 1  ;;  %3748 = vmatmul.msk.f32.vlgmr.msra.gmra.mxu2 %vm466_vm0, %v1493_v8 }
 0x155   : > { %v621_v15 = vmax.f32 %v619_v11, %v620_v13  ;;  %vm597_vm5 = vcmp.lt.s32.totalorder %v595_v12, %v596_v14 }
 0x156   : > { %v4305_v16 = vsel %vm597_vm5, %v595_v12, %v596_v14 }
 0x157   : > { %vm629_vm6 = vcmp.ge.f32.partialorder %v611_v2, %v621_v15  ;;  %vm631_vm7 = vcmp.ge.f32.partialorder %v613_v0, %v621_v15  ;;  %1095 = vrot.lane.b32.xlu1 %v4305_v16, %s4157_s25  ;;  %vm602_vm8 = vcmp.eq.s32.totalorder %v4289_v43, %v4305_v16  ;;  %vm600_vm9 = vcmp.eq.s32.totalorder %v4284_v39, %v4305_v16 }
 0x158   : > { %v633_v17 = vsel %vm629_vm6, %v4284_v39, 16  ;;  %3762 = vmatpush.msk.msra.mxu1 %vm602_vm8, %v5954_v1  ;;  %v612_v18 = vsel %vm600_vm9, -inf, %v4286_v40  ;;  %v635_v19 = vsel %vm631_vm7, %v4289_v43, 16  ;;  %v614_v20 = vsel %vm602_vm8, -inf, %v546_v47 }
 0x159   : > { %vm637_vm10 = vcmp.lt.s32.totalorder %v633_v17, %v635_v19  ;;  %v622_v21 = vmax.f32 %v612_v18, %v614_v20 }
 0x15a   : > { %3763 = vmatpush.msk.msra.mxu1 %vm600_vm9, %v5954_v1  ;;  %v638_v22 = vsel %vm637_vm10, %v633_v17, %v635_v19 }
 0x15b   : > { %v639_v23 = vrot.slane %v638_v22, 4  ;;  %v623_v24 = vrot.slane %v622_v21, 4 }
 0x15d   : > { %vm640_vm11 = vcmp.lt.s32.totalorder %v638_v22, %v639_v23  ;;  %v624_v25 = vmax.f32 %v622_v21, %v623_v24 }
 0x15e   : > { %v641_v26 = vsel %vm640_vm11, %v638_v22, %v639_v23 }
 0x15f   : > { %v642_v27 = vrot.slane %v641_v26, 2  ;;  %v625_v28 = vrot.slane %v624_v25, 2 }
 0x161   : > { %vm643_vm12 = vcmp.lt.s32.totalorder %v641_v26, %v642_v27  ;;  %v626_v29 = vmax.f32 %v624_v25, %v625_v28 }
 0x162   : > { %v644_v30 = vsel %vm643_vm12, %v641_v26, %v642_v27 }
 0x163   : > { %v645_v31 = vrot.slane %v644_v30, 1  ;;  %v627_v32 = vrot.slane %v626_v29, 1 }
 0x165   : > { %vm646_vm13 = vcmp.lt.s32.totalorder %v644_v30, %v645_v31  ;;  %v628_v33 = vmax.f32 %v626_v29, %v627_v32  ;;  %v1495_v29 = vld [vmem:[%s4274_s12 + $0x10] sm:$0xff] }
 0x166   : > { %v4318_v34 = vsel %vm646_vm13, %v644_v30, %v645_v31 }
 0x167   : > { %1097 = vrot.lane.b32.xlu1 %v4318_v34, %s4157_s25  ;;  %vm661_vm14 = vcmp.eq.s32.totalorder %v4289_v43, %v4318_v34  ;;  %vm659_vm15 = vcmp.eq.s32.totalorder %v4284_v39, %v4318_v34  ;;  %vm630_vm1 = vcmp.ge.f32.partialorder %v612_v18, %v628_v33  ;;  %vm632_vm2 = vcmp.ge.f32.partialorder %v614_v20, %v628_v33 }
 0x168   : > { %v673_v35 = vsel %vm661_vm14, -inf, %v613_v0  ;;  %3767 = vmatpush.msk.msrb.mxu2 %vm661_vm14, %v5954_v1  ;;  %v671_v37 = vsel %vm659_vm15, -inf, %v611_v2  ;;  %v634_v38 = vsel %vm630_vm1, %v4284_v39, 16  ;;  %v636_v40 = vsel %vm632_vm2, %v4289_v43, 16 }
 0x169   : > { %v675_v41 = vmax.f32 %v671_v37, %v673_v35  ;;  %vm648_vm3 = vcmp.lt.s32.totalorder %v634_v38, %v636_v40 }
 0x16a   : > { %3768 = vmatpush.msk.msrb.mxu2 %vm659_vm15, %v5954_v1  ;;  %v649_v42 = vsel %vm648_vm3, %v634_v38, %v636_v40 }
 0x16b   : > { %v676_v44 = vrot.slane %v675_v41, 4  ;;  %v650_v45 = vrot.slane %v649_v42, 4 }
 0x16d   : > { %v677_v46 = vmax.f32 %v675_v41, %v676_v44  ;;  %vm651_vm4 = vcmp.lt.s32.totalorder %v649_v42, %v650_v45  ;;  %v4382_v44 = vpop.f32.mrf.mxu3 }
 0x16e   : > { %v652_v47 = vsel %vm651_vm4, %v649_v42, %v650_v45 }
 0x16f   : > { %v678_v48 = vrot.slane %v677_v46, 2  ;;  %v653_v49 = vrot.slane %v652_v47, 2 }
 0x171   : > { %v679_v50 = vmax.f32 %v677_v46, %v678_v48  ;;  %vm654_vm5 = vcmp.lt.s32.totalorder %v652_v47, %v653_v49 }
 0x172   : > { %v655_v51 = vsel %vm654_vm5, %v652_v47, %v653_v49 }
 0x173   : > { %v680_v52 = vrot.slane %v679_v50, 1  ;;  %v656_v53 = vrot.slane %v655_v51, 1 }
 0x175   : > { %v681_v54 = vmax.f32 %v679_v50, %v680_v52  ;;  %vm657_vm6 = vcmp.lt.s32.totalorder %v655_v51, %v656_v53 }
 0x176   : > { %v4330_v55 = vsel %vm657_vm6, %v655_v51, %v656_v53  ;;  %v4392_v53 = vpop.f32.mrf.mxu3 }
 0x177   : > { %vm689_vm7 = vcmp.ge.f32.partialorder %v671_v37, %v681_v54  ;;  %vm691_vm8 = vcmp.ge.f32.partialorder %v673_v35, %v681_v54  ;;  %vm662_vm9 = vcmp.eq.s32.totalorder %v4289_v43, %v4330_v55  ;;  %vm660_vm10 = vcmp.eq.s32.totalorder %v4284_v39, %v4330_v55 }
 0x178   : > { %v693_v56 = vsel %vm689_vm7, %v4284_v39, 16  ;;  %v695_v57 = vsel %vm691_vm8, %v4289_v43, 16  ;;  %v674_v58 = vsel %vm662_vm9, -inf, %v614_v20  ;;  %3772 = vmatpush.msk.msrb.mxu3 %vm662_vm9, %v5954_v1  ;;  %v672_v59 = vsel %vm660_vm10, -inf, %v612_v18  ;;  %v1494_v20 = vld [vmem:[%s4274_s12 + $0x8] sm:$0xff] }
 0x179   : > { %vm697_vm11 = vcmp.lt.s32.totalorder %v693_v56, %v695_v57  ;;  %v682_v60 = vmax.f32 %v672_v59, %v674_v58  ;;  %3749 = vmatmul.msk.f32.gmra.mxu2 %vm466_vm0, %v1494_v20 }
 0x17a   : > { %v698_v62 = vsel %vm697_vm11, %v693_v56, %v695_v57  ;;  %3773 = vmatpush.msk.msrb.mxu3 %vm660_vm10, %v5954_v1 }
 0x17b   : > { %v699_v63 = vrot.slane %v698_v62, 4  ;;  %v683_v0 = vrot.slane %v682_v60, 4 }
 0x17d   : > { %vm700_vm12 = vcmp.lt.s32.totalorder %v698_v62, %v699_v63  ;;  %v684_v2 = vmax.f32 %v682_v60, %v683_v0 }
 0x17e   : > { %v701_v3 = vsel %vm700_vm12, %v698_v62, %v699_v63 }
 0x17f   : > { %v685_v4 = vrot.slane %v684_v2, 2  ;;  %v702_v5 = vrot.slane %v701_v3, 2 }
 0x181   : > { %v686_v6 = vmax.f32 %v684_v2, %v685_v4  ;;  %vm703_vm13 = vcmp.lt.s32.totalorder %v701_v3, %v702_v5  ;;  %3750 = vmatmul.msk.f32.gmra.mxu2 %vm466_vm0, %v1495_v29 }
 0x182   : > { %v704_v7 = vsel %vm703_vm13, %v701_v3, %v702_v5  ;;  %vm1570_vm13 = vcmask 130048   ;;  %v4424_v3 = vpop.f32.mrf.mxu3 }
 0x183   : > { %v687_v9 = vrot.slane %v686_v6, 1  ;;  %v705_v10 = vrot.slane %v704_v7, 1  ;;  %3759 = vmatmul.msk.f32.vlgmr.msra.gmra.mxu0 %vm1570_vm13, %v4382_v44  ;;  %3764 = vmatmul.msk.f32.vlgmr.msra.gmra.mxu1 %vm1570_vm13, %v4382_v44 }
 0x184   : > { %3774 = vmatmul.msk.f32.vlgmr.msrb.gmra.mxu3 %vm1570_vm13, %v4382_v44 }
 0x185   : > { %v688_v11 = vmax.f32 %v686_v6, %v687_v9  ;;  %vm706_vm14 = vcmp.lt.s32.totalorder %v704_v7, %v705_v10 }
 0x186   : > { %v4342_v12 = vsel %vm706_vm14, %v704_v7, %v705_v10 }
 0x187   : > { %vm690_vm15 = vcmp.ge.f32.partialorder %v672_v59, %v688_v11  ;;  %vm692_vm1 = vcmp.ge.f32.partialorder %v674_v58, %v688_v11  ;;  %vm721_vm2 = vcmp.eq.s32.totalorder %v4289_v43, %v4342_v12  ;;  %vm719_vm3 = vcmp.eq.s32.totalorder %v4284_v39, %v4342_v12 }
 0x188   : > { %v694_v13 = vsel %vm690_vm15, %v4284_v39, 16  ;;  %v4349_v14 = vsel %vm721_vm2, -inf, %v673_v35  ;;  %3777 = vmatpush.msk.msrb.mxu0 %vm721_vm2, %v5954_v1  ;;  %v4352_v15 = vsel %vm719_vm3, -inf, %v671_v37  ;;  %v696_v17 = vsel %vm692_vm1, %v4289_v43, 16 }
 0x189   : > { %v735_v18 = vmax.f32 %v4352_v15, %v4349_v14  ;;  %vm708_vm4 = vcmp.lt.s32.totalorder %v694_v13, %v696_v17  ;;  %3769 = vmatmul.msk.f32.vlgmr.msrb.gmra.mxu2 %vm1570_vm13, %v4382_v44 }
 0x18a   : > { %3778 = vmatpush.msk.msrb.mxu0 %vm719_vm3, %v5954_v1  ;;  %v709_v19 = vsel %vm708_vm4, %v694_v13, %v696_v17 }
 0x18b   : > { %v736_v21 = vrot.slane %v735_v18, 4  ;;  %v710_v22 = vrot.slane %v709_v19, 4  ;;  %3760 = vmatmul.msk.f32.gmra.mxu0 %vm1570_vm13, %v4392_v53  ;;  %3765 = vmatmul.msk.f32.gmra.mxu1 %vm1570_vm13, %v4392_v53 }
 0x18c   : > { %3775 = vmatmul.msk.f32.gmra.mxu3 %vm1570_vm13, %v4392_v53 }
 0x18d   : > { %v737_v23 = vmax.f32 %v735_v18, %v736_v21  ;;  %vm711_vm5 = vcmp.lt.s32.totalorder %v709_v19, %v710_v22 }
 0x18e   : > { %v712_v24 = vsel %vm711_vm5, %v709_v19, %v710_v22 }
 0x18f   : > { %v738_v25 = vrot.slane %v737_v23, 2  ;;  %v713_v26 = vrot.slane %v712_v24, 2 }
 0x191   : > { %v739_v27 = vmax.f32 %v737_v23, %v738_v25  ;;  %vm714_vm6 = vcmp.lt.s32.totalorder %v712_v24, %v713_v26  ;;  %3770 = vmatmul.msk.f32.gmra.mxu2 %vm1570_vm13, %v4392_v53 }
 0x192   : > { %v715_v28 = vsel %vm714_vm6, %v712_v24, %v713_v26 }
 0x193   : > { %v740_v30 = vrot.slane %v739_v27, 1  ;;  %v716_v31 = vrot.slane %v715_v28, 1  ;;  %3761 = vmatmul.msk.f32.gmra.mxu0 %vm1570_vm13, %v4424_v3  ;;  %3766 = vmatmul.msk.f32.gmra.mxu1 %vm1570_vm13, %v4424_v3 }
 0x194   : > { %3776 = vmatmul.msk.f32.gmra.mxu3 %vm1570_vm13, %v4424_v3 }
 0x195   : > { %v741_v32 = vmax.f32 %v739_v27, %v740_v30  ;;  %vm717_vm7 = vcmp.lt.s32.totalorder %v715_v28, %v716_v31 }
 0x196   : > { %v4362_v33 = vsel %vm717_vm7, %v715_v28, %v716_v31 }
 0x197   : > { %vm749_vm8 = vcmp.ge.f32.partialorder %v4352_v15, %v741_v32  ;;  %vm751_vm9 = vcmp.ge.f32.partialorder %v4349_v14, %v741_v32  ;;  %1103 = vrot.lane.b32.xlu2 %v4362_v33, %s4157_s25  ;;  %vm722_vm10 = vcmp.eq.s32.totalorder %v4289_v43, %v4362_v33  ;;  %vm720_vm11 = vcmp.eq.s32.totalorder %v4284_v39, %v4362_v33 }
 0x198   : > { %v753_v35 = vsel %vm749_vm8, %v4284_v39, 16  ;;  %v4373_v37 = vsel %vm722_vm10, -inf, %v674_v58  ;;  %3782 = vmatpush.msk.msrb.mxu1 %vm722_vm10, %v5954_v1  ;;  %v4376_v38 = vsel %vm720_vm11, -inf, %v672_v59  ;;  %v755_v40 = vsel %vm751_vm9, %v4289_v43, 16 }
 0x199   : > { %v742_v41 = vmax.f32 %v4376_v38, %v4373_v37  ;;  %vm757_vm12 = vcmp.lt.s32.totalorder %v753_v35, %v755_v40  ;;  %3771 = vmatmul.msk.f32.gmra.mxu2 %vm1570_vm13, %v4424_v3 }
 0x19a   : > { %3783 = vmatpush.msk.msrb.mxu1 %vm720_vm11, %v5954_v1  ;;  %v758_v42 = vsel %vm757_vm12, %v753_v35, %v755_v40 }
 0x19b   : > { %v743_v45 = vrot.slane %v742_v41, 4  ;;  %v759_v46 = vrot.slane %v758_v42, 4  ;;  %3779 = vmatmul.msk.f32.vlgmr.msrb.gmra.mxu0 %vm1570_vm13, %v4382_v44  ;;  %3784 = vmatmul.msk.f32.vlgmr.msrb.gmra.mxu1 %vm1570_vm13, %v4382_v44 }
 0x19d   : > { %v744_v47 = vmax.f32 %v742_v41, %v743_v45  ;;  %vm760_vm14 = vcmp.lt.s32.totalorder %v758_v42, %v759_v46 }
 0x19e   : > { %v761_v48 = vsel %vm760_vm14, %v758_v42, %v759_v46 }
 0x19f   : > { %v745_v49 = vrot.slane %v744_v47, 2  ;;  %v762_v50 = vrot.slane %v761_v48, 2 }
 0x1a1   : > { %v746_v51 = vmax.f32 %v744_v47, %v745_v49  ;;  %vm763_vm15 = vcmp.lt.s32.totalorder %v761_v48, %v762_v50 }
 0x1a2   : > { %v764_v52 = vsel %vm763_vm15, %v761_v48, %v762_v50 }
 0x1a3   : > { %v747_v54 = vrot.slane %v746_v51, 1  ;;  %v765_v56 = vrot.slane %v764_v52, 1  ;;  %3780 = vmatmul.msk.f32.gmra.mxu0 %vm1570_vm13, %v4392_v53  ;;  %3785 = vmatmul.msk.f32.gmra.mxu1 %vm1570_vm13, %v4392_v53 }
 0x1a5   : > { %v748_v57 = vmax.f32 %v746_v51, %v747_v54  ;;  %vm766_vm1 = vcmp.lt.s32.totalorder %v764_v52, %v765_v56 }
 0x1a6   : > { %v4402_v58 = vsel %vm766_vm1, %v764_v52, %v765_v56 }
 0x1a7   : > { %vm750_vm2 = vcmp.ge.f32.partialorder %v4376_v38, %v748_v57  ;;  %vm752_vm3 = vcmp.ge.f32.partialorder %v4373_v37, %v748_v57  ;;  %vm781_vm4 = vcmp.eq.s32.totalorder %v4289_v43, %v4402_v58  ;;  %1105 = vrot.lane.b32.xlu2 %v4402_v58, %s4157_s25  ;;  %vm779_vm5 = vcmp.eq.s32.totalorder %v4284_v39, %v4402_v58 }
 0x1a8   : > { %v754_v59 = vsel %vm750_vm2, %v4284_v39, 16  ;;  %v756_v60 = vsel %vm752_vm3, %v4289_v43, 16  ;;  %v4415_v62 = vsel %vm781_vm4, -inf, %v4349_v14  ;;  %3787 = vmatpush.msk.msra.mxu2 %vm781_vm4, %v5954_v1  ;;  %v4419_v63 = vsel %vm779_vm5, -inf, %v4352_v15 }
 0x1a9   : > { %vm768_vm6 = vcmp.lt.s32.totalorder %v754_v59, %v756_v60  ;;  %v795_v0 = vmax.f32 %v4419_v63, %v4415_v62 }
 0x1aa   : > { %v769_v2 = vsel %vm768_vm6, %v754_v59, %v756_v60  ;;  %3788 = vmatpush.msk.msra.mxu2 %vm779_vm5, %v5954_v1 }
 0x1ab   : > { %v770_v4 = vrot.slane %v769_v2, 4  ;;  %v796_v5 = vrot.slane %v795_v0, 4  ;;  %3789 = vmatmul.msk.f32.vlgmr.msra.gmra.mxu2 %vm1570_vm13, %v4382_v44  ;;  %3781 = vmatmul.msk.f32.gmra.mxu0 %vm1570_vm13, %v4424_v3 }
 0x1ac   : > { %3786 = vmatmul.msk.f32.gmra.mxu1 %vm1570_vm13, %v4424_v3 }
 0x1ad   : > { %vm771_vm7 = vcmp.lt.s32.totalorder %v769_v2, %v770_v4  ;;  %v797_v6 = vmax.f32 %v795_v0, %v796_v5 }
 0x1ae   : > { %v772_v7 = vsel %vm771_vm7, %v769_v2, %v770_v4 }
 0x1af   : > { %v773_v8 = vrot.slane %v772_v7, 2  ;;  %v798_v9 = vrot.slane %v797_v6, 2 }
 0x1b1   : > { %v799_v10 = vmax.f32 %v797_v6, %v798_v9  ;;  %vm774_vm8 = vcmp.lt.s32.totalorder %v772_v7, %v773_v8 }
 0x1b2   : > { %v775_v11 = vsel %vm774_vm8, %v772_v7, %v773_v8 }
 0x1b3   : > { %v800_v13 = vrot.slane %v799_v10, 1  ;;  %v776_v14 = vrot.slane %v775_v11, 1  ;;  %3790 = vmatmul.msk.f32.gmra.mxu2 %vm1570_vm13, %v4392_v53 }
 0x1b5   : > { %v801_v15 = vmax.f32 %v799_v10, %v800_v13  ;;  %vm777_vm9 = vcmp.lt.s32.totalorder %v775_v11, %v776_v14 }
 0x1b6   : > { %v4440_v17 = vsel %vm777_vm9, %v775_v11, %v776_v14 }
 0x1b7   : > { %vm809_vm10 = vcmp.ge.f32.partialorder %v4419_v63, %v801_v15  ;;  %vm811_vm11 = vcmp.ge.f32.partialorder %v4415_v62, %v801_v15  ;;  %vm782_vm12 = vcmp.eq.s32.totalorder %v4289_v43, %v4440_v17  ;;  %vm780_vm14 = vcmp.eq.s32.totalorder %v4284_v39, %v4440_v17 }
 0x1b8   : > { %v813_v18 = vsel %vm809_vm10, %v4284_v39, 16  ;;  %v815_v19 = vsel %vm811_vm11, %v4289_v43, 16  ;;  %v4451_v20 = vsel %vm782_vm12, -inf, %v4373_v37  ;;  %3792 = vmatpush.msk.msra.mxu3 %vm782_vm12, %v5954_v1  ;;  %v4455_v21 = vsel %vm780_vm14, -inf, %v4376_v38 }
 0x1b9   : > { %vm817_vm15 = vcmp.lt.s32.totalorder %v813_v18, %v815_v19  ;;  %v802_v22 = vmax.f32 %v4455_v21, %v4451_v20 }
 0x1ba   : > { %v818_v23 = vsel %vm817_vm15, %v813_v18, %v815_v19  ;;  %3793 = vmatpush.msk.msra.mxu3 %vm780_vm14, %v5954_v1 }
 0x1bb   : > { %v819_v24 = vrot.slane %v818_v23, 4  ;;  %v803_v25 = vrot.slane %v802_v22, 4  ;;  %3794 = vmatmul.msk.f32.vlgmr.msra.gmra.mxu3 %vm1570_vm13, %v4382_v44  ;;  %3791 = vmatmul.msk.f32.gmra.mxu2 %vm1570_vm13, %v4424_v3 }
 0x1bd   : > { %vm820_vm1 = vcmp.lt.s32.totalorder %v818_v23, %v819_v24  ;;  %v804_v26 = vmax.f32 %v802_v22, %v803_v25 }
 0x1be   : > { %v821_v27 = vsel %vm820_vm1, %v818_v23, %v819_v24 }
 0x1bf   : > { %v822_v28 = vrot.slane %v821_v27, 2  ;;  %v805_v29 = vrot.slane %v804_v26, 2 }
 0x1c1   : > { %v806_v30 = vmax.f32 %v804_v26, %v805_v29  ;;  %vm823_vm2 = vcmp.lt.s32.totalorder %v821_v27, %v822_v28 }
 0x1c2   : > { %v824_v31 = vsel %vm823_vm2, %v821_v27, %v822_v28 }
 0x1c3   : > { %v807_v32 = vrot.slane %v806_v30, 1  ;;  %v825_v35 = vrot.slane %v824_v31, 1  ;;  %3795 = vmatmul.msk.f32.gmra.mxu3 %vm1570_vm13, %v4392_v53 }
 0x1c5   : > { %v808_v37 = vmax.f32 %v806_v30, %v807_v32  ;;  %vm826_vm3 = vcmp.lt.s32.totalorder %v824_v31, %v825_v35 }
 0x1c6   : > { %v4476_v38 = vsel %vm826_vm3, %v824_v31, %v825_v35 }
 0x1c7   : > { %vm810_vm4 = vcmp.ge.f32.partialorder %v4455_v21, %v808_v37  ;;  %vm812_vm5 = vcmp.ge.f32.partialorder %v4451_v20, %v808_v37  ;;  %vm841_vm6 = vcmp.eq.s32.totalorder %v4289_v43, %v4476_v38  ;;  %vm839_vm7 = vcmp.eq.s32.totalorder %v4284_v39, %v4476_v38 }
 0x1c8   : > { %v814_v40 = vsel %vm810_vm4, %v4284_v39, 16  ;;  %v816_v41 = vsel %vm812_vm5, %v4289_v43, 16  ;;  %v4487_v42 = vsel %vm841_vm6, -inf, %v4415_v62  ;;  %3797 = vmatpush.msk.msra.mxu0 %vm841_vm6, %v5954_v1  ;;  %v4491_v45 = vsel %vm839_vm7, -inf, %v4419_v63 }
 0x1c9   : > { %vm828_vm8 = vcmp.lt.s32.totalorder %v814_v40, %v816_v41  ;;  %v855_v46 = vmax.f32 %v4491_v45, %v4487_v42 }
 0x1ca   : > { %v829_v47 = vsel %vm828_vm8, %v814_v40, %v816_v41  ;;  %3798 = vmatpush.msk.msra.mxu0 %vm839_vm7, %v5954_v1 }
 0x1cb   : > { %v856_v48 = vrot.slane %v855_v46, 4  ;;  %v830_v49 = vrot.slane %v829_v47, 4  ;;  %3799 = vmatmul.msk.f32.vlgmr.msra.gmra.mxu0 %vm1570_vm13, %v4382_v44  ;;  %3796 = vmatmul.msk.f32.gmra.mxu3 %vm1570_vm13, %v4424_v3 }
 0x1cd   : > { %v857_v50 = vmax.f32 %v855_v46, %v856_v48  ;;  %vm831_vm9 = vcmp.lt.s32.totalorder %v829_v47, %v830_v49 }
 0x1ce   : > { %v832_v51 = vsel %vm831_vm9, %v829_v47, %v830_v49 }
 0x1cf   : > { %v858_v52 = vrot.slane %v857_v50, 2  ;;  %v833_v54 = vrot.slane %v832_v51, 2 }
 0x1d1   : > { %v859_v56 = vmax.f32 %v857_v50, %v858_v52  ;;  %vm834_vm10 = vcmp.lt.s32.totalorder %v832_v51, %v833_v54 }
 0x1d2   : > { %v835_v57 = vsel %vm834_vm10, %v832_v51, %v833_v54 }
 0x1d3   : > { %v860_v59 = vrot.slane %v859_v56, 1  ;;  %v836_v60 = vrot.slane %v835_v57, 1  ;;  %3800 = vmatmul.msk.f32.gmra.mxu0 %vm1570_vm13, %v4392_v53 }
 0x1d5   : > { %v861_v62 = vmax.f32 %v859_v56, %v860_v59  ;;  %vm837_vm11 = vcmp.lt.s32.totalorder %v835_v57, %v836_v60 }
 0x1d6   : > { %v4502_v63 = vsel %vm837_vm11, %v835_v57, %v836_v60 }
 0x1d7   : > { %vm869_vm12 = vcmp.ge.f32.partialorder %v4491_v45, %v861_v62  ;;  %vm871_vm14 = vcmp.ge.f32.partialorder %v4487_v42, %v861_v62  ;;  %1111 = vrot.lane.b32.xlu0 %v4502_v63, %s4157_s25  ;;  %vm842_vm15 = vcmp.eq.s32.totalorder %v4289_v43, %v4502_v63  ;;  %vm840_vm1 = vcmp.eq.s32.totalorder %v4284_v39, %v4502_v63 }
 0x1d8   : > { %v873_v0 = vsel %vm869_vm12, %v4284_v39, 16  ;;  %v875_v2 = vsel %vm871_vm14, %v4289_v43, 16  ;;  %v4515_v4 = vsel %vm842_vm15, -inf, %v4451_v20  ;;  %3802 = vmatpush.msk.msra.mxu1 %vm842_vm15, %v5954_v1  ;;  %v4519_v5 = vsel %vm840_vm1, -inf, %v4455_v21 }
 0x1d9   : > { %vm877_vm2 = vcmp.lt.s32.totalorder %v873_v0, %v875_v2  ;;  %v862_v6 = vmax.f32 %v4519_v5, %v4515_v4 }
 0x1da   : > { %v878_v7 = vsel %vm877_vm2, %v873_v0, %v875_v2  ;;  %3803 = vmatpush.msk.msra.mxu1 %vm840_vm1, %v5954_v1 }
 0x1db   : > { %v863_v8 = vrot.slane %v862_v6, 4  ;;  %v879_v9 = vrot.slane %v878_v7, 4  ;;  %3804 = vmatmul.msk.f32.vlgmr.msra.gmra.mxu1 %vm1570_vm13, %v4382_v44  ;;  %3801 = vmatmul.msk.f32.gmra.mxu0 %vm1570_vm13, %v4424_v3 }
 0x1dd   : > { %v864_v10 = vmax.f32 %v862_v6, %v863_v8  ;;  %vm880_vm3 = vcmp.lt.s32.totalorder %v878_v7, %v879_v9 }
 0x1de   : > { %v881_v11 = vsel %vm880_vm3, %v878_v7, %v879_v9 }
 0x1df   : > { %v865_v13 = vrot.slane %v864_v10, 2  ;;  %1107 = vrot.lane.b32.xlu0 %v4440_v17, %s4157_s25  ;;  %v882_v14 = vrot.slane %v881_v11, 2 }
 0x1e1   : > { %v866_v15 = vmax.f32 %v864_v10, %v865_v13  ;;  %vm883_vm4 = vcmp.lt.s32.totalorder %v881_v11, %v882_v14 }
 0x1e2   : > { %v884_v18 = vsel %vm883_vm4, %v881_v11, %v882_v14 }
 0x1e3   : > { %v867_v19 = vrot.slane %v866_v15, 1  ;;  %v885_v20 = vrot.slane %v884_v18, 1  ;;  %3805 = vmatmul.msk.f32.gmra.mxu1 %vm1570_vm13, %v4392_v53 }
 0x1e5   : > { %v868_v21 = vmax.f32 %v866_v15, %v867_v19  ;;  %vm886_vm5 = vcmp.lt.s32.totalorder %v884_v18, %v885_v20 }
 0x1e6   : > { %v4532_v22 = vsel %vm886_vm5, %v884_v18, %v885_v20 }
 0x1e7   : > { %vm870_vm6 = vcmp.ge.f32.partialorder %v4519_v5, %v868_v21  ;;  %vm872_vm7 = vcmp.ge.f32.partialorder %v4515_v4, %v868_v21  ;;  %1113 = vrot.lane.b32.xlu1 %v4532_v22, %s4157_s25  ;;  %vm901_vm8 = vcmp.eq.s32.totalorder %v4289_v43, %v4532_v22  ;;  %vm899_vm9 = vcmp.eq.s32.totalorder %v4284_v39, %v4532_v22 }
 0x1e8   : > { %v874_v23 = vsel %vm870_vm6, %v4284_v39, 16  ;;  %v876_v24 = vsel %vm872_vm7, %v4289_v43, 16  ;;  %v4545_v25 = vsel %vm901_vm8, -inf, %v4487_v42  ;;  %3807 = vmatpush.msk.msrb.mxu2 %vm901_vm8, %v5954_v1  ;;  %v4549_v26 = vsel %vm899_vm9, -inf, %v4491_v45 }
 0x1e9   : > { %vm888_vm10 = vcmp.lt.s32.totalorder %v874_v23, %v876_v24  ;;  %v915_v27 = vmax.f32 %v4549_v26, %v4545_v25 }
 0x1ea   : > { %v889_v28 = vsel %vm888_vm10, %v874_v23, %v876_v24  ;;  %3808 = vmatpush.msk.msrb.mxu2 %vm899_vm9, %v5954_v1 }
 0x1eb   : > { %v890_v29 = vrot.slane %v889_v28, 4  ;;  %v916_v30 = vrot.slane %v915_v27, 4  ;;  %3809 = vmatmul.msk.f32.vlgmr.msrb.gmra.mxu2 %vm1570_vm13, %v4382_v44  ;;  %3806 = vmatmul.msk.f32.gmra.mxu1 %vm1570_vm13, %v4424_v3 }
 0x1ed   : > { %vm891_vm11 = vcmp.lt.s32.totalorder %v889_v28, %v890_v29  ;;  %v917_v31 = vmax.f32 %v915_v27, %v916_v30 }
 0x1ee   : > { %v892_v32 = vsel %vm891_vm11, %v889_v28, %v890_v29 }
 0x1ef   : > { %v893_v35 = vrot.slane %v892_v32, 2  ;;  %v918_v37 = vrot.slane %v917_v31, 2 }
 0x1f1   : > { %v919_v40 = vmax.f32 %v917_v31, %v918_v37  ;;  %vm894_vm12 = vcmp.lt.s32.totalorder %v892_v32, %v893_v35 }
 0x1f2   : > { %v895_v41 = vsel %vm894_vm12, %v892_v32, %v893_v35 }
 0x1f3   : > { %v920_v42 = vrot.slane %v919_v40, 1  ;;  %v896_v45 = vrot.slane %v895_v41, 1  ;;  %3810 = vmatmul.msk.f32.gmra.mxu2 %vm1570_vm13, %v4392_v53 }
 0x1f5   : > { %v921_v46 = vmax.f32 %v919_v40, %v920_v42  ;;  %vm897_vm14 = vcmp.lt.s32.totalorder %v895_v41, %v896_v45 }
 0x1f6   : > { %v4560_v47 = vsel %vm897_vm14, %v895_v41, %v896_v45 }
 0x1f7   : > { %vm929_vm15 = vcmp.ge.f32.partialorder %v4549_v26, %v921_v46  ;;  %vm931_vm1 = vcmp.ge.f32.partialorder %v4545_v25, %v921_v46  ;;  %vm902_vm2 = vcmp.eq.s32.totalorder %v4289_v43, %v4560_v47  ;;  %vm900_vm3 = vcmp.eq.s32.totalorder %v4284_v39, %v4560_v47 }
 0x1f8   : > { %v933_v48 = vsel %vm929_vm15, %v4284_v39, 16  ;;  %v935_v49 = vsel %vm931_vm1, %v4289_v43, 16  ;;  %v4571_v50 = vsel %vm902_vm2, -inf, %v4515_v4  ;;  %3812 = vmatpush.msk.msrb.mxu3 %vm902_vm2, %v5954_v1  ;;  %v4575_v51 = vsel %vm900_vm3, -inf, %v4519_v5 }
 0x1f9   : > { %vm937_vm4 = vcmp.lt.s32.totalorder %v933_v48, %v935_v49  ;;  %v922_v52 = vmax.f32 %v4575_v51, %v4571_v50 }
 0x1fa   : > { %v938_v54 = vsel %vm937_vm4, %v933_v48, %v935_v49  ;;  %3813 = vmatpush.msk.msrb.mxu3 %vm900_vm3, %v5954_v1 }
 0x1fb   : > { %v923_v56 = vrot.slane %v922_v52, 4  ;;  %3814 = vmatmul.msk.f32.vlgmr.msrb.gmra.mxu3 %vm1570_vm13, %v4382_v44  ;;  %v939_v57 = vrot.slane %v938_v54, 4  ;;  %3811 = vmatmul.msk.f32.gmra.mxu2 %vm1570_vm13, %v4424_v3 }
 0x1fd   : > { %v924_v59 = vmax.f32 %v922_v52, %v923_v56  ;;  %vm940_vm5 = vcmp.lt.s32.totalorder %v938_v54, %v939_v57 }
 0x1fe   : > { %v941_v60 = vsel %vm940_vm5, %v938_v54, %v939_v57 }
 0x1ff   : > { %v925_v62 = vrot.slane %v924_v59, 2  ;;  %v942_v0 = vrot.slane %v941_v60, 2 }
 0x200   : > { %v4635_v41 = vpop.f32.mrf.mxu0  ;;  %v4638_v45 = vpop.f32.mrf.mxu1 }
 0x201   : > { %v926_v2 = vmax.f32 %v924_v59, %v925_v62  ;;  %vm943_vm6 = vcmp.lt.s32.totalorder %v941_v60, %v942_v0 }
 0x202   : > { %v944_v4 = vsel %vm943_vm6, %v941_v60, %v942_v0 }
 0x203   : > { %v927_v5 = vrot.slane %v926_v2, 1  ;;  %v945_v6 = vrot.slane %v944_v4, 1  ;;  %3815 = vmatmul.msk.f32.gmra.mxu3 %vm1570_vm13, %v4392_v53 }
 0x205   : > { %v928_v7 = vmax.f32 %v926_v2, %v927_v5  ;;  %vm946_vm7 = vcmp.lt.s32.totalorder %v944_v4, %v945_v6 }
 0x206   : > { %v4586_v8 = vsel %vm946_vm7, %v944_v4, %v945_v6 }
 0x207   : > { %vm930_vm8 = vcmp.ge.f32.partialorder %v4575_v51, %v928_v7  ;;  %vm932_vm9 = vcmp.ge.f32.partialorder %v4571_v50, %v928_v7  ;;  %1117 = vrot.lane.b32.xlu0 %v4586_v8, %s4157_s25  ;;  %vm961_vm10 = vcmp.eq.s32.totalorder %v4289_v43, %v4586_v8  ;;  %vm959_vm11 = vcmp.eq.s32.totalorder %v4284_v39, %v4586_v8 }
 0x208   : > { %v934_v9 = vsel %vm930_vm8, %v4284_v39, 16  ;;  %v936_v10 = vsel %vm932_vm9, %v4289_v43, 16  ;;  %v4599_v11 = vsel %vm961_vm10, -inf, %v4545_v25  ;;  %3817 = vmatpush.msk.msrb.mxu0 %vm961_vm10, %v5954_v1  ;;  %v4603_v13 = vsel %vm959_vm11, -inf, %v4549_v26  ;;  %v4646_v56 = vpop.f32.mrf.mxu0  ;;  %v4648_v59 = vpop.f32.mrf.mxu1 }
 0x209   : > { %vm948_vm12 = vcmp.lt.s32.totalorder %v934_v9, %v936_v10  ;;  %v975_v14 = vmax.f32 %v4603_v13, %v4599_v11 }
 0x20a   : > { %v949_v15 = vsel %vm948_vm12, %v934_v9, %v936_v10  ;;  %3818 = vmatpush.msk.msrb.mxu0 %vm959_vm11, %v5954_v1 }
 0x20b   : > { %v976_v18 = vrot.slane %v975_v14, 4  ;;  %3819 = vmatmul.msk.f32.vlgmr.msrb.gmra.mxu0 %vm1570_vm13, %v4382_v44  ;;  %3816 = vmatmul.msk.f32.gmra.mxu3 %vm1570_vm13, %v4424_v3  ;;  %v950_v19 = vrot.slane %v949_v15, 4 }
 0x20d   : > { %v977_v20 = vmax.f32 %v975_v14, %v976_v18  ;;  %vm951_vm14 = vcmp.lt.s32.totalorder %v949_v15, %v950_v19 }
 0x20e   : > { %v952_v21 = vsel %vm951_vm14, %v949_v15, %v950_v19 }
 0x20f   : > { %v978_v23 = vrot.slane %v977_v20, 2  ;;  %v953_v24 = vrot.slane %v952_v21, 2 }
 0x210   : > { %v1603_v9 = vpop.f32.mrf.mxu0  ;;  %v1628_v15 = vpop.f32.mrf.mxu1 }
 0x211   : > { %v979_v25 = vmax.f32 %v977_v20, %v978_v23  ;;  %vm954_vm15 = vcmp.lt.s32.totalorder %v952_v21, %v953_v24 }
 0x212   : > { %v955_v26 = vsel %vm954_vm15, %v952_v21, %v953_v24 }
 0x213   : > { %v980_v27 = vrot.slane %v979_v25, 1  ;;  %3820 = vmatmul.msk.f32.gmra.mxu0 %vm1570_vm13, %v4392_v53  ;;  %v956_v28 = vrot.slane %v955_v26, 1 }
 0x215   : > { %v981_v29 = vmax.f32 %v979_v25, %v980_v27  ;;  %vm957_vm1 = vcmp.lt.s32.totalorder %v955_v26, %v956_v28  ;;  %v4680_v27 = vpop.permute.xlu1 %1095 }
 0x216   : > { %v4614_v30 = vsel %vm957_vm1, %v955_v26, %v956_v28 }
 0x217   : > { %vm989_vm2 = vcmp.ge.f32.partialorder %v4603_v13, %v981_v29  ;;  %vm991_vm3 = vcmp.ge.f32.partialorder %v4599_v11, %v981_v29  ;;  %1119 = vrot.lane.b32.xlu2 %v4614_v30, %s4157_s25  ;;  %vm962_vm4 = vcmp.eq.s32.totalorder %v4289_v43, %v4614_v30  ;;  %vm960_vm5 = vcmp.eq.s32.totalorder %v4284_v39, %v4614_v30 }
 0x218   : > { %v993_v31 = vsel %vm989_vm2, %v4284_v39, 16  ;;  %v995_v32 = vsel %vm991_vm3, %v4289_v43, 16  ;;  %v4627_v35 = vsel %vm962_vm4, -inf, %v4571_v50  ;;  %3822 = vmatpush.msk.msrb.mxu1 %vm962_vm4, %v5954_v1  ;;  %v4631_v37 = vsel %vm960_vm5, -inf, %v4575_v51 }
 0x219   : > { %vm997_vm6 = vcmp.lt.s32.totalorder %v993_v31, %v995_v32  ;;  %v982_v40 = vmax.f32 %v4631_v37, %v4627_v35 }
 0x21a   : > { %v998_v42 = vsel %vm997_vm6, %v993_v31, %v995_v32  ;;  %3823 = vmatpush.msk.msrb.mxu1 %vm960_vm5, %v5954_v1 }
 0x21b   : > { %v983_v46 = vrot.slane %v982_v40, 4  ;;  %3821 = vmatmul.msk.f32.gmra.mxu0 %vm1570_vm13, %v4424_v3  ;;  %3824 = vmatmul.msk.f32.vlgmr.msrb.gmra.mxu1 %vm1570_vm13, %v4382_v44  ;;  %v999_v48 = vrot.slane %v998_v42, 4 }
 0x21d   : > { %v984_v49 = vmax.f32 %v982_v40, %v983_v46  ;;  %vm1000_vm7 = vcmp.lt.s32.totalorder %v998_v42, %v999_v48 }
 0x21e   : > { %v1001_v50 = vsel %vm1000_vm7, %v998_v42, %v999_v48  ;;  %v4695_v48 = vpop.permute.xlu2 %1103 }
 0x21f   : > { %v985_v51 = vrot.slane %v984_v49, 2  ;;  %1093 = vrot.lane.b32.xlu2 %v4294_v61, %s4157_s25  ;;  %v1002_v52 = vrot.slane %v1001_v50, 2 }
 0x221   : > { %v986_v54 = vmax.f32 %v984_v49, %v985_v51  ;;  %vm1003_vm8 = vcmp.lt.s32.totalorder %v1001_v50, %v1002_v52 }
 0x222   : > { %v1004_v57 = vsel %vm1003_vm8, %v1001_v50, %v1002_v52  ;;  %v4705_v52 = vpop.permute.xlu1 %1097 }
 0x223   : > { %v987_v60 = vrot.slane %v986_v54, 1  ;;  %3825 = vmatmul.msk.f32.gmra.mxu1 %vm1570_vm13, %v4392_v53  ;;  %v1005_v62 = vrot.slane %v1004_v57, 1 }
 0x225   : > { %v988_v0 = vmax.f32 %v986_v54, %v987_v60  ;;  %vm1006_vm9 = vcmp.lt.s32.totalorder %v1004_v57, %v1005_v62 }
 0x226   : > { %v4652_v2 = vsel %vm1006_vm9, %v1004_v57, %v1005_v62  ;;  %vm1129_vm9 = vcmask 7168  }
 0x227   : > { %vm990_vm10 = vcmp.ge.f32.partialorder %v4631_v37, %v988_v0  ;;  %vm992_vm11 = vcmp.ge.f32.partialorder %v4627_v35, %v988_v0  ;;  %1121 = vrot.lane.b32.xlu1 %v4652_v2, %s4157_s25  ;;  %1101 = vrot.lane.b32.xlu2 %v4342_v12, %s4157_s25  ;;  %vm1021_vm12 = vcmp.eq.s32.totalorder %v4289_v43, %v4652_v2 }
 0x228   : > { %v994_v4 = vsel %vm990_vm10, %v4284_v39, 16  ;;  %v996_v5 = vsel %vm992_vm11, %v4289_v43, 16  ;;  %3827 = vmatpush.msk.msra.mxu2 %vm1021_vm12, %v5954_v1  ;;  %vm1019_vm14 = vcmp.eq.s32.totalorder %v4284_v39, %v4652_v2  ;;  %v1033_v6 = vsel %vm1021_vm12, -inf, %v4599_v11 }
 0x229   : > { %vm1008_vm15 = vcmp.lt.s32.totalorder %v994_v4, %v996_v5  ;;  %v1031_v7 = vsel %vm1019_vm14, -inf, %v4603_v13  ;;  %v1131_v62 = vsel %vm1129_vm9, %v4680_v27, %v4705_v52 }
 0x22a   : > { %v1009_v10 = vsel %vm1008_vm15, %v994_v4, %v996_v5  ;;  %v1035_v14 = vmax.f32 %v1031_v7, %v1033_v6  ;;  %3828 = vmatpush.msk.msra.mxu2 %vm1019_vm14, %v5954_v1 }
 0x22b   : > { %v1010_v18 = vrot.slane %v1009_v10, 4  ;;  %3826 = vmatmul.msk.f32.gmra.mxu1 %vm1570_vm13, %v4424_v3  ;;  %3829 = vmatmul.msk.f32.vlgmr.msra.gmra.mxu2 %vm1570_vm13, %v4382_v44 }
 0x22c   : > { %v1036_v19 = vrot.slane %v1035_v14, 4 }
 0x22d   : > { %vm1011_vm1 = vcmp.lt.s32.totalorder %v1009_v10, %v1010_v18 }
 0x22e   : > { %v1012_v20 = vsel %vm1011_vm1, %v1009_v10, %v1010_v18  ;;  %v1037_v11 = vmax.f32 %v1035_v14, %v1036_v19 }
 0x22f   : > { %v1013_v21 = vrot.slane %v1012_v20, 2  ;;  %1099 = vrot.lane.b32.xlu1 %v4330_v55, %s4157_s25  ;;  %1115 = vrot.lane.b32.xlu2 %v4560_v47, %s4157_s25 }
 0x230   : > { %v1038_v13 = vrot.slane %v1037_v11, 2 }
 0x231   : > { %vm1014_vm2 = vcmp.lt.s32.totalorder %v1012_v20, %v1013_v21 }
 0x232   : > { %v1039_v23 = vmax.f32 %v1037_v11, %v1038_v13  ;;  %v1015_v24 = vsel %vm1014_vm2, %v1012_v20, %v1013_v21 }
 0x233   : > { %3830 = vmatmul.msk.f32.gmra.mxu2 %vm1570_vm13, %v4392_v53  ;;  %v1016_v25 = vrot.slane %v1015_v24, 1 }
 0x234   : > { %v1040_v26 = vrot.slane %v1039_v23, 1 }
 0x235   : > { %vm1017_vm3 = vcmp.lt.s32.totalorder %v1015_v24, %v1016_v25 }
 0x236   : > { %v1041_v28 = vmax.f32 %v1039_v23, %v1040_v26  ;;  %v4682_v29 = vsel %vm1017_vm3, %v1015_v24, %v1016_v25 }
 0x237   : > { %1109 = vrot.lane.b32.xlu1 %v4476_v38, %s4157_s25  ;;  %vm1022_vm4 = vcmp.eq.s32.totalorder %v4289_v43, %v4682_v29  ;;  %vm1020_vm5 = vcmp.eq.s32.totalorder %v4284_v39, %v4682_v29 }
 0x238   : > { %vm1049_vm6 = vcmp.ge.f32.partialorder %v1031_v7, %v1041_v28  ;;  %vm1051_vm7 = vcmp.ge.f32.partialorder %v1033_v6, %v1041_v28  ;;  %3832 = vmatpush.msk.msra.mxu3 %vm1022_vm4, %v5954_v1  ;;  %v1032_v31 = vsel %vm1020_vm5, -inf, %v4631_v37  ;;  %v1034_v32 = vsel %vm1022_vm4, -inf, %v4627_v35 }
 0x239   : > { %v1053_v40 = vsel %vm1049_vm6, %v4284_v39, 16  ;;  %v1055_v42 = vsel %vm1051_vm7, %v4289_v43, 16  ;;  %v1042_v46 = vmax.f32 %v1032_v31, %v1034_v32  ;;  %v4703_v35 = vand.u32 127, %v549_v36  ;;  %v4713_v36 = vpop.permute.xlu2 %1105 }
 0x23a   : > { %vm1057_vm8 = vcmp.lt.s32.totalorder %v1053_v40, %v1055_v42  ;;  %3833 = vmatpush.msk.msra.mxu3 %vm1020_vm5, %v5954_v1  ;;  %v1135_v9 = vsel %vm1129_vm9, %v4695_v48, %v4713_v36 }
 0x23b   : > { %v1058_v49 = vsel %vm1057_vm8, %v1053_v40, %v1055_v42  ;;  %v1043_v50 = vrot.slane %v1042_v46, 4  ;;  %3831 = vmatmul.msk.f32.gmra.mxu2 %vm1570_vm13, %v4424_v3  ;;  %3834 = vmatmul.msk.f32.vlgmr.msra.gmra.mxu3 %vm1570_vm13, %v4382_v44  ;;  %vm1091_vm11 = vcmp.eq.s32.totalorder %v4703_v35, 0 }
 0x23c   : > { %v1059_v37 = vrot.slane %v1058_v49, 4  ;;  %v1150_v6 = vsel %vm1091_vm11, 16, %v1131_v62  ;;  %v1154_v18 = vsel %vm1091_vm11, 16, %v1135_v9 }
 0x23d   : > { %v1044_v51 = vmax.f32 %v1042_v46, %v1043_v50  ;;  %v1243_v14 = vperm.slane %v1150_v6, 0 }
 0x23e   : > { %vm1060_vm10 = vcmp.lt.s32.totalorder %v1058_v49, %v1059_v37 }
 0x23f   : > { %v1045_v54 = vrot.slane %v1044_v51, 2  ;;  %1123 = vrot.lane.b32.xlu1 %v4682_v29, %s4157_s25  ;;  %v1061_v57 = vsel %vm1060_vm10, %v1058_v49, %v1059_v37  ;;  %vm1279_vm5 = vcmp.eq.s32.totalorder %v4289_v43, %v1243_v14  ;;  %vm1261_vm7 = vcmp.eq.s32.totalorder %v4284_v39, %v1243_v14 }
 0x240   : > { %v1062_v60 = vrot.slane %v1061_v57, 2 }
 0x241   : > { %v1046_v0 = vmax.f32 %v1044_v51, %v1045_v54 }
 0x242   : > { %vm1063_vm12 = vcmp.lt.s32.totalorder %v1061_v57, %v1062_v60 }
 0x243   : > { %v1047_v4 = vrot.slane %v1046_v0, 1  ;;  %3835 = vmatmul.msk.f32.gmra.mxu3 %vm1570_vm13, %v4392_v53  ;;  %v1064_v5 = vsel %vm1063_vm12, %v1061_v57, %v1062_v60 }
 0x244   : > { %v1065_v7 = vrot.slane %v1064_v5, 1 }
 0x245   : > { %v1048_v10 = vmax.f32 %v1046_v0, %v1047_v4 }
 0x246   : > { %vm1066_vm14 = vcmp.lt.s32.totalorder %v1064_v5, %v1065_v7 }
 0x247   : > { %vm1050_vm15 = vcmp.ge.f32.partialorder %v1032_v31, %v1048_v10  ;;  %vm1052_vm1 = vcmp.ge.f32.partialorder %v1034_v32, %v1048_v10  ;;  %v4722_v15 = vsel %vm1066_vm14, %v1064_v5, %v1065_v7  ;;  %1170 = vrot.lane.b32.xlu1 %v4305_v16, %s4158_s13  ;;  %v1247_v16 = vperm.slane %v1154_v18, 0  ;;  %v4783_v31 = vpop.f32.mrf.mxu2  ;;  %v4115_v18 = vld [vmem:[%s4267_s8] sm:$0xff]  ;;  %s449_s8 = scalar_lea.vmem %s5952_s6, %s4236_s11 }
 0x248   : > { %v1054_v19 = vsel %vm1050_vm15, %v4284_v39, 16  ;;  %v1056_v20 = vsel %vm1052_vm1, %v4289_v43, 16  ;;  %1125 = vrot.lane.b32.xlu2 %v4722_v15, %s4157_s25  ;;  %vm1081_vm2 = vcmp.eq.s32.totalorder %v4289_v43, %v4722_v15  ;;  %vm1079_vm4 = vcmp.eq.s32.totalorder %v4284_v39, %v4722_v15 }
 0x249   : > { %vm1068_vm3 = vcmp.lt.s32.totalorder %v1054_v19, %v1056_v20  ;;  %3837 = vmatpush.msk.msra.mxu0 %vm1081_vm2, %v5954_v1  ;;  %vm1283_vm8 = vcmp.eq.s32.totalorder %v4289_v43, %v1247_v16  ;;  %vm1265_vm10 = vcmp.eq.s32.totalorder %v4284_v39, %v1247_v16 }
 0x24a   : > { %v1069_v11 = vsel %vm1068_vm3, %v1054_v19, %v1056_v20 }
 0x24b   : > { %v1070_v21 = vrot.slane %v1069_v11, 4  ;;  %3838 = vmatpush.msk.msra.mxu0 %vm1079_vm4, %v5954_v1  ;;  %3836 = vmatmul.msk.f32.gmra.mxu3 %vm1570_vm13, %v4424_v3 }
 0x24c   : > { %3839 = vmatmul.msk.f32.vlgmr.msra.gmra.mxu0 %vm1570_vm13, %v4382_v44 }
 0x24d   : > { %3857 = vmatpush.msk.msrb.mxu0 %vm1279_vm5, %v5954_v1  ;;  %vm1071_vm6 = vcmp.lt.s32.totalorder %v1069_v11, %v1070_v21 }
 0x24e   : > { %v1072_v13 = vsel %vm1071_vm6, %v1069_v11, %v1070_v21 }
 0x24f   : > { %3858 = vmatpush.msk.msrb.mxu0 %vm1261_vm7, %v5954_v1  ;;  %1168 = vrot.lane.b32.xlu1 %v4294_v61, %s4158_s13  ;;  %v1073_v23 = vrot.slane %v1072_v13, 2 }
 0x250   : > { %1172 = vrot.lane.b32.xlu2 %v4318_v34, %s4158_s13  ;;  %v4767_v34 = vpop.permute.xlu0 %1111 }
 0x251   : > { %3877 = vmatpush.msk.msra.mxu0 %vm1283_vm8, %v5954_v1  ;;  %vm1074_vm12 = vcmp.lt.s32.totalorder %v1072_v13, %v1073_v23 }
 0x252   : > { %v1075_v24 = vsel %vm1074_vm12, %v1072_v13, %v1073_v23 }
 0x253   : > { %3878 = vmatpush.msk.msra.mxu0 %vm1265_vm10, %v5954_v1  ;;  %v1076_v25 = vrot.slane %v1075_v24, 1 }
 0x254   : > { %3840 = vmatmul.msk.f32.gmra.mxu0 %vm1570_vm13, %v4392_v53 }
 0x255   : > { %vm1077_vm14 = vcmp.lt.s32.totalorder %v1075_v24, %v1076_v25 }
 0x256   : > { %v4756_v26 = vsel %vm1077_vm14, %v1075_v24, %v1076_v25 }
 0x257   : > { %1180 = vrot.lane.b32.xlu1 %v4402_v58, %s4158_s13  ;;  %1127 = vrot.lane.b32.xlu0 %v4756_v26, %s4157_s25  ;;  %vm1082_vm15 = vcmp.eq.s32.totalorder %v4289_v43, %v4756_v26  ;;  %vm1080_vm1 = vcmp.eq.s32.totalorder %v4284_v39, %v4756_v26 }
 0x258   : > { %1176 = vrot.lane.b32.xlu2 %v4342_v12, %s4158_s13  ;;  %3842 = vmatpush.msk.msra.mxu1 %vm1082_vm15, %v5954_v1  ;;  %v1108_v5 = vpop.permute.xlu0 %1107 }
 0x259   : > { %v4769_v28 = vpop.permute.xlu1 %1113  ;;  %v1136_v9 = vsel %vm1129_vm9, %v4713_v36, %v1108_v5 }
 0x25a   : > { %v1139_v58 = vsel %vm1129_vm9, %v4767_v34, %v4769_v28  ;;  %3843 = vmatpush.msk.msra.mxu1 %vm1080_vm1, %v5954_v1  ;;  %v1248_v21 = vperm.slane %v1136_v9, 0 }
 0x25b   : > { %3844 = vmatmul.msk.f32.vlgmr.msra.gmra.mxu1 %vm1570_vm13, %v4382_v44  ;;  %v1158_v12 = vsel %vm1091_vm11, 16, %v1139_v58 }
 0x25c   : > { %3841 = vmatmul.msk.f32.gmra.mxu0 %vm1570_vm13, %v4424_v3  ;;  %v1251_v32 = vperm.slane %v1158_v12, 0 }
 0x25e   : > { %vm1287_vm2 = vcmp.eq.s32.totalorder %v4289_v43, %v1251_v32  ;;  %vm1269_vm3 = vcmp.eq.s32.totalorder %v4284_v39, %v1251_v32 }
 0x25f   : > { %1186 = vrot.lane.b32.xlu1 %v4502_v63, %s4158_s13  ;;  %1174 = vrot.lane.b32.xlu0 %v4330_v55, %s4158_s13  ;;  %v4805_v55 = vpop.f32.mrf.mxu2 }
 0x260   : > { %1182 = vrot.lane.b32.xlu2 %v4440_v17, %s4158_s13 }
 0x263   : > { %3845 = vmatmul.msk.f32.gmra.mxu1 %vm1570_vm13, %v4392_v53  ;;  %v4821_v53 = vpop.f32.mrf.mxu0 }
 0x264   : > { %3859 = vmatmul.msk.f32.vlgmr.msrb.gmra.mxu0 %vm1570_vm13, %v4783_v31  ;;  %5956 = vst [vmem:[#allocation2_spill] sm:$0xff] %v4821_v53 }
 0x265   : > { %3897 = vmatpush.msk.msrb.mxu0 %vm1287_vm2, %v5954_v1 }
 0x267   : > { %3898 = vmatpush.msk.msrb.mxu0 %vm1269_vm3, %v5954_v1  ;;  %1192 = vrot.lane.b32.xlu1 %v4586_v8, %s4158_s13 }
 0x268   : > { %1188 = vrot.lane.b32.xlu2 %v4532_v22, %s4158_s13  ;;  %1178 = vrot.lane.b32.xlu0 %v4362_v33, %s4158_s13  ;;  %v4819_v33 = vpop.f32.mrf.mxu2 }
 0x26b   : > { %3846 = vmatmul.msk.f32.gmra.mxu1 %vm1570_vm13, %v4424_v3  ;;  %v4826_v3 = vld [vmem:[%s4248_s17] sm:$0xff] }
 0x26c   : > { %3860 = vmatmul.msk.f32.gmra.mxu0 %vm1570_vm13, %v4805_v55 }
 0x26f   : > { %1198 = vrot.lane.b32.xlu1 %v4682_v29, %s4158_s13  ;;  %v4842_v29 = vpop.f32.mrf.mxu0 }
 0x270   : > { %1194 = vrot.lane.b32.xlu2 %v4614_v30, %s4158_s13  ;;  %1184 = vrot.lane.b32.xlu0 %v4476_v38, %s4158_s13  ;;  %5957 = vst [vmem:[#allocation3_spill] sm:$0xff] %v4842_v29  ;;  %v4891_v49 = vpop.f32.mrf.mxu2 }
 0x271   : > { %v4817_v44 = vpop.permute.xlu2 %1119 }
 0x274   : > { %3861 = vmatmul.msk.f32.gmra.mxu0 %vm1570_vm13, %v4819_v33 }
 0x277   : > { %3081 = vrot.lane.b32.xlu1 %v4826_v3, %s4157_s25  ;;  %v4873_v42 = vpop.f32.mrf.mxu0 }
 0x278   : > { %1200 = vrot.lane.b32.xlu2 %v4722_v15, %s4158_s13  ;;  %1190 = vrot.lane.b32.xlu0 %v4560_v47, %s4158_s13  ;;  %5958 = vst [vmem:[#allocation4_spill] sm:$0xff] %v4873_v42  ;;  %v4912_v60 = vpop.f32.mrf.mxu2 }
 0x279   : > { %v1094_v17 = vpop.permute.xlu2 %1093  ;;  %v1118_v23 = vpop.permute.xlu0 %1117 }
 0x27a   : > { %v1130_v38 = vsel %vm1129_vm9, %v1094_v17, %v4680_v27  ;;  %v1147_v63 = vsel %vm1129_vm9, %v4294_v61, %v1094_v17  ;;  %v4850_v61 = vld [vmem:[%s4248_s17 + $0x8] sm:$0xff]  ;;  %v4861_v27 = vpop.f32.mrf.mxu1  ;;  %v1142_v17 = vsel %vm1129_vm9, %v1118_v23, %v4817_v44  ;;  %s3630_s17 = sshll.u32 %s6172_s24, 3 }
 0x27b   : > { %v1148_v22 = vsel %vm1091_vm11, 16, %v1147_v63  ;;  %v1242_v8 = vperm.slane %v1130_v38, 0  ;;  %s440_s22 = scalar_lea.vmem %s5951_s5, %s3630_s17 }
 0x27c   : > { %v1241_v30 = vperm.slane %v1148_v22, 0  ;;  %3879 = vmatmul.msk.f32.vlgmr.msra.gmra.mxu0 %vm1570_vm13, %v4783_v31 }
 0x27d   : > { %vm1278_vm4 = vcmp.eq.s32.totalorder %v4289_v43, %v1242_v8  ;;  %vm1260_vm6 = vcmp.eq.s32.totalorder %v4284_v39, %v1242_v8 }
 0x27e   : > { %vm1277_vm5 = vcmp.eq.s32.totalorder %v4289_v43, %v1241_v30  ;;  %3852 = vmatpush.msk.msrb.mxu3 %vm1278_vm4, %v5954_v1  ;;  %vm1259_vm7 = vcmp.eq.s32.totalorder %v4284_v39, %v1241_v30  ;;  %vm1284_vm4 = vcmp.eq.s32.totalorder %v4289_v43, %v1248_v21  ;;  %v1254_v30 = vperm.slane %v1142_v17, 0 }
 0x27f   : > { %3847 = vmatpush.msk.msrb.mxu2 %vm1277_vm5, %v5954_v1  ;;  %3091 = vrot.lane.b32.xlu1 %v4850_v61, %s4158_s13  ;;  %v4893_v50 = vpop.f32.mrf.mxu0  ;;  %vm1266_vm5 = vcmp.eq.s32.totalorder %v4284_v39, %v1248_v21 }
 0x280   : > { %1196 = vrot.lane.b32.xlu0 %v4652_v2, %s4158_s13  ;;  %3853 = vmatpush.msk.msrb.mxu3 %vm1260_vm6, %v5954_v1  ;;  %5961 = vst [vmem:[#allocation7_spill] sm:$0xff] %v4893_v50  ;;  %v4940_v36 = vpop.f32.mrf.mxu2 }
 0x281   : > { %3848 = vmatpush.msk.msrb.mxu2 %vm1259_vm7, %v5954_v1  ;;  %v1102_v47 = vpop.permute.xlu2 %1101  ;;  %3854 = vmatmul.msk.f32.vlgmr.msrb.gmra.mxu3 %vm1570_vm13, %v4783_v31 }
 0x282   : > { %v1134_v40 = vsel %vm1129_vm9, %v1102_v47, %v4695_v48  ;;  %3849 = vmatmul.msk.f32.vlgmr.msrb.gmra.mxu2 %vm1570_vm13, %v4783_v31  ;;  %3083 = vrot.lane.b32.xlu2 %v4850_v61, %s4157_s25  ;;  %v4883_v46 = vpop.f32.mrf.mxu1  ;;  %v4887_v48 = vpop.f32.mrf.mxu3 }
 0x283   : > { %v1246_v2 = vperm.slane %v1134_v40, 0  ;;  %5959 = vst [vmem:[#allocation5_spill] sm:$0xff] %v4883_v46 }
 0x284   : > { %3880 = vmatmul.msk.f32.gmra.mxu0 %vm1570_vm13, %v4805_v55  ;;  %5960 = vst [vmem:[#allocation6_spill] sm:$0xff] %v4887_v48 }
 0x285   : > { %vm1282_vm8 = vcmp.eq.s32.totalorder %v4289_v43, %v1246_v2  ;;  %vm1264_vm10 = vcmp.eq.s32.totalorder %v4284_v39, %v1246_v2 }
 0x286   : > { %3872 = vmatpush.msk.msra.mxu3 %vm1282_vm8, %v5954_v1 }
 0x287   : > { %v4914_v62 = vpop.f32.mrf.mxu0 }
 0x288   : > { %1202 = vrot.lane.b32.xlu0 %v4756_v26, %s4158_s13  ;;  %3873 = vmatpush.msk.msra.mxu3 %vm1264_vm10, %v5954_v1  ;;  %5964 = vst [vmem:[#allocation10_spill] sm:$0xff] %v4914_v62 }
 0x289   : > { %3855 = vmatmul.msk.f32.gmra.mxu3 %vm1570_vm13, %v4805_v55  ;;  %v1116_v10 = vpop.permute.xlu2 %1115 }
 0x28a   : > { %3850 = vmatmul.msk.f32.gmra.mxu2 %vm1570_vm13, %v4805_v55  ;;  %v4901_v37 = vpop.f32.mrf.mxu1  ;;  %v4907_v54 = vpop.f32.mrf.mxu3  ;;  %v1141_v24 = vsel %vm1129_vm9, %v1116_v10, %v1118_v23 }
 0x28b   : > { %5962 = vst [vmem:[#allocation8_spill] sm:$0xff] %v4901_v37  ;;  %v1160_v58 = vsel %vm1091_vm11, 16, %v1141_v24 }
 0x28c   : > { %3881 = vmatmul.msk.f32.gmra.mxu0 %vm1570_vm13, %v4819_v33  ;;  %5963 = vst [vmem:[#allocation9_spill] sm:$0xff] %v4907_v54 }
 0x28f   : > { %v4942_v13 = vpop.f32.mrf.mxu0 }
 0x290   : > { %3089 = vrot.lane.b32.xlu0 %v4826_v3, %s4158_s13  ;;  %5967 = vst [vmem:[#allocation13_spill] sm:$0xff] %v4942_v13 }
 0x291   : > { %3856 = vmatmul.msk.f32.gmra.mxu3 %vm1570_vm13, %v4819_v33 }
 0x292   : > { %3851 = vmatmul.msk.f32.gmra.mxu2 %vm1570_vm13, %v4819_v33  ;;  %v4922_v6 = vpop.f32.mrf.mxu1  ;;  %v4936_v11 = vpop.f32.mrf.mxu3 }
 0x293   : > { %5965 = vst [vmem:[#allocation11_spill] sm:$0xff] %v4922_v6 }
 0x294   : > { %3899 = vmatmul.msk.f32.vlgmr.msrb.gmra.mxu0 %vm1570_vm13, %v4783_v31  ;;  %5966 = vst [vmem:[#allocation12_spill] sm:$0xff] %v4936_v11 }
 0x297   : > { %v4979_v22 = vpop.f32.mrf.mxu0 }
 0x299   : > { %v4903_v51 = vpop.permute.xlu1 %1121  ;;  %3874 = vmatmul.msk.f32.vlgmr.msra.gmra.mxu3 %vm1570_vm13, %v4783_v31 }
 0x29a   : > { %v1143_v57 = vsel %vm1129_vm9, %v4817_v44, %v4903_v51  ;;  %v1253_v44 = vperm.slane %v1160_v58, 0  ;;  %v4983_v8 = vpop.f32.mrf.mxu3 }
 0x29b   : > { %v1162_v0 = vsel %vm1091_vm11, 16, %v1143_v57  ;;  %5969 = vst [vmem:[#allocation15_spill] sm:$0xff] %v4983_v8 }
 0x29c   : > { %v1255_v4 = vperm.slane %v1162_v0, 0  ;;  %3900 = vmatmul.msk.f32.gmra.mxu0 %vm1570_vm13, %v4805_v55 }
 0x29e   : > { %vm1291_vm12 = vcmp.eq.s32.totalorder %v4289_v43, %v1255_v4  ;;  %vm1273_vm14 = vcmp.eq.s32.totalorder %v4284_v39, %v1255_v4 }
 0x29f   : > { %3917 = vmatpush.msk.msra.mxu0 %vm1291_vm12, %v5954_v1  ;;  %v5014_v57 = vpop.f32.mrf.mxu0 }
 0x2a1   : > { %v1100_v7 = vpop.permute.xlu1 %1099  ;;  %3918 = vmatpush.msk.msra.mxu0 %vm1273_vm14, %v5954_v1  ;;  %3875 = vmatmul.msk.f32.gmra.mxu3 %vm1570_vm13, %v4805_v55 }
 0x2a2   : > { %v1132_v14 = vsel %vm1129_vm9, %v4705_v52, %v1100_v7  ;;  %v1133_v15 = vsel %vm1129_vm9, %v1100_v7, %v1102_v47  ;;  %v1140_v52 = vsel %vm1129_vm9, %v4769_v28, %v1116_v10  ;;  %v4958_v28 = vpop.f32.mrf.mxu1  ;;  %v4988_v47 = vpop.f32.mrf.mxu2 }
 0x2a3   : > { %2545 = vmatpush.msrb.mxu0 %v4115_v18  ;;  %v1152_v19 = vsel %vm1091_vm11, 16, %v1133_v15  ;;  %v1244_v20 = vperm.slane %v1132_v14, 0  ;;  %v1252_v25 = vperm.slane %v1140_v52, 0  ;;  %5968 = vst [vmem:[#allocation14_spill] sm:$0xff] %v4958_v28  ;;  %v5016_v0 = vpop.f32.mrf.mxu3  ;;  %v1126_v4 = vpop.permute.xlu2 %1125 }
 0x2a4   : > { %v1245_v16 = vperm.slane %v1152_v19, 0  ;;  %3901 = vmatmul.msk.f32.gmra.mxu0 %vm1570_vm13, %v4819_v33  ;;  %5971 = vst [vmem:[#allocation17_spill] sm:$0xff] %v5016_v0 }
 0x2a5   : > { %vm1280_vm15 = vcmp.eq.s32.totalorder %v4289_v43, %v1244_v20  ;;  %vm1262_vm2 = vcmp.eq.s32.totalorder %v4284_v39, %v1244_v20  ;;  %vm1288_vm6 = vcmp.eq.s32.totalorder %v4289_v43, %v1252_v25  ;;  %vm1270_vm10 = vcmp.eq.s32.totalorder %v4284_v39, %v1252_v25  ;;  %v3937_v20 = vld [vmem:[%s4274_s12 + $0x30] sm:$0xff] }
 0x2a6   : > { %vm1281_vm1 = vcmp.eq.s32.totalorder %v4289_v43, %v1245_v16  ;;  %3862 = vmatpush.msk.msrb.mxu1 %vm1280_vm15, %v5954_v1  ;;  %vm1263_vm3 = vcmp.eq.s32.totalorder %v4284_v39, %v1245_v16  ;;  %vm1289_vm15 = vcmp.eq.s32.totalorder %v4289_v43, %v1253_v44 }
 0x2a7   : > { %3867 = vmatpush.msk.msra.mxu2 %vm1281_vm1, %v5954_v1  ;;  %vm1290_vm1 = vcmp.eq.s32.totalorder %v4289_v43, %v1254_v30  ;;  %v5035_v19 = vpop.f32.mrf.mxu0 }
 0x2a8   : > { %3863 = vmatpush.msk.msrb.mxu1 %vm1262_vm2, %v5954_v1  ;;  %vm1271_vm2 = vcmp.eq.s32.totalorder %v4284_v39, %v1253_v44  ;;  %5972 = vst [vmem:[#allocation18_spill] sm:$0xff] %v5035_v19 }
 0x2a9   : > { %v1110_v26 = vpop.permute.xlu1 %1109  ;;  %3868 = vmatpush.msk.msra.mxu2 %vm1263_vm3, %v5954_v1  ;;  %3864 = vmatmul.msk.f32.vlgmr.msrb.gmra.mxu1 %vm1570_vm13, %v4783_v31  ;;  %vm1272_vm3 = vcmp.eq.s32.totalorder %v4284_v39, %v1254_v30 }
 0x2aa   : > { %v1137_v12 = vsel %vm1129_vm9, %v1108_v5, %v1110_v26  ;;  %v1138_v32 = vsel %vm1129_vm9, %v1110_v26, %v4767_v34  ;;  %3876 = vmatmul.msk.f32.gmra.mxu3 %vm1570_vm13, %v4819_v33  ;;  %3882 = vmatpush.msk.msra.mxu1 %vm1284_vm4, %v5954_v1  ;;  %v5007_v40 = vpop.f32.mrf.mxu1  ;;  %v5018_v5 = vpop.f32.mrf.mxu2  ;;  %v3938_v26 = vld [vmem:[%s4274_s12 + $0x38] sm:$0xff] }
 0x2ab   : > { %v1156_v38 = vsel %vm1091_vm11, 16, %v1137_v12  ;;  %v1250_v63 = vperm.slane %v1138_v32, 0  ;;  %3869 = vmatmul.msk.f32.vlgmr.msra.gmra.mxu2 %vm1570_vm13, %v4783_v31  ;;  %5970 = vst [vmem:[#allocation16_spill] sm:$0xff] %v5007_v40  ;;  %v1173_v23 = vpop.permute.xlu2 %1172 }
 0x2ac   : > { %v1249_v34 = vperm.slane %v1156_v38, 0  ;;  %3883 = vmatpush.msk.msra.mxu1 %vm1266_vm5, %v5954_v1  ;;  %3919 = vmatmul.msk.f32.vlgmr.msra.gmra.mxu0 %vm1570_vm13, %v4783_v31  ;;  %v5072_v38 = vadd.s32 128, %v4703_v35 }
 0x2ad   : > { %vm1286_vm7 = vcmp.eq.s32.totalorder %v4289_v43, %v1250_v63  ;;  %vm1268_vm12 = vcmp.eq.s32.totalorder %v4284_v39, %v1250_v63 }
 0x2ae   : > { %3902 = vmatpush.msk.msrb.mxu1 %vm1288_vm6, %v5954_v1  ;;  %vm1285_vm8 = vcmp.eq.s32.totalorder %v4289_v43, %v1249_v34  ;;  %3892 = vmatpush.msk.msrb.mxu3 %vm1286_vm7, %v5954_v1  ;;  %vm1267_vm14 = vcmp.eq.s32.totalorder %v4284_v39, %v1249_v34  ;;  %vm1204_vm7 = vcmask 1039360  }
 0x2af   : > { %3887 = vmatpush.msk.msrb.mxu2 %vm1285_vm8, %v5954_v1 }
 0x2b0   : > { %3903 = vmatpush.msk.msrb.mxu1 %vm1270_vm10, %v5954_v1  ;;  %3893 = vmatpush.msk.msrb.mxu3 %vm1268_vm12, %v5954_v1  ;;  %vm1167_vm12 = vcmp.eq.s32.totalorder %v5072_v38, 255 }
 0x2b1   : > { %3888 = vmatpush.msk.msrb.mxu2 %vm1267_vm14, %v5954_v1  ;;  %3865 = vmatmul.msk.f32.gmra.mxu1 %vm1570_vm13, %v4805_v55  ;;  %v1124_v2 = vpop.permute.xlu1 %1123 }
 0x2b2   : > { %3894 = vmatmul.msk.f32.vlgmr.msrb.gmra.mxu3 %vm1570_vm13, %v4783_v31  ;;  %v1145_v7 = vsel %vm1129_vm9, %v1124_v2, %v1126_v4  ;;  %v1144_v9 = vsel %vm1129_vm9, %v4903_v51, %v1124_v2  ;;  %v5029_v10 = vpop.f32.mrf.mxu1  ;;  %v5040_v51 = vpop.f32.mrf.mxu3 }
 0x2b3   : > { %3907 = vmatpush.msk.msra.mxu2 %vm1289_vm15, %v5954_v1  ;;  %3912 = vmatpush.msk.msra.mxu3 %vm1290_vm1, %v5954_v1  ;;  %v1164_v14 = vsel %vm1091_vm11, 16, %v1145_v7  ;;  %v1256_v15 = vperm.slane %v1144_v9, 0  ;;  %5973 = vst [vmem:[#allocation19_spill] sm:$0xff] %v5040_v51  ;;  %v5046_v16 = vpop.f32.mrf.mxu2  ;;  %v5081_v44 = vpop.permute.xlu2 %1176 }
 0x2b4   : > { %3870 = vmatmul.msk.f32.gmra.mxu2 %vm1570_vm13, %v4805_v55  ;;  %3920 = vmatmul.msk.f32.gmra.mxu0 %vm1570_vm13, %v4805_v55  ;;  %v1257_v18 = vperm.slane %v1164_v14, 0 }
 0x2b5   : > { %3908 = vmatpush.msk.msra.mxu2 %vm1271_vm2, %v5954_v1  ;;  %3913 = vmatpush.msk.msra.mxu3 %vm1272_vm3, %v5954_v1  ;;  %vm1292_vm4 = vcmp.eq.s32.totalorder %v4289_v43, %v1256_v15  ;;  %vm1274_vm5 = vcmp.eq.s32.totalorder %v4284_v39, %v1256_v15 }
 0x2b6   : > { %vm1293_vm11 = vcmp.eq.s32.totalorder %v4289_v43, %v1257_v18  ;;  %vm1275_vm6 = vcmp.eq.s32.totalorder %v4284_v39, %v1257_v18 }
 0x2b9   : > { %3866 = vmatmul.msk.f32.gmra.mxu1 %vm1570_vm13, %v4819_v33  ;;  %v1171_v21 = vpop.permute.xlu1 %1170 }
 0x2ba   : > { %3895 = vmatmul.msk.f32.gmra.mxu3 %vm1570_vm13, %v4805_v55  ;;  %v5056_v52 = vpop.f32.mrf.mxu1  ;;  %v5067_v12 = vpop.f32.mrf.mxu3  ;;  %v1206_v35 = vsel %vm1204_vm7, %v1171_v21, %v1173_v23 }
 0x2bb   : > { %5974 = vst [vmem:[#allocation20_spill] sm:$0xff] %v5056_v52  ;;  %v5069_v17 = vpop.f32.mrf.mxu2  ;;  %v1224_v15 = vsel %vm1167_vm12, 16, %v1206_v35 }
 0x2bc   : > { %3871 = vmatmul.msk.f32.gmra.mxu2 %vm1570_vm13, %v4819_v33  ;;  %3921 = vmatmul.msk.f32.gmra.mxu0 %vm1570_vm13, %v4819_v33 }
 0x2c1   : > { %3884 = vmatmul.msk.f32.vlgmr.msra.gmra.mxu1 %vm1570_vm13, %v4783_v31  ;;  %v5075_v63 = vpop.permute.xlu1 %1168 }
 0x2c2   : > { %3896 = vmatmul.msk.f32.gmra.mxu3 %vm1570_vm13, %v4819_v33  ;;  %3922 = vmatpush.msk.msra.mxu1 %vm1292_vm4, %v5954_v1  ;;  %v5079_v34 = vpop.f32.mrf.mxu1  ;;  %v1205_v7 = vsel %vm1204_vm7, %v5075_v63, %v1171_v21 }
 0x2c3   : > { %5975 = vst [vmem:[#allocation21_spill] sm:$0xff] %v5079_v34  ;;  %v1367_v21 = vperm.slane %v1205_v7, 0 }
 0x2c4   : > { %3889 = vmatmul.msk.f32.vlgmr.msrb.gmra.mxu2 %vm1570_vm13, %v4783_v31  ;;  %3923 = vmatpush.msk.msra.mxu1 %vm1274_vm5, %v5954_v1 }
 0x2c5   : > { %3927 = vmatpush.msk.msrb.mxu2 %vm1293_vm11, %v5954_v1  ;;  %3940 = vmatmul.msk.f32.vlgmr.msrb.gmra.mxu0 %vm466_vm0, %v3937_v20  ;;  %vm1403_vm3 = vcmp.eq.s32.totalorder %v4289_v43, %v1367_v21  ;;  %vm1385_vm11 = vcmp.eq.s32.totalorder %v4284_v39, %v1367_v21 }
 0x2c7   : > { %3928 = vmatpush.msk.msrb.mxu2 %vm1275_vm6, %v5954_v1 }
 0x2c9   : > { %v2011_v24 = vpop.f32.mrf.mxu0  ;;  %3885 = vmatmul.msk.f32.gmra.mxu1 %vm1570_vm13, %v4805_v55  ;;  %v1128_v25 = vpop.permute.xlu0 %1127 }
 0x2ca   : > { %3914 = vmatmul.msk.f32.vlgmr.msra.gmra.mxu3 %vm1570_vm13, %v4783_v31  ;;  %v1146_v58 = vsel %vm1129_vm9, %v1126_v4, %v1128_v25  ;;  %v3939_v4 = vld [vmem:[%s4274_s12 + $0x40] sm:$0xff]  ;;  %v5106_v25 = vpop.f32.mrf.mxu3  ;;  %s457_s12 = scalar_lea.vmem %s5953_s7, %s3624_s21 }
 0x2cb   : > { %v1258_v32 = vperm.slane %v1146_v58, 0  ;;  %v1181_v58 = vpop.permute.xlu1 %1180 }
 0x2cc   : > { %3890 = vmatmul.msk.f32.gmra.mxu2 %vm1570_vm13, %v4805_v55 }
 0x2cd   : > { %3941 = vmatmul.msk.f32.gmra.mxu0 %vm466_vm0, %v3938_v26  ;;  %vm1294_vm8 = vcmp.eq.s32.totalorder %v4289_v43, %v1258_v32  ;;  %vm1276_vm10 = vcmp.eq.s32.totalorder %v4284_v39, %v1258_v32  ;;  %v1368_v26 = vperm.slane %v1224_v15, 0 }
 0x2ce   : > { %3932 = vmatpush.msk.msrb.mxu3 %vm1294_vm8, %v5954_v1 }
 0x2cf   : > { %vm1404_vm4 = vcmp.eq.s32.totalorder %v4289_v43, %v1368_v26  ;;  %vm1386_vm5 = vcmp.eq.s32.totalorder %v4284_v39, %v1368_v26 }
 0x2d0   : > { %3933 = vmatpush.msk.msrb.mxu3 %vm1276_vm10, %v5954_v1 }
 0x2d1   : > { %v5086_v30 = vpop.f32.mrf.mxu0  ;;  %3886 = vmatmul.msk.f32.gmra.mxu1 %vm1570_vm13, %v4819_v33  ;;  %v1175_v2 = vpop.permute.xlu0 %1174 }
 0x2d2   : > { %5976 = vst [vmem:[#allocation22_spill] sm:$0xff] %v5086_v30  ;;  %3915 = vmatmul.msk.f32.gmra.mxu3 %vm1570_vm13, %v4805_v55  ;;  %v1207_v9 = vsel %vm1204_vm7, %v1173_v23, %v1175_v2  ;;  %v1208_v14 = vsel %vm1204_vm7, %v1175_v2, %v5081_v44  ;;  %v5109_v23 = vpop.f32.mrf.mxu2  ;;  %v1183_v2 = vpop.permute.xlu2 %1182 }
 0x2d3   : > { %v1226_v18 = vsel %vm1167_vm12, 16, %v1208_v14  ;;  %v1369_v20 = vperm.slane %v1207_v9, 0  ;;  %v1211_v7 = vsel %vm1204_vm7, %v1181_v58, %v1183_v2  ;;  %v5135_v14 = vpop.f32.mrf.mxu3  ;;  %v1187_v50 = vpop.permute.xlu1 %1186 }
 0x2d4   : > { %3891 = vmatmul.msk.f32.gmra.mxu2 %vm1570_vm13, %v4819_v33  ;;  %v1370_v24 = vperm.slane %v1226_v18, 0  ;;  %v1373_v9 = vperm.slane %v1211_v7, 0 }
 0x2d5   : > { %3942 = vmatmul.msk.f32.gmra.mxu0 %vm466_vm0, %v3939_v4  ;;  %vm1405_vm14 = vcmp.eq.s32.totalorder %v4289_v43, %v1369_v20  ;;  %vm1387_vm1 = vcmp.eq.s32.totalorder %v4284_v39, %v1369_v20 }
 0x2d6   : > { %vm1406_vm15 = vcmp.eq.s32.totalorder %v4289_v43, %v1370_v24  ;;  %3953 = vmatpush.msk.msra.mxu3 %vm1405_vm14, %v5954_v1  ;;  %vm1388_vm2 = vcmp.eq.s32.totalorder %v4284_v39, %v1370_v24  ;;  %vm1409_vm6 = vcmp.eq.s32.totalorder %v4289_v43, %v1373_v9  ;;  %vm1391_vm8 = vcmp.eq.s32.totalorder %v4284_v39, %v1373_v9 }
 0x2d7   : > { %3958 = vmatpush.msk.msra.mxu0 %vm1406_vm15, %v5954_v1 }
 0x2d8   : > { %v2036_v32 = vpop.f32.mrf.mxu1  ;;  %3954 = vmatpush.msk.msra.mxu3 %vm1387_vm1, %v5954_v1 }
 0x2d9   : > { %v5115_v35 = vpop.f32.mrf.mxu0  ;;  %3904 = vmatmul.msk.f32.vlgmr.msrb.gmra.mxu1 %vm1570_vm13, %v4783_v31  ;;  %3959 = vmatpush.msk.msra.mxu0 %vm1388_vm2, %v5954_v1 }
 0x2da   : > { %5977 = vst [vmem:[#allocation23_spill] sm:$0xff] %v5115_v35  ;;  %3916 = vmatmul.msk.f32.gmra.mxu3 %vm1570_vm13, %v4819_v33  ;;  %v1179_v4 = vpop.permute.xlu0 %1178  ;;  %3943 = vmatpush.msk.msrb.mxu1 %vm1403_vm3, %v5954_v1  ;;  %v5137_v15 = vpop.f32.mrf.mxu2 }
 0x2db   : > { %v5158_v32 = vpop.f32.mrf.mxu3  ;;  %v1209_v9 = vsel %vm1204_vm7, %v5081_v44, %v1179_v4  ;;  %v1189_v28 = vpop.permute.xlu2 %1188 }
 0x2dc   : > { %3909 = vmatmul.msk.f32.vlgmr.msra.gmra.mxu2 %vm1570_vm13, %v4783_v31  ;;  %3944 = vmatpush.msk.msrb.mxu1 %vm1385_vm11, %v5954_v1  ;;  %v1214_v11 = vsel %vm1204_vm7, %v1187_v50, %v1189_v28  ;;  %v1193_v29 = vpop.permute.xlu1 %1192 }
 0x2dd   : > { %3948 = vmatpush.msk.msra.mxu2 %vm1404_vm4, %v5954_v1 }
 0x2df   : > { %3949 = vmatpush.msk.msra.mxu2 %vm1386_vm5, %v5954_v1 }
 0x2e1   : > { %v5139_v18 = vpop.f32.mrf.mxu0  ;;  %3905 = vmatmul.msk.f32.gmra.mxu1 %vm1570_vm13, %v4805_v55 }
 0x2e2   : > { %3934 = vmatmul.msk.f32.vlgmr.msrb.gmra.mxu3 %vm1570_vm13, %v4783_v31  ;;  %v5146_v20 = vpop.permute.xlu0 %1184  ;;  %v5161_v7 = vpop.f32.mrf.mxu2 }
 0x2e3   : > { %3973 = vmatpush.msk.msrb.mxu3 %vm1409_vm6, %v5954_v1  ;;  %v1212_v24 = vsel %vm1204_vm7, %v1183_v2, %v5146_v20  ;;  %v1210_v2 = vsel %vm1204_vm7, %v1179_v4, %v1181_v58  ;;  %v5183_v44 = vpop.f32.mrf.mxu3 }
 0x2e4   : > { %3910 = vmatmul.msk.f32.gmra.mxu2 %vm1570_vm13, %v4805_v55  ;;  %v1230_v21 = vsel %vm1167_vm12, 16, %v1212_v24  ;;  %v1228_v58 = vsel %vm1167_vm12, 16, %v1210_v2  ;;  %v1371_v24 = vperm.slane %v1209_v9, 0  ;;  %5978 = vst [vmem:[#allocation24_spill] sm:$0xff] %v5183_v44 }
 0x2e5   : > { %v1374_v26 = vperm.slane %v1230_v21, 0  ;;  %3974 = vmatpush.msk.msrb.mxu3 %vm1391_vm8, %v5954_v1  ;;  %v1372_v21 = vperm.slane %v1228_v58, 0 }
 0x2e6   : > { %vm1407_vm15 = vcmp.eq.s32.totalorder %v4289_v43, %v1371_v24  ;;  %vm1389_vm2 = vcmp.eq.s32.totalorder %v4284_v39, %v1371_v24 }
 0x2e7   : > { %vm1410_vm10 = vcmp.eq.s32.totalorder %v4289_v43, %v1374_v26  ;;  %vm1392_vm14 = vcmp.eq.s32.totalorder %v4284_v39, %v1374_v26  ;;  %vm1408_vm1 = vcmp.eq.s32.totalorder %v4289_v43, %v1372_v21  ;;  %vm1390_vm3 = vcmp.eq.s32.totalorder %v4284_v39, %v1372_v21 }
 0x2e8   : > { %3978 = vmatpush.msk.msrb.mxu0 %vm1410_vm10, %v5954_v1 }
 0x2e9   : > { %v5164_v35 = vpop.f32.mrf.mxu0  ;;  %3906 = vmatmul.msk.f32.gmra.mxu1 %vm1570_vm13, %v4819_v33 }
 0x2ea   : > { %3935 = vmatmul.msk.f32.gmra.mxu3 %vm1570_vm13, %v4805_v55  ;;  %3979 = vmatpush.msk.msrb.mxu0 %vm1392_vm14, %v5954_v1  ;;  %v5188_v4 = vpop.f32.mrf.mxu2  ;;  %v1191_v42 = vpop.permute.xlu0 %1190 }
 0x2eb   : > { %5979 = vst [vmem:[#allocation25_spill] sm:$0xff] %v5188_v4  ;;  %v5204_v9 = vpop.f32.mrf.mxu3  ;;  %v1216_v6 = vsel %vm1204_vm7, %v1191_v42, %v1193_v29  ;;  %v1232_v4 = vsel %vm1167_vm12, 16, %v1214_v11  ;;  %v1195_v11 = vpop.permute.xlu2 %1194 }
 0x2ec   : > { %3911 = vmatmul.msk.f32.gmra.mxu2 %vm1570_vm13, %v4819_v33  ;;  %5980 = vst [vmem:[#allocation26_spill] sm:$0xff] %v5204_v9 }
 0x2f1   : > { %v5179_v26 = vpop.f32.mrf.mxu0  ;;  %3924 = vmatmul.msk.f32.vlgmr.msra.gmra.mxu1 %vm1570_vm13, %v4783_v31 }
 0x2f2   : > { %3936 = vmatmul.msk.f32.gmra.mxu3 %vm1570_vm13, %v4819_v33  ;;  %3963 = vmatpush.msk.msra.mxu1 %vm1407_vm15, %v5954_v1 }
 0x2f4   : > { %3929 = vmatmul.msk.f32.vlgmr.msrb.gmra.mxu2 %vm1570_vm13, %v4783_v31  ;;  %3964 = vmatpush.msk.msra.mxu1 %vm1389_vm2, %v5954_v1  ;;  %v5206_v31 = vpop.f32.mrf.mxu2 }
 0x2f5   : > { %3968 = vmatpush.msk.msrb.mxu2 %vm1408_vm1, %v5954_v1  ;;  %5981 = vst [vmem:[#allocation27_spill] sm:$0xff] %v5206_v31 }
 0x2f7   : > { %3969 = vmatpush.msk.msrb.mxu2 %vm1390_vm3, %v5954_v1 }
 0x2f9   : > { %v5198_v2 = vpop.f32.mrf.mxu0  ;;  %3925 = vmatmul.msk.f32.gmra.mxu1 %vm1570_vm13, %v4805_v55 }
 0x2fc   : > { %3930 = vmatmul.msk.f32.gmra.mxu2 %vm1570_vm13, %v4805_v55 }
 0x301   : > { %v5208_v58 = vpop.f32.mrf.mxu0  ;;  %3926 = vmatmul.msk.f32.gmra.mxu1 %vm1570_vm13, %v4819_v33 }
 0x304   : > { %3931 = vmatmul.msk.f32.gmra.mxu2 %vm1570_vm13, %v4819_v33  ;;  %v5214_v24 = vpop.f32.mrf.mxu3 }
 0x305   : > { %v5216_v21 = vpop.f32.mrf.mxu2 }
 0x309   : > { %v5218_v1 = vpop.f32.mrf.mxu0 }
 0x30c   : > { %v5220_v30 = vpop.f32.mrf.mxu3 }
 0x30d   : > { %v5222_v55 = vpop.f32.mrf.mxu2 }
 0x311   : > { %v5224_v9 = vpop.f32.mrf.mxu0 }
 0x314   : > { %v2101_v44 = vpop.f32.mrf.mxu3 }
 0x315   : > { %v2076_v19 = vpop.f32.mrf.mxu2  ;;  %v5246_v44 = vpop.f32.mrf.mxu1 }
 0x316   : > { %5989 = vst [vmem:[#allocation35_spill] sm:$0xff] %v5246_v44  ;;  %v1234_v44 = vsel %vm1167_vm12, 16, %v1216_v6 }
 0x319   : > { %v5226_v34 = vpop.f32.mrf.mxu0 }
 0x31c   : > { %v5228_v13 = vpop.f32.mrf.mxu3 }
 0x31d   : > { %v5263_v37 = vpop.f32.mrf.mxu1 }
 0x31e   : > { %5993 = vst [vmem:[#allocation39_spill] sm:$0xff] %v5263_v37 }
 0x321   : > { %v5230_v52 = vpop.f32.mrf.mxu0 }
 0x322   : > { %5982 = vst [vmem:[#allocation28_spill] sm:$0xff] %v5230_v52 }
 0x324   : > { %v5232_v33 = vpop.f32.mrf.mxu3 }
 0x325   : > { %5983 = vst [vmem:[#allocation29_spill] sm:$0xff] %v5232_v33 }
 0x329   : > { %v5234_v51 = vpop.f32.mrf.mxu0 }
 0x32d   : > { %v5236_v62 = vpop.f32.mrf.mxu3 }
 0x32e   : > { %5984 = vst [vmem:[#allocation30_spill] sm:$0xff] %v5236_v62  ;;  %v5238_v0 = vpop.f32.mrf.mxu2  ;;  %v1378_v62 = vperm.slane %v1234_v44, 0 }
 0x32f   : > { %5985 = vst [vmem:[#allocation31_spill] sm:$0xff] %v5238_v0 }
 0x330   : > { %vm1414_vm6 = vcmp.eq.s32.totalorder %v4289_v43, %v1378_v62  ;;  %vm1396_vm15 = vcmp.eq.s32.totalorder %v4284_v39, %v1378_v62 }
 0x331   : > { %v5240_v40 = vpop.f32.mrf.mxu0 }
 0x332   : > { %5986 = vst [vmem:[#allocation32_spill] sm:$0xff] %v5240_v40  ;;  %v1213_v40 = vsel %vm1204_vm7, %v5146_v20, %v1187_v50  ;;  %v1199_v20 = vpop.permute.xlu1 %1198 }
 0x333   : > { %v1375_v0 = vperm.slane %v1213_v40, 0 }
 0x335   : > { %v5242_v8 = vpop.f32.mrf.mxu3  ;;  %vm1411_vm11 = vcmp.eq.s32.totalorder %v4289_v43, %v1375_v0  ;;  %vm1393_vm8 = vcmp.eq.s32.totalorder %v4284_v39, %v1375_v0  ;;  %v1197_v0 = vpop.permute.xlu0 %1196 }
 0x336   : > { %5987 = vst [vmem:[#allocation33_spill] sm:$0xff] %v5242_v8 }
 0x337   : > { %v5244_v19 = vpop.f32.mrf.mxu2 }
 0x338   : > { %5988 = vst [vmem:[#allocation34_spill] sm:$0xff] %v5244_v19  ;;  %v1215_v19 = vsel %vm1204_vm7, %v1189_v28, %v1191_v42  ;;  %v5994_v42 = vmov 1.0   ;;  %v5295_v28 = vpop.f32.mrf.mxu1 }
 0x339   : > { %v5248_v31 = vpop.f32.mrf.mxu0  ;;  %v1377_v53 = vperm.slane %v1215_v19, 0  ;;  %5997 = vst [vmem:[#allocation42_spill] sm:$0xff] %v5295_v28 }
 0x33a   : > { %5990 = vst [vmem:[#allocation36_spill] sm:$0xff] %v5248_v31  ;;  %v1376_v31 = vperm.slane %v1232_v4, 0  ;;  %v1201_v4 = vpop.permute.xlu2 %1200 }
 0x33b   : > { %vm1413_vm5 = vcmp.eq.s32.totalorder %v4289_v43, %v1377_v53  ;;  %vm1395_vm14 = vcmp.eq.s32.totalorder %v4284_v39, %v1377_v53  ;;  %v1220_v44 = vsel %vm1204_vm7, %v1199_v20, %v1201_v4 }
 0x33c   : > { %vm1412_vm4 = vcmp.eq.s32.totalorder %v4289_v43, %v1376_v31  ;;  %vm1394_vm10 = vcmp.eq.s32.totalorder %v4284_v39, %v1376_v31  ;;  %v1218_v31 = vsel %vm1204_vm7, %v1195_v11, %v1197_v0 }
 0x33d   : > { %v5256_v8 = vpop.f32.mrf.mxu3 }
 0x33e   : > { %5991 = vst [vmem:[#allocation37_spill] sm:$0xff] %v5256_v8  ;;  %v1219_v8 = vsel %vm1204_vm7, %v1197_v0, %v1199_v20 }
 0x33f   : > { %v5261_v54 = vpop.f32.mrf.mxu2  ;;  %v1381_v52 = vperm.slane %v1219_v8, 0 }
 0x340   : > { %5992 = vst [vmem:[#allocation38_spill] sm:$0xff] %v5261_v54  ;;  %v5319_v37 = vpop.f32.mrf.mxu1  ;;  %v1238_v54 = vsel %vm1167_vm12, 16, %v1220_v44 }
 0x341   : > { %5999 = vst [vmem:[#allocation44_spill] sm:$0xff] %v5319_v37  ;;  %v1382_v46 = vperm.slane %v1238_v54, 0 }
 0x342   : > { %v5265_v48 = vpop.f32.mrf.mxu0 }
 0x343   : > { %3945 = vmatmul.msk.f32.vlgmr.msrb.gmra.mxu1 %vm1570_vm13, %v5265_v48  ;;  %3950 = vmatmul.msk.f32.vlgmr.msra.gmra.mxu2 %vm1570_vm13, %v5265_v48  ;;  %vm1418_vm3 = vcmp.eq.s32.totalorder %v4289_v43, %v1382_v46 }
 0x344   : > { %3955 = vmatmul.msk.f32.vlgmr.msra.gmra.mxu3 %vm1570_vm13, %v5265_v48  ;;  %3960 = vmatmul.msk.f32.vlgmr.msra.gmra.mxu0 %vm1570_vm13, %v5265_v48 }
 0x345   : > { %3983 = vmatpush.msk.msrb.mxu1 %vm1411_vm11, %v5994_v42  ;;  %3988 = vmatpush.msk.msra.mxu2 %vm1412_vm4, %v5994_v42  ;;  %v5281_v50 = vpop.f32.mrf.mxu3  ;;  %vm1417_vm4 = vcmp.eq.s32.totalorder %v4289_v43, %v1381_v52 }
 0x346   : > { %5995 = vst [vmem:[#allocation40_spill] sm:$0xff] %v5281_v50  ;;  %3993 = vmatpush.msk.msra.mxu3 %vm1413_vm5, %v5994_v42  ;;  %3998 = vmatpush.msk.msra.mxu0 %vm1414_vm6, %v5994_v42  ;;  %vm1399_vm6 = vcmp.eq.s32.totalorder %v4284_v39, %v1381_v52 }
 0x347   : > { %v5287_v6 = vpop.f32.mrf.mxu2  ;;  %3984 = vmatpush.msk.msrb.mxu1 %vm1393_vm8, %v5994_v42  ;;  %3989 = vmatpush.msk.msra.mxu2 %vm1394_vm10, %v5994_v42  ;;  %vm1400_vm8 = vcmp.eq.s32.totalorder %v4284_v39, %v1382_v46  ;;  %v1203_v46 = vpop.permute.xlu0 %1202 }
 0x348   : > { %5996 = vst [vmem:[#allocation41_spill] sm:$0xff] %v5287_v6  ;;  %3994 = vmatpush.msk.msra.mxu3 %vm1395_vm14, %v5994_v42  ;;  %3999 = vmatpush.msk.msra.mxu0 %vm1396_vm15, %v5994_v42  ;;  %v1236_v6 = vsel %vm1167_vm12, 16, %v1218_v31  ;;  %v5351_v54 = vpop.f32.mrf.mxu1 }
 0x349   : > { %v1380_v33 = vperm.slane %v1236_v6, 0  ;;  %v1222_v6 = vsel %vm1204_vm7, %v1203_v46, %v5075_v63 }
 0x34a   : > { %v5297_v40 = vpop.f32.mrf.mxu0 }
 0x34b   : > { %3946 = vmatmul.msk.f32.gmra.mxu1 %vm1570_vm13, %v5297_v40  ;;  %3951 = vmatmul.msk.f32.gmra.mxu2 %vm1570_vm13, %v5297_v40  ;;  %vm1416_vm2 = vcmp.eq.s32.totalorder %v4289_v43, %v1380_v33  ;;  %vm1398_vm5 = vcmp.eq.s32.totalorder %v4284_v39, %v1380_v33 }
 0x34c   : > { %3956 = vmatmul.msk.f32.gmra.mxu3 %vm1570_vm13, %v5297_v40  ;;  %3961 = vmatmul.msk.f32.gmra.mxu0 %vm1570_vm13, %v5297_v40 }
 0x34d   : > { %v5307_v53 = vpop.f32.mrf.mxu3 }
 0x34f   : > { %v5309_v62 = vpop.f32.mrf.mxu2 }
 0x350   : > { %5998 = vst [vmem:[#allocation43_spill] sm:$0xff] %v5309_v62  ;;  %v1217_v62 = vsel %vm1204_vm7, %v1193_v29, %v1195_v11  ;;  %v5375_v33 = vpop.f32.mrf.mxu1  ;;  %v1221_v11 = vsel %vm1204_vm7, %v1201_v4, %v1203_v46 }
 0x351   : > { %v1379_v37 = vperm.slane %v1217_v62, 0  ;;  %v1240_v62 = vsel %vm1167_vm12, 16, %v1222_v6  ;;  %v1383_v63 = vperm.slane %v1221_v11, 0  ;;  %v4033_v11 = vld [vmem:[%s5469_s16 + $0x18] sm:$0xff] }
 0x352   : > { %v5312_v19 = vpop.f32.mrf.mxu0  ;;  %v1384_v20 = vperm.slane %v1240_v62, 0 }
 0x353   : > { %3947 = vmatmul.msk.f32.gmra.mxu1 %vm1570_vm13, %v5312_v19  ;;  %3952 = vmatmul.msk.f32.gmra.mxu2 %vm1570_vm13, %v5312_v19  ;;  %vm1415_vm1 = vcmp.eq.s32.totalorder %v4289_v43, %v1379_v37  ;;  %vm1397_vm11 = vcmp.eq.s32.totalorder %v4284_v39, %v1379_v37  ;;  %vm1419_vm10 = vcmp.eq.s32.totalorder %v4289_v43, %v1383_v63 }
 0x354   : > { %3957 = vmatmul.msk.f32.gmra.mxu3 %vm1570_vm13, %v5312_v19  ;;  %3962 = vmatmul.msk.f32.gmra.mxu0 %vm1570_vm13, %v5312_v19  ;;  %vm1420_vm14 = vcmp.eq.s32.totalorder %v4289_v43, %v1384_v20  ;;  %vm1401_vm12 = vcmp.eq.s32.totalorder %v4284_v39, %v1383_v63  ;;  %vm1402_vm15 = vcmp.eq.s32.totalorder %v4284_v39, %v1384_v20  ;;  %v4034_v63 = vld [vmem:[%s5469_s16 + $0x20] sm:$0xff]  ;;  %v4035_v20 = vld [vmem:[%s5469_s16 + $0x28] sm:$0xff] }
 0x355   : > { %v5328_v50 = vpop.f32.mrf.mxu3 }
 0x357   : > { %v5333_v28 = vpop.f32.mrf.mxu2 }
 0x358   : > { %v5392_v31 = vpop.f32.mrf.mxu1 }
 0x35b   : > { %3965 = vmatmul.msk.f32.vlgmr.msra.gmra.mxu1 %vm1570_vm13, %v5265_v48  ;;  %3970 = vmatmul.msk.f32.vlgmr.msrb.gmra.mxu2 %vm1570_vm13, %v5265_v48 }
 0x35c   : > { %3975 = vmatmul.msk.f32.vlgmr.msrb.gmra.mxu3 %vm1570_vm13, %v5265_v48  ;;  %3980 = vmatmul.msk.f32.vlgmr.msrb.gmra.mxu0 %vm1570_vm13, %v5265_v48 }
 0x35d   : > { %4003 = vmatpush.msk.msra.mxu1 %vm1415_vm1, %v5994_v42  ;;  %4008 = vmatpush.msk.msrb.mxu2 %vm1416_vm2, %v5994_v42  ;;  %v5349_v29 = vpop.f32.mrf.mxu3  ;;  %vm4042_vm1 = vmneg %vm1129_vm9 }
 0x35e   : > { %4013 = vmatpush.msk.msrb.mxu3 %vm1417_vm4, %v5994_v42  ;;  %4018 = vmatpush.msk.msrb.mxu0 %vm1418_vm3, %v5994_v42 }
 0x35f   : > { %v5357_v8 = vpop.f32.mrf.mxu2  ;;  %4004 = vmatpush.msk.msra.mxu1 %vm1397_vm11, %v5994_v42  ;;  %4009 = vmatpush.msk.msrb.mxu2 %vm1398_vm5, %v5994_v42 }
 0x360   : > { %4014 = vmatpush.msk.msrb.mxu3 %vm1399_vm6, %v5994_v42  ;;  %4019 = vmatpush.msk.msrb.mxu0 %vm1400_vm8, %v5994_v42  ;;  %v5416_v43 = vpop.f32.mrf.mxu1 }
 0x363   : > { %3966 = vmatmul.msk.f32.gmra.mxu1 %vm1570_vm13, %v5297_v40  ;;  %3971 = vmatmul.msk.f32.gmra.mxu2 %vm1570_vm13, %v5297_v40 }
 0x364   : > { %3976 = vmatmul.msk.f32.gmra.mxu3 %vm1570_vm13, %v5297_v40  ;;  %3981 = vmatmul.msk.f32.gmra.mxu0 %vm1570_vm13, %v5297_v40 }
 0x365   : > { %v2509_v37 = vpop.f32.mrf.mxu3 }
 0x366   : > { %v3090_v37 = vpop.permute.xlu0 %3089 }
 0x367   : > { %v5373_v52 = vpop.f32.mrf.mxu2 }
 0x368   : > { %v5430_v39 = vpop.f32.mrf.mxu1 }
 0x36b   : > { %3967 = vmatmul.msk.f32.gmra.mxu1 %vm1570_vm13, %v5312_v19  ;;  %3972 = vmatmul.msk.f32.gmra.mxu2 %vm1570_vm13, %v5312_v19 }
 0x36c   : > { %3977 = vmatmul.msk.f32.gmra.mxu3 %vm1570_vm13, %v5312_v19  ;;  %3982 = vmatmul.msk.f32.gmra.mxu0 %vm1570_vm13, %v5312_v19 }
 0x36f   : > { %v5390_v0 = vpop.f32.mrf.mxu2 }
 0x370   : > { %v5442_v4 = vpop.f32.mrf.mxu1 }
 0x373   : > { %3985 = vmatmul.msk.f32.vlgmr.msrb.gmra.mxu1 %vm1570_vm13, %v5265_v48  ;;  %3990 = vmatmul.msk.f32.vlgmr.msra.gmra.mxu2 %vm1570_vm13, %v5265_v48 }
 0x374   : > { %3995 = vmatmul.msk.f32.vlgmr.msra.gmra.mxu3 %vm1570_vm13, %v5265_v48  ;;  %4000 = vmatmul.msk.f32.vlgmr.msra.gmra.mxu0 %vm1570_vm13, %v5265_v48 }
 0x375   : > { %4023 = vmatpush.msk.msrb.mxu1 %vm1419_vm10, %v5994_v42  ;;  %4028 = vmatpush.msk.msra.mxu2 %vm1420_vm14, %v5994_v42 }
 0x376   : > { %3128 = vmatpush.msra.mxu3 %v4826_v3  ;;  %3154 = vmatpush.msra.mxu0 %v4850_v61  ;;  %v3084_v3 = vpop.permute.xlu2 %3083  ;;  %v3082_v61 = vpop.permute.xlu1 %3081 }
 0x377   : > { %v2484_v38 = vpop.f32.mrf.mxu2  ;;  %4024 = vmatpush.msk.msrb.mxu1 %vm1401_vm12, %v5994_v42  ;;  %4029 = vmatpush.msk.msra.mxu2 %vm1402_vm15, %v5994_v42  ;;  %v3085_v42 = vsel %vm1129_vm9, %v3082_v61, %v3084_v3 }
 0x378   : > { %v5454_v6 = vpop.f32.mrf.mxu1 }
 0x37b   : > { %3986 = vmatmul.msk.f32.gmra.mxu1 %vm1570_vm13, %v5297_v40  ;;  %3991 = vmatmul.msk.f32.gmra.mxu2 %vm1570_vm13, %v5297_v40 }
 0x37c   : > { %3996 = vmatmul.msk.f32.gmra.mxu3 %vm1570_vm13, %v5297_v40  ;;  %4001 = vmatmul.msk.f32.gmra.mxu0 %vm1570_vm13, %v5297_v40 }
 0x37e   : > { %v3092_v44 = vpop.permute.xlu1 %3091 }
 0x37f   : > { %v3093_v46 = vsel %vm1204_vm7, %v3090_v37, %v3092_v44  ;;  %v5494_v38 = vpop.f32.mrf.mxu2 }
 0x380   : > { %v5476_v62 = vpop.f32.mrf.mxu1  ;;  %6001 = vst [vmem:[#allocation46_spill] sm:$0xff] %v5494_v38  ;;  %v4052_v38 = vld [vmem:[%s5469_s16 + $0x40] sm:$0xff] }
 0x383   : > { %3987 = vmatmul.msk.f32.gmra.mxu1 %vm1570_vm13, %v5312_v19  ;;  %3992 = vmatmul.msk.f32.gmra.mxu2 %vm1570_vm13, %v5312_v19 }
 0x384   : > { %3997 = vmatmul.msk.f32.gmra.mxu3 %vm1570_vm13, %v5312_v19  ;;  %4002 = vmatmul.msk.f32.gmra.mxu0 %vm1570_vm13, %v5312_v19 }
 0x38b   : > { %4005 = vmatmul.msk.f32.vlgmr.msra.gmra.mxu1 %vm1570_vm13, %v5265_v48  ;;  %4010 = vmatmul.msk.f32.vlgmr.msrb.gmra.mxu2 %vm1570_vm13, %v5265_v48 }
 0x38c   : > { %4015 = vmatmul.msk.f32.vlgmr.msrb.gmra.mxu3 %vm1570_vm13, %v5265_v48  ;;  %4020 = vmatmul.msk.f32.vlgmr.msrb.gmra.mxu0 %vm1570_vm13, %v5265_v48 }
 0x38d   : > { %4043 = vmatpush.msk.msra.mxu1 %vm4042_vm1, %v3082_v61  ;;  %3215 = vmatpush.msrb.mxu2 %v3085_v42  ;;  %v3097_v61 = vld [vmem:[%s5469_s16] sm:$0xff]  ;;  %v4050_v42 = vld [vmem:[%s5469_s16 + $0x30] sm:$0xff] }
 0x38e   : > { %4056 = vmatpush.msk.msrb.mxu0 %vm1204_vm7, %v3092_v44  ;;  %3254 = vmatpush.msrb.mxu3 %v3093_v46  ;;  %v3098_v46 = vld [vmem:[%s5469_s16 + $0x8] sm:$0xff] }
 0x393   : > { %4006 = vmatmul.msk.f32.gmra.mxu1 %vm1570_vm13, %v5297_v40  ;;  %4011 = vmatmul.msk.f32.gmra.mxu2 %vm1570_vm13, %v5297_v40 }
 0x394   : > { %4016 = vmatmul.msk.f32.gmra.mxu3 %vm1570_vm13, %v5297_v40  ;;  %4021 = vmatmul.msk.f32.gmra.mxu0 %vm1570_vm13, %v5297_v40 }
 0x39b   : > { %4007 = vmatmul.msk.f32.gmra.mxu1 %vm1570_vm13, %v5312_v19  ;;  %4012 = vmatmul.msk.f32.gmra.mxu2 %vm1570_vm13, %v5312_v19 }
 0x39c   : > { %4017 = vmatmul.msk.f32.gmra.mxu3 %vm1570_vm13, %v5312_v19  ;;  %4022 = vmatmul.msk.f32.gmra.mxu0 %vm1570_vm13, %v5312_v19 }
 0x3a3   : > { %4025 = vmatmul.msk.f32.vlgmr.msrb.gmra.mxu1 %vm1570_vm13, %v5265_v48  ;;  %4030 = vmatmul.msk.f32.vlgmr.msra.gmra.mxu2 %vm1570_vm13, %v5265_v48  ;;  %v5487_v48 = vpop.f32.mrf.mxu1 }
 0x3a4   : > { %4036 = vmatmul.msk.f32.vlgmr.msra.gmra.mxu3 %vm466_vm0, %v4033_v11  ;;  %4039 = vmatmul.msk.f32.vlgmr.msra.gmra.mxu0 %vm466_vm0, %v4033_v11  ;;  %6000 = vst [vmem:[#allocation45_spill] sm:$0xff] %v5487_v48 }
 0x3ab   : > { %4026 = vmatmul.msk.f32.gmra.mxu1 %vm1570_vm13, %v5297_v40  ;;  %4031 = vmatmul.msk.f32.gmra.mxu2 %vm1570_vm13, %v5297_v40  ;;  %v5498_v40 = vpop.f32.mrf.mxu3  ;;  %v5500_v3 = vpop.f32.mrf.mxu1 }
 0x3ac   : > { %4037 = vmatmul.msk.f32.gmra.mxu3 %vm466_vm0, %v4034_v63  ;;  %4040 = vmatmul.msk.f32.gmra.mxu0 %vm466_vm0, %v4034_v63  ;;  %6002 = vst [vmem:[#allocation47_spill] sm:$0xff] %v5500_v3  ;;  %v4051_v63 = vld [vmem:[%s5469_s16 + $0x38] sm:$0xff] }
 0x3b3   : > { %4027 = vmatmul.msk.f32.gmra.mxu1 %vm1570_vm13, %v5312_v19  ;;  %4032 = vmatmul.msk.f32.gmra.mxu2 %vm1570_vm13, %v5312_v19  ;;  %v5509_v19 = vpop.f32.mrf.mxu2  ;;  %v5511_v44 = vpop.f32.mrf.mxu3 }
 0x3b4   : > { %4038 = vmatmul.msk.f32.gmra.mxu3 %vm466_vm0, %v4035_v20  ;;  %4041 = vmatmul.msk.f32.gmra.mxu0 %vm466_vm0, %v4035_v20  ;;  %6003 = vst [vmem:[#allocation48_spill] sm:$0xff] %v5509_v19  ;;  %v463_v20 = vld [vmem:[%s440_s22] sm:$0xff]  ;;  %v3099_v19 = vld [vmem:[%s5469_s16 + $0x10] sm:$0xff] }
 0x3b5   : > { %6004 = vst [vmem:[#allocation49_spill] sm:$0xff] %v5511_v44 }
 0x3bb   : > { %4047 = vmatmul.msk.f32.vlgmr.msrb.gmra.mxu2 %vm466_vm0, %v3097_v61  ;;  %4044 = vmatmul.msk.f32.vlgmr.msra.gmra.mxu1 %vm466_vm0, %v3097_v61  ;;  %v4159_v61 = vmov 0  }
 0x3bc   : > { %4053 = vmatmul.msk.f32.vlgmr.msrb.gmra.mxu3 %vm466_vm0, %v4050_v42  ;;  %4057 = vmatmul.msk.f32.vlgmr.msrb.gmra.mxu0 %vm466_vm0, %v4050_v42 }
 0x3bd   : > { %4107 = vset.pattern.permute.xlu2 %v4159_v61  ;;  %4108 = vset.pattern.permute.xlu0 %v4159_v61 }
 0x3be   : > { %3299 = vperm.xlu2 %4107, %v463_v20  }
 0x3c0   : > { %v5513_v37 = vpop.f32.mrf.mxu1 }
 0x3c1   : > { %6005 = vst [vmem:[#allocation50_spill] sm:$0xff] %v5513_v37  ;;  %v5519_v11 = vpop.f32.mrf.mxu0 }
 0x3c2   : > { %6006 = vst [vmem:[#allocation51_spill] sm:$0xff] %v5519_v11 }
 0x3c3   : > { %4048 = vmatmul.msk.f32.gmra.mxu2 %vm466_vm0, %v3098_v46  ;;  %4045 = vmatmul.msk.f32.gmra.mxu1 %vm466_vm0, %v3098_v46 }
 0x3c4   : > { %4054 = vmatmul.msk.f32.gmra.mxu3 %vm466_vm0, %v4051_v63  ;;  %4058 = vmatmul.msk.f32.gmra.mxu0 %vm466_vm0, %v4051_v63 }
 0x3c6   : > { %v5526_v42 = vpop.f32.mrf.mxu2 }
 0x3c7   : > { %6007 = vst [vmem:[#allocation52_spill] sm:$0xff] %v5526_v42  ;;  %v5528_v37 = vpop.f32.mrf.mxu3 }
 0x3c8   : > { %6008 = vst [vmem:[#allocation53_spill] sm:$0xff] %v5528_v37  ;;  %v5530_v11 = vpop.f32.mrf.mxu1 }
 0x3c9   : > { %6009 = vst [vmem:[#allocation54_spill] sm:$0xff] %v5530_v11  ;;  %v5533_v3 = vpop.f32.mrf.mxu0 }
 0x3ca   : > { %6010 = vst [vmem:[#allocation55_spill] sm:$0xff] %v5533_v3 }
 0x3cb   : > { %4049 = vmatmul.msk.f32.gmra.mxu2 %vm466_vm0, %v3099_v19  ;;  %4046 = vmatmul.msk.f32.gmra.mxu1 %vm466_vm0, %v3099_v19 }
 0x3cc   : > { %4055 = vmatmul.msk.f32.gmra.mxu3 %vm466_vm0, %v4052_v38  ;;  %4059 = vmatmul.msk.f32.gmra.mxu0 %vm466_vm0, %v4052_v38 }
 0x3ce   : > { %v5540_v46 = vpop.f32.mrf.mxu2 }
 0x3cf   : > { %6011 = vst [vmem:[#allocation56_spill] sm:$0xff] %v5540_v46  ;;  %v5542_v63 = vpop.f32.mrf.mxu3 }
 0x3d0   : > { %v2588_v20 = vpop.f32.mrf.mxu1 }
 0x3d1   : > { %v5544_v61 = vpop.f32.mrf.mxu0 }
 0x3d2   : > { %6012 = vst [vmem:[#allocation57_spill] sm:$0xff] %v5544_v61 }
 0x3d6   : > { %v2613_v11 = vpop.f32.mrf.mxu2 }
 0x3d7   : > { %v5546_v37 = vpop.f32.mrf.mxu3 }
 0x3d8   : > { %6013 = vst [vmem:[#allocation58_spill] sm:$0xff] %v5546_v37  ;;  %v5548_v3 = vpop.f32.mrf.mxu1 }
 0x3d9   : > { %6014 = vst [vmem:[#allocation59_spill] sm:$0xff] %v5548_v3  ;;  %v5550_v42 = vpop.f32.mrf.mxu0 }
 0x3da   : > { %6015 = vst [vmem:[#allocation60_spill] sm:$0xff] %v5550_v42 }
 0x3de   : > { %v5552_v48 = vpop.f32.mrf.mxu2 }
 0x3df   : > { %6016 = vst [vmem:[#allocation61_spill] sm:$0xff] %v5552_v48  ;;  %v5554_v19 = vpop.f32.mrf.mxu3  ;;  %v2355_v48 = vadd.f32 %v5430_v39, %v5067_v12  ;;  %v2361_v39 = vadd.f32 %v5454_v6, %v5135_v14  ;;  %v2407_v6 = vadd.f32 %v5307_v53, %v5029_v10 }
 0x3e0   : > { %6017 = vst [vmem:[#allocation62_spill] sm:$0xff] %v5554_v19  ;;  %v5556_v44 = vpop.f32.mrf.mxu1 }
 0x3e1   : > { %6018 = vst [vmem:[#allocation63_spill] sm:$0xff] %v5556_v44  ;;  %v5558_v38 = vpop.f32.mrf.mxu0 }
 0x3e2   : > { %6019 = vst [vmem:[#allocation64_spill] sm:$0xff] %v5558_v38 }
 0x3e6   : > { %v5560_v46 = vpop.f32.mrf.mxu2 }
 0x3e7   : > { %6020 = vst [vmem:[#allocation65_spill] sm:$0xff] %v5560_v46  ;;  %v5562_v20 = vpop.f32.mrf.mxu3 }
 0x3e8   : > { %6021 = vst [vmem:[#allocation66_spill] sm:$0xff] %v5562_v20  ;;  %v5564_v61 = vpop.f32.mrf.mxu1 }
 0x3e9   : > { %6022 = vst [vmem:[#allocation67_spill] sm:$0xff] %v5564_v61  ;;  %v5566_v11 = vpop.f32.mrf.mxu0  ;;  %v2358_v61 = vadd.f32 %v5442_v4, %v5106_v25  ;;  %v2381_v25 = vadd.f32 %v5357_v8, %v4979_v22  ;;  %v2384_v22 = vadd.f32 %v5373_v52, %v5014_v57 }
 0x3ea   : > { %6023 = vst [vmem:[#allocation68_spill] sm:$0xff] %v5566_v11 }
 0x3ee   : > { %v5568_v37 = vpop.f32.mrf.mxu2 }
 0x3ef   : > { %6024 = vst [vmem:[#allocation69_spill] sm:$0xff] %v5568_v37  ;;  %v5570_v3 = vpop.f32.mrf.mxu3 }
 0x3f0   : > { %6025 = vst [vmem:[#allocation70_spill] sm:$0xff] %v5570_v3  ;;  %v5574_v19 = vpop.f32.mrf.mxu1 }
 0x3f1   : > { %v2866_v44 = vpop.f32.mrf.mxu0 }
 0x3f2   : > { %v5576_v42 = vadd.f32 %v2866_v44, %v2355_v48 }
 0x3f4   : > { %6026 = vst [vmem:[#allocation71_spill] sm:$0xff] %v5576_v42 }
 0x3f6   : > { %v5578_v38 = vpop.f32.mrf.mxu2 }
 0x3f7   : > { %v5580_v46 = vpop.f32.mrf.mxu3 }
 0x3f8   : > { %6027 = vst [vmem:[#allocation72_spill] sm:$0xff] %v5580_v46  ;;  %v5584_v11 = vpop.f32.mrf.mxu1 }
 0x3f9   : > { %v2869_v37 = vpop.f32.mrf.mxu0 }
 0x3fa   : > { %v5586_v20 = vadd.f32 %v2869_v37, %v2358_v61  ;;  %v2459_v37 = vadd.f32 %v5476_v62, %v5158_v32 }
 0x3fc   : > { %6028 = vst [vmem:[#allocation73_spill] sm:$0xff] %v5586_v20 }
 0x3fe   : > { %v5588_v3 = vpop.f32.mrf.mxu2 }
 0x3ff   : > { %v5590_v12 = vpop.f32.mrf.mxu3 }
 0x400   : > { %6029 = vst [vmem:[#allocation74_spill] sm:$0xff] %v5590_v12  ;;  %v5594_v48 = vpop.f32.mrf.mxu1 }
 0x401   : > { %v2872_v44 = vpop.f32.mrf.mxu0 }
 0x402   : > { %v5596_v42 = vadd.f32 %v2872_v44, %v2361_v39  ;;  %v2433_v39 = vadd.f32 %v5234_v51, %v5161_v7 }
 0x404   : > { %6030 = vst [vmem:[#allocation75_spill] sm:$0xff] %v5596_v42 }
 0x406   : > { %v5598_v46 = vpop.f32.mrf.mxu2 }
 0x407   : > { %v5602_v4 = vpop.f32.mrf.mxu3 }
 0x408   : > { %v2892_v61 = vpop.f32.mrf.mxu1 }
 0x409   : > { %v5606_v20 = vadd.f32 %v2892_v61, %v2381_v25  ;;  %v2970_v12 = vpop.f32.mrf.mxu0 }
 0x40a   : > { %v5608_v14 = vadd.f32 %v2970_v12, %v2459_v37 }
 0x40b   : > { %6031 = vst [vmem:[#allocation76_spill] sm:$0xff] %v5606_v20  ;;  %v2225_v20 = vadd.f32 %v5198_v2, %v4988_v47  ;;  %v5676_v47 = vadd.f32 %v5224_v9, %v5069_v17  ;;  %v6055_v17 = vld [vmem:[#allocation30_spill] sm:$0xff] }
 0x40c   : > { %6032 = vst [vmem:[#allocation77_spill] sm:$0xff] %v5608_v14  ;;  %v6056_v9 = vld [vmem:[#allocation2_spill] sm:$0xff] }
 0x40e   : > { %v2918_v44 = vpop.f32.mrf.mxu2 }
 0x40f   : > { %v5616_v8 = vadd.f32 %v2918_v44, %v2407_v6  ;;  %v2944_v42 = vpop.f32.mrf.mxu3 }
 0x410   : > { %v5618_v32 = vadd.f32 %v2944_v42, %v2433_v39  ;;  %v2895_v62 = vpop.f32.mrf.mxu1 }
 0x411   : > { %6033 = vst [vmem:[#allocation78_spill] sm:$0xff] %v5616_v8  ;;  %v5620_v25 = vadd.f32 %v2895_v62, %v2384_v22  ;;  %v5622_v12 = vpop.f32.mrf.mxu0  ;;  %v2121_v8 = vadd.f32 %v5139_v18, %v4891_v49  ;;  %v5668_v49 = vadd.f32 %v5218_v1, %v5046_v16  ;;  %v6049_v1 = vld [vmem:[#allocation28_spill] sm:$0xff]  ;;  %v6050_v16 = vld [vmem:[#allocation5_spill] sm:$0xff] }
 0x412   : > { %6034 = vst [vmem:[#allocation79_spill] sm:$0xff] %v5618_v32 }
 0x413   : > { %6035 = vst [vmem:[#allocation80_spill] sm:$0xff] %v5620_v25  ;;  %v5660_v25 = vadd.f32 %v5208_v58, %v5018_v5  ;;  %v5686_v5 = vadd.f32 %v6049_v1, %v5137_v15  ;;  %v6057_v58 = vld [vmem:[#allocation31_spill] sm:$0xff]  ;;  %v6062_v15 = vld [vmem:[#allocation32_spill] sm:$0xff] }
 0x414   : > { %6036 = vst [vmem:[#allocation81_spill] sm:$0xff] %v5622_v12  ;;  %v6064_v1 = vld [vmem:[#allocation11_spill] sm:$0xff] }
 0x415   : > { %v6102_v12 = vld [vmem:[#allocation23_spill] sm:$0xff] }
 0x416   : > { %v5624_v37 = vpop.f32.mrf.mxu2 }
 0x417   : > { %6037 = vst [vmem:[#allocation82_spill] sm:$0xff] %v5624_v37  ;;  %v5626_v10 = vpop.f32.mrf.mxu3 }
 0x418   : > { %6038 = vst [vmem:[#allocation83_spill] sm:$0xff] %v5626_v10  ;;  %v5628_v53 = vpop.f32.mrf.mxu1  ;;  %v6082_v10 = vld [vmem:[#allocation17_spill] sm:$0xff] }
 0x419   : > { %6039 = vst [vmem:[#allocation84_spill] sm:$0xff] %v5628_v53  ;;  %v5630_v51 = vpop.f32.mrf.mxu0 }
 0x41a   : > { %6040 = vst [vmem:[#allocation85_spill] sm:$0xff] %v5630_v51  ;;  %v6077_v51 = vld [vmem:[#allocation15_spill] sm:$0xff] }
 0x41e   : > { %v5632_v7 = vpop.f32.mrf.mxu2 }
 0x41f   : > { %6041 = vst [vmem:[#allocation86_spill] sm:$0xff] %v5632_v7  ;;  %v5634_v57 = vpop.f32.mrf.mxu3 }
 0x420   : > { %6042 = vst [vmem:[#allocation87_spill] sm:$0xff] %v5634_v57  ;;  %v2996_v52 = vpop.f32.mrf.mxu1 }
 0x421   : > { %v5636_v42 = vpop.f32.mrf.mxu0  ;;  %v2124_v52 = vadd.f32 %v5164_v35, %v4912_v60  ;;  %v2099_v60 = vadd.f32 %v5220_v30, %v4648_v59  ;;  %v6051_v59 = vld [vmem:[#allocation29_spill] sm:$0xff]  ;;  %v6052_v35 = vld [vmem:[#allocation6_spill] sm:$0xff] }
 0x422   : > { %v2202_v30 = vadd.f32 %v6051_v59, %v6050_v16  ;;  %v6065_v16 = vld [vmem:[#allocation33_spill] sm:$0xff] }
 0x423   : > { %v2303_v59 = vadd.f32 %v6065_v16, %v6064_v1  ;;  %v2251_v1 = vadd.f32 %v5375_v33, %v6077_v51  ;;  %v6087_v33 = vld [vmem:[#allocation13_spill] sm:$0xff] }
 0x424   : > { %v2283_v51 = vadd.f32 %v5333_v28, %v6087_v33  ;;  %v6098_v28 = vld [vmem:[#allocation22_spill] sm:$0xff] }
 0x425   : > { %v6099_v33 = vld [vmem:[#allocation46_spill] sm:$0xff] }
 0x426   : > { %v3021_v61 = vpop.f32.mrf.mxu2  ;;  %v2487_v37 = vadd.f32 %v6099_v33, %v6098_v28  ;;  %v6110_v28 = vld [vmem:[#allocation54_spill] sm:$0xff] }
 0x427   : > { %v3130_v6 = vpop.f32.mrf.mxu3  ;;  %v2127_v61 = vadd.f32 %v5179_v26, %v4940_v36  ;;  %v2074_v36 = vadd.f32 %v5222_v55, %v4646_v56  ;;  %v6053_v56 = vld [vmem:[#allocation42_spill] sm:$0xff]  ;;  %v6054_v26 = vld [vmem:[#allocation8_spill] sm:$0xff] }
 0x428   : > { %v5638_v39 = vpop.f32.mrf.mxu1  ;;  %v2147_v18 = vadd.f32 %v6053_v56, %v6052_v35  ;;  %v2205_v2 = vadd.f32 %v6055_v17, %v6054_v26  ;;  %v6067_v35 = vld [vmem:[#allocation34_spill] sm:$0xff] }
 0x429   : > { %6043 = vst [vmem:[#allocation88_spill] sm:$0xff] %v5638_v39  ;;  %v5640_v44 = vpop.f32.mrf.mxu0  ;;  %v6068_v39 = vld [vmem:[#allocation12_spill] sm:$0xff]  ;;  %v3045_v33 = vadd.f32 %v6110_v28, %v2074_v36  ;;  %v5784_v36 = vpop.permute.xlu2 %3299 }
 0x42a   : > { %6044 = vst [vmem:[#allocation89_spill] sm:$0xff] %v5640_v44  ;;  %v2153_v26 = vadd.f32 %v5351_v54, %v6068_v39  ;;  %v6080_v54 = vld [vmem:[#allocation7_spill] sm:$0xff]  ;;  %v6081_v39 = vld [vmem:[#allocation41_spill] sm:$0xff] }
 0x42b   : > { %v6088_v44 = vld [vmem:[#allocation21_spill] sm:$0xff] }
 0x42e   : > { %v5642_v22 = vpop.f32.mrf.mxu2 }
 0x42f   : > { %6045 = vst [vmem:[#allocation90_spill] sm:$0xff] %v5642_v22  ;;  %v5644_v62 = vpop.f32.mrf.mxu3  ;;  %v6066_v22 = vld [vmem:[#allocation3_spill] sm:$0xff] }
 0x430   : > { %6046 = vst [vmem:[#allocation91_spill] sm:$0xff] %v5644_v62  ;;  %v5646_v14 = vpop.f32.mrf.mxu1  ;;  %v2176_v56 = vadd.f32 %v6067_v35, %v6066_v22  ;;  %v6078_v22 = vld [vmem:[#allocation16_spill] sm:$0xff] }
 0x431   : > { %6047 = vst [vmem:[#allocation92_spill] sm:$0xff] %v5646_v14  ;;  %v5648_v32 = vpop.f32.mrf.mxu0  ;;  %v2096_v14 = vadd.f32 %v5214_v24, %v4638_v45  ;;  %v5680_v45 = vadd.f32 %v5226_v34, %v5109_v23  ;;  %v2173_v34 = vadd.f32 %v6057_v58, %v6056_v9  ;;  %v6058_v23 = vld [vmem:[#allocation9_spill] sm:$0xff]  ;;  %v6059_v24 = vld [vmem:[#allocation44_spill] sm:$0xff]  ;;  %v6070_v9 = vld [vmem:[#allocation27_spill] sm:$0xff] }
 0x432   : > { %6048 = vst [vmem:[#allocation93_spill] sm:$0xff] %v5648_v32  ;;  %v2071_v32 = vadd.f32 %v5216_v21, %v4635_v41  ;;  %v2199_v41 = vadd.f32 %v5228_v13, %v4861_v27  ;;  %v2150_v21 = vadd.f32 %v6059_v24, %v6058_v23  ;;  %v6061_v13 = vld [vmem:[#allocation25_spill] sm:$0xff]  ;;  %v6071_v58 = vld [vmem:[#allocation36_spill] sm:$0xff]  ;;  %v6073_v24 = vld [vmem:[#allocation14_spill] sm:$0xff] }
 0x433   : > { %v5702_v55 = vadd.f32 %v6062_v15, %v6061_v13  ;;  %v5714_v23 = vadd.f32 %v6071_v58, %v6070_v9  ;;  %v6075_v13 = vld [vmem:[#allocation4_spill] sm:$0xff]  ;;  %v6076_v15 = vld [vmem:[#allocation38_spill] sm:$0xff]  ;;  %v2254_v9 = vadd.f32 %v5392_v31, %v6082_v10 }
 0x434   : > { %v2179_v7 = vadd.f32 %v6076_v15, %v6075_v13  ;;  %v6079_v35 = vld [vmem:[#allocation40_spill] sm:$0xff]  ;;  %v6083_v58 = vld [vmem:[#allocation10_spill] sm:$0xff] }
 0x435   : > { %6063 = vst [vmem:[#allocation5_spill] sm:$0xff] %v5702_v55  ;;  %v2309_v53 = vadd.f32 %v6079_v35, %v6078_v22  ;;  %v6086_v13 = vld [vmem:[#allocation20_spill] sm:$0xff]  ;;  %v5738_v22 = vadd.f32 %v5349_v29, %v6088_v44  ;;  %v6092_v10 = vld [vmem:[#allocation18_spill] sm:$0xff]  ;;  %v6101_v44 = vld [vmem:[#allocation47_spill] sm:$0xff] }
 0x436   : > { %v5698_v27 = vpop.f32.mrf.mxu2  ;;  %6072 = vst [vmem:[#allocation6_spill] sm:$0xff] %v5714_v23  ;;  %v6084_v23 = vld [vmem:[#allocation43_spill] sm:$0xff]  ;;  %v2410_v15 = vadd.f32 %v5328_v50, %v6086_v13  ;;  %v6096_v50 = vld [vmem:[#allocation24_spill] sm:$0xff]  ;;  %v6100_v29 = vld [vmem:[#allocation26_spill] sm:$0xff] }
 0x437   : > { %6060 = vst [vmem:[#allocation28_spill] sm:$0xff] %v5698_v27  ;;  %v5710_v17 = vpop.f32.mrf.mxu3  ;;  %v6074_v27 = vld [vmem:[#allocation37_spill] sm:$0xff]  ;;  %v2280_v55 = vadd.f32 %v6084_v23, %v6083_v58  ;;  %v2387_v23 = vadd.f32 %v5390_v0, %v6092_v10  ;;  %v6103_v62 = vld [vmem:[#allocation48_spill] sm:$0xff]  ;;  %v6106_v0 = vld [vmem:[#allocation51_spill] sm:$0xff] }
 0x438   : > { %6069 = vst [vmem:[#allocation29_spill] sm:$0xff] %v5710_v17  ;;  %v2306_v57 = vadd.f32 %v6074_v27, %v6073_v24  ;;  %v3191_v16 = vpop.f32.mrf.mxu1  ;;  %v2277_v17 = vadd.f32 %v6081_v39, %v6080_v54  ;;  %v6085_v27 = vld [vmem:[#allocation19_spill] sm:$0xff]  ;;  %v5764_v10 = vadd.f32 %v6106_v0, %v2147_v18  ;;  %v6114_v0 = vld [vmem:[#allocation58_spill] sm:$0xff] }
 0x439   : > { %v2257_v24 = vadd.f32 %v5416_v43, %v6085_v27  ;;  %6089 = vst [vmem:[#allocation42_spill] sm:$0xff] %v5738_v22  ;;  %v3282_v35 = vpop.f32.mrf.mxu0  ;;  %v6090_v54 = vld [vmem:[#allocation35_spill] sm:$0xff]  ;;  %v6094_v43 = vld [vmem:[#allocation49_spill] sm:$0xff]  ;;  %v2465_v22 = vadd.f32 %v6101_v44, %v6100_v29  ;;  %v6112_v44 = vld [vmem:[#allocation56_spill] sm:$0xff] }
 0x43a   : > { %v5742_v31 = vadd.f32 %v5498_v40, %v6090_v54  ;;  %v6093_v39 = vld [vmem:[#allocation39_spill] sm:$0xff]  ;;  %v6097_v27 = vld [vmem:[#allocation45_spill] sm:$0xff]  ;;  %v5758_v40 = vadd.f32 %v6103_v62, %v6102_v12  ;;  %v6104_v54 = vld [vmem:[#allocation50_spill] sm:$0xff]  ;;  %6107 = vst [vmem:[#allocation31_spill] sm:$0xff] %v5764_v10  ;;  %v3046_v12 = vadd.f32 %v6112_v44, %v2099_v60  ;;  %v3047_v62 = vadd.f32 %v5542_v63, %v2124_v52 }
 0x43b   : > { %v5748_v58 = vadd.f32 %v6094_v43, %v6093_v39  ;;  %v2462_v13 = vadd.f32 %v6097_v27, %v6096_v50  ;;  %v6108_v39 = vld [vmem:[#allocation52_spill] sm:$0xff]  ;;  %v6109_v50 = vld [vmem:[#allocation53_spill] sm:$0xff]  ;;  %v3063_v10 = vadd.f32 %v6114_v0, %v2127_v61  ;;  %v6118_v63 = vld [vmem:[#allocation62_spill] sm:$0xff] }
 0x43c   : > { %6091 = vst [vmem:[#allocation8_spill] sm:$0xff] %v5742_v31  ;;  %v5761_v31 = vadd.f32 %v6104_v54, %v2071_v32  ;;  %v5767_v43 = vadd.f32 %v6108_v39, %v2096_v14  ;;  %v5770_v27 = vadd.f32 %v6109_v50, %v2121_v8  ;;  %v3192_v32 = vadd.f32 %v3191_v16, %v3130_v6  ;;  %v6115_v14 = vld [vmem:[#allocation59_spill] sm:$0xff]  ;;  %v6117_v60 = vld [vmem:[#allocation61_spill] sm:$0xff]  ;;  %v6122_v0 = vld [vmem:[#allocation66_spill] sm:$0xff] }
 0x43d   : > { %6095 = vst [vmem:[#allocation30_spill] sm:$0xff] %v5748_v58  ;;  %v6111_v58 = vld [vmem:[#allocation55_spill] sm:$0xff]  ;;  %v5781_v39 = vadd.f32 %v6115_v14, %v2173_v34  ;;  %v5790_v28 = vadd.f32 %v6117_v60, %v2199_v41  ;;  %v5793_v6 = vadd.f32 %v6118_v63, %v2225_v20  ;;  %v6120_v34 = vld [vmem:[#allocation64_spill] sm:$0xff]  ;;  %v6121_v44 = vld [vmem:[#allocation65_spill] sm:$0xff]  ;;  %v3051_v14 = vadd.f32 %v6122_v0, %v5660_v25 }
 0x43e   : > { %6105 = vst [vmem:[#allocation2_spill] sm:$0xff] %v5761_v31  ;;  %v5774_v29 = vadd.f32 %v6111_v58, %v2150_v21  ;;  %v3217_v54 = vpop.f32.mrf.mxu2  ;;  %v6113_v31 = vld [vmem:[#allocation57_spill] sm:$0xff]  ;;  %v6116_v21 = vld [vmem:[#allocation60_spill] sm:$0xff]  ;;  %v6119_v61 = vld [vmem:[#allocation63_spill] sm:$0xff]  ;;  %v5817_v25 = vadd.f32 %v5578_v38, %v2303_v59  ;;  %v3070_v38 = vadd.f32 %v5598_v46, %v2309_v53  ;;  %v5833_v59 = vadd.f32 %v5602_v4, %v5686_v5 }
 0x43f   : > { %v3064_v18 = vadd.f32 %v6113_v31, %v2153_v26  ;;  %v3218_v8 = vadd.f32 %v3217_v54, %v5636_v42  ;;  %v3256_v50 = vpop.f32.mrf.mxu3  ;;  %v5787_v58 = vadd.f32 %v6116_v21, %v2251_v1  ;;  %v3049_v16 = vadd.f32 %v6119_v61, %v2176_v56  ;;  %v6123_v1 = vld [vmem:[#allocation67_spill] sm:$0xff]  ;;  %v6124_v41 = vld [vmem:[#allocation68_spill] sm:$0xff]  ;;  %v6126_v56 = vld [vmem:[#allocation70_spill] sm:$0xff] }
 0x440   : > { %v3291_v52 = vadd.f32 %v3256_v50, %v3192_v32  ;;  %v3194_v26 = vpop.f32.mrf.mxu1  ;;  %v3052_v31 = vadd.f32 %v6120_v34, %v2254_v9  ;;  %v3050_v42 = vadd.f32 %v6121_v44, %v2202_v30  ;;  %v5801_v21 = vadd.f32 %v6123_v1, %v2179_v7  ;;  %v6125_v32 = vld [vmem:[#allocation69_spill] sm:$0xff]  ;;  %v6127_v7 = vld [vmem:[#allocation72_spill] sm:$0xff]  ;;  %v6129_v34 = vld [vmem:[#allocation91_spill] sm:$0xff] }
 0x441   : > { %v3292_v54 = vadd.f32 %v3282_v35, %v3218_v8  ;;  %v5804_v60 = vadd.f32 %v6124_v41, %v2257_v24  ;;  %v5808_v50 = vadd.f32 %v6125_v32, %v2205_v2  ;;  %v3067_v9 = vadd.f32 %v6126_v56, %v5668_v49  ;;  %v3285_v2 = vpop.f32.mrf.mxu0  ;;  %v6128_v49 = vld [vmem:[#allocation74_spill] sm:$0xff]  ;;  %v6134_v46 = vld [vmem:[#allocation83_spill] sm:$0xff]  ;;  %v6135_v4 = vld [vmem:[#allocation84_spill] sm:$0xff] }
 0x442   : > { %v3302_v20 = vadd.f32 %v5784_v36, %v3291_v52  ;;  %v5813_v30 = vadd.f32 %v5574_v19, %v2277_v17  ;;  %v5821_v24 = vadd.f32 %v6127_v7, %v5676_v47  ;;  %v3053_v8 = vadd.f32 %v5584_v11, %v2280_v55  ;;  %v6137_v1 = vld [vmem:[#allocation42_spill] sm:$0xff]  ;;  %v6141_v56 = vld [vmem:[#allocation88_spill] sm:$0xff] }
 0x443   : > { %v3303_v35 = vadd.f32 %v5784_v36, %v3292_v54  ;;  %v3054_v52 = vadd.f32 %v5588_v3, %v2306_v57  ;;  %v5827_v61 = vadd.f32 %v6128_v49, %v5680_v45  ;;  %v3069_v19 = vadd.f32 %v5594_v48, %v2283_v51  ;;  %v6131_v3 = vld [vmem:[#allocation82_spill] sm:$0xff]  ;;  %v6132_v54 = vld [vmem:[#allocation89_spill] sm:$0xff] }
 0x444   : > { %v3308_v63 = vadd.f32 %v3302_v20, %v3045_v33  ;;  %v3195_v11 = vadd.f32 %v3194_v26, %v6129_v34  ;;  %v6130_v33 = vld [vmem:[#allocation81_spill] sm:$0xff]  ;;  %v5840_v57 = vadd.f32 %v6131_v3, %v2410_v15  ;;  %v5848_v5 = vadd.f32 %v6135_v4, %v2387_v23  ;;  %v6138_v41 = vld [vmem:[#allocation86_spill] sm:$0xff]  ;;  %v6140_v20 = vld [vmem:[#allocation87_spill] sm:$0xff] }
 0x445   : > { %v3309_v17 = vadd.f32 %v3303_v35, %v3046_v12  ;;  %v5837_v44 = vadd.f32 %v6130_v33, %v2462_v13  ;;  %v6133_v12 = vld [vmem:[#allocation5_spill] sm:$0xff]  ;;  %v5855_v15 = vadd.f32 %v6138_v41, %v6137_v1  ;;  %v3061_v35 = vadd.f32 %v6141_v56, %v2487_v37  ;;  %v6143_v49 = vld [vmem:[#allocation90_spill] sm:$0xff] }
 0x446   : > { %v3310_v47 = vadd.f32 %v3308_v63, %v3063_v10  ;;  %v3220_v55 = vpop.f32.mrf.mxu2  ;;  %v5845_v53 = vadd.f32 %v6134_v46, %v6133_v12  ;;  %v6136_v10 = vld [vmem:[#allocation85_spill] sm:$0xff]  ;;  %v6142_v63 = vld [vmem:[#allocation8_spill] sm:$0xff]  ;;  %v6145_v34 = vld [vmem:[#allocation30_spill] sm:$0xff] }
 0x447   : > { %v3311_v45 = vadd.f32 %v3309_v17, %v3064_v18  ;;  %v3221_v48 = vadd.f32 %v3220_v55, %v6132_v54  ;;  %v3259_v51 = vpop.f32.mrf.mxu3  ;;  %v5851_v26 = vadd.f32 %v6136_v10, %v2465_v22  ;;  %v6139_v18 = vld [vmem:[#allocation6_spill] sm:$0xff]  ;;  %v3062_v23 = vadd.f32 %v6143_v49, %v6142_v63  ;;  %v6144_v17 = vld [vmem:[#allocation92_spill] sm:$0xff]  ;;  %v6147_v37 = vld [vmem:[#allocation29_spill] sm:$0xff] }
 0x448   : > { %v3293_v0 = vadd.f32 %v3259_v51, %v3195_v11  ;;  %v3197_v13 = vpop.f32.mrf.mxu1  ;;  %v5859_v32 = vadd.f32 %v6140_v20, %v6139_v18  ;;  %v5866_v22 = vadd.f32 %v6144_v17, %v5758_v40  ;;  %v6146_v11 = vld [vmem:[#allocation28_spill] sm:$0xff]  ;;  %v3312_v3 = vmax.f32 %v3310_v47, 0.0  ;;  %v6148_v41 = vld [vmem:[#allocation2_spill] sm:$0xff] }
 0x449   : > { %v3294_v7 = vadd.f32 %v3285_v2, %v3221_v48  ;;  %v5870_v55 = vadd.f32 %v6146_v11, %v6145_v34  ;;  %v3313_v54 = vmax.f32 %v3311_v45, 0.0  ;;  %v3198_v2 = vadd.f32 %v3197_v13, %v6147_v37  ;;  %v3288_v45 = vpop.f32.mrf.mxu0 }
 0x44a   : > { %v3304_v33 = vadd.f32 %v5784_v36, %v3293_v0 }
 0x44b   : > { %v5874_v51 = vadd.f32 %v5784_v36, %v3294_v7 }
 0x44c   : > { %v3314_v48 = vadd.f32 %v3304_v33, %v3047_v62  ;;  %v3324_v12 = vadd.f32 %v3304_v33, %v3049_v16  ;;  %v3334_v46 = vadd.f32 %v3304_v33, %v3051_v14  ;;  %v3344_v4 = vadd.f32 %v3304_v33, %v3053_v8  ;;  %v6149_v14 = vld [vmem:[#allocation93_spill] sm:$0xff] }
 0x44d   : > { %v3315_v40 = vadd.f32 %v5874_v51, %v5774_v29  ;;  %v3325_v10 = vadd.f32 %v5874_v51, %v3050_v42  ;;  %v3335_v1 = vadd.f32 %v5874_v51, %v3052_v31  ;;  %v3345_v0 = vadd.f32 %v5874_v51, %v3054_v52  ;;  %v6150_v42 = vld [vmem:[#allocation31_spill] sm:$0xff] }
 0x44e   : > { %v3223_v47 = vpop.f32.mrf.mxu2  ;;  %v3316_v18 = vadd.f32 %v3314_v48, %v6148_v41  ;;  %v3326_v20 = vadd.f32 %v3324_v12, %v5770_v27  ;;  %v3336_v62 = vadd.f32 %v3334_v46, %v5781_v39  ;;  %v3346_v16 = vadd.f32 %v3344_v4, %v5793_v6 }
 0x44f   : > { %v3224_v8 = vadd.f32 %v3223_v47, %v6149_v14  ;;  %v3262_v13 = vpop.f32.mrf.mxu3  ;;  %v3317_v29 = vadd.f32 %v3315_v40, %v5767_v43  ;;  %v3327_v56 = vadd.f32 %v3325_v10, %v6150_v42  ;;  %v3337_v31 = vadd.f32 %v3335_v1, %v5790_v28  ;;  %v6152_v1 = vld [vmem:[#allocation75_spill] sm:$0xff] }
 0x450   : > { %v3295_v52 = vadd.f32 %v3262_v13, %v3198_v2  ;;  %v3318_v7 = vadd.f32 %v3316_v18, %v5801_v21  ;;  %v3328_v63 = vadd.f32 %v3326_v20, %v3067_v9  ;;  %v3338_v49 = vadd.f32 %v3336_v62, %v3069_v19 }
 0x451   : > { %v3296_v17 = vadd.f32 %v3288_v45, %v3224_v8  ;;  %v3319_v27 = vadd.f32 %v3317_v29, %v5808_v50  ;;  %v3329_v39 = vadd.f32 %v3327_v56, %v5804_v60  ;;  %v3339_v6 = vadd.f32 %v3337_v31, %v3070_v38  ;;  %v6151_v38 = vld [vmem:[#allocation73_spill] sm:$0xff]  ;;  %v6153_v45 = vld [vmem:[#allocation80_spill] sm:$0xff]  ;;  %v6157_v31 = vld [vmem:[#allocation79_spill] sm:$0xff] }
 0x452   : > { %v3306_v34 = vadd.f32 %v5784_v36, %v3295_v52  ;;  %v3320_v11 = vmax.f32 %v3318_v7, 0.0  ;;  %v3330_v37 = vmax.f32 %v3328_v63, 0.0  ;;  %v3340_v43 = vmax.f32 %v3338_v49, 0.0  ;;  %v6158_v49 = vld [vmem:[#allocation77_spill] sm:$0xff] }
 0x453   : > { %v3307_v48 = vadd.f32 %v5784_v36, %v3296_v17  ;;  %v3321_v12 = vmax.f32 %v3319_v27, 0.0  ;;  %v3331_v28 = vmax.f32 %v3329_v39, 0.0  ;;  %v3341_v2 = vmax.f32 %v3339_v6, 0.0 }
 0x454   : > { %v3384_v46 = vadd.f32 %v3306_v34, %v3061_v35  ;;  %v3322_v21 = vmax.f32 %v3312_v3, %v3320_v11  ;;  %v3347_v9 = vadd.f32 %v3345_v0, %v5787_v58  ;;  %v3348_v19 = vadd.f32 %v3346_v16, %v5833_v59  ;;  %v6154_v16 = vld [vmem:[#allocation71_spill] sm:$0xff] }
 0x455   : > { %v3385_v50 = vadd.f32 %v3307_v48, %v3062_v23  ;;  %v3323_v4 = vmax.f32 %v3313_v54, %v3321_v12  ;;  %v3354_v60 = vadd.f32 %v3304_v33, %v5827_v61  ;;  %v3355_v40 = vadd.f32 %v5874_v51, %v6151_v38 }
 0x456   : > { %v3332_v10 = vmax.f32 %v3322_v21, %v3330_v37  ;;  %v3349_v47 = vadd.f32 %v3347_v9, %v6152_v1  ;;  %v3350_v36 = vmax.f32 %v3348_v19, 0.0  ;;  %v3364_v41 = vadd.f32 %v3304_v33, %v6153_v45 }
 0x457   : > { %v3333_v18 = vmax.f32 %v3323_v4, %v3331_v28  ;;  %v3356_v35 = vadd.f32 %v3354_v60, %v5813_v30  ;;  %v3357_v58 = vadd.f32 %v3355_v40, %v5817_v25  ;;  %v3365_v59 = vadd.f32 %v5874_v51, %v5840_v57  ;;  %v6155_v57 = vld [vmem:[#allocation76_spill] sm:$0xff] }
 0x458   : > { %v3342_v23 = vmax.f32 %v3332_v10, %v3340_v43  ;;  %v3351_v3 = vmax.f32 %v3349_v47, 0.0  ;;  %v3366_v61 = vadd.f32 %v3364_v41, %v5821_v24  ;;  %v3374_v54 = vadd.f32 %v3304_v33, %v5845_v53 }
 0x459   : > { %v3343_v0 = vmax.f32 %v3333_v18, %v3341_v2  ;;  %v3358_v20 = vadd.f32 %v3356_v35, %v5848_v5  ;;  %v3359_v62 = vadd.f32 %v3357_v58, %v5855_v15  ;;  %v3367_v14 = vadd.f32 %v3365_v59, %v6154_v16  ;;  %v6156_v5 = vld [vmem:[#allocation78_spill] sm:$0xff] }
 0x45a   : > { %v3352_v8 = vmax.f32 %v3342_v23, %v3350_v36  ;;  %v3368_v30 = vadd.f32 %v3366_v61, %v5859_v32  ;;  %v3375_v25 = vadd.f32 %v5874_v51, %v5837_v44  ;;  %v3376_v13 = vadd.f32 %v3374_v54, %v6155_v57 }
 0x45b   : > { %v3353_v29 = vmax.f32 %v3343_v0, %v3351_v3  ;;  %v3360_v42 = vmax.f32 %v3358_v20, 0.0  ;;  %v3361_v24 = vmax.f32 %v3359_v62, 0.0  ;;  %v3369_v53 = vadd.f32 %v3367_v14, %v5851_v26 }
 0x45c   : > { %v3370_v33 = vmax.f32 %v3368_v30, 0.0  ;;  %v3377_v56 = vadd.f32 %v3375_v25, %v6156_v5  ;;  %v3378_v15 = vadd.f32 %v3376_v13, %v5866_v22  ;;  %v3386_v52 = vadd.f32 %v3384_v46, %v6157_v31 }
 0x45d   : > { %v3362_v7 = vmax.f32 %v3352_v8, %v3360_v42  ;;  %v3363_v32 = vmax.f32 %v3353_v29, %v3361_v24  ;;  %v3371_v63 = vmax.f32 %v3369_v53, 0.0  ;;  %v3387_v44 = vadd.f32 %v3385_v50, %v6158_v49 }
 0x45e   : > { %v3379_v51 = vadd.f32 %v3377_v56, %v5870_v55  ;;  %v3380_v39 = vmax.f32 %v3378_v15, 0.0  ;;  %v3388_v34 = vmax.f32 %v3386_v52, 0.0 }
 0x45f   : > { %v3372_v17 = vmax.f32 %v3362_v7, %v3370_v33  ;;  %v3373_v27 = vmax.f32 %v3363_v32, %v3371_v63  ;;  %v3389_v11 = vmax.f32 %v3387_v44, 0.0 }
 0x460   : > { %v3381_v26 = vmax.f32 %v3379_v51, 0.0 }
 0x461   : > { %v3382_v6 = vmax.f32 %v3372_v17, %v3380_v39 }
 0x462   : > { %v3383_v22 = vmax.f32 %v3373_v27, %v3381_v26 }
 0x463   : > { %v3390_v37 = vmax.f32 %v3382_v6, %v3388_v34 }
 0x464   : > { %v3391_v43 = vmax.f32 %v3383_v22, %v3389_v11 }
 0x465   : > { %3392 = vst [vmem:[%s449_s8] sm:$0xff] %v3390_v37 }
 0x466   : > { %v3394_v48 = vmax.f32 %v3390_v37, %v3391_v43  ;;  %3393 = vst [vmem:[%s449_s8 + $0x8] sm:$0xff] %v3391_v43 }
 0x468   : > { %3395 = vmax.xlane.f32.xlu0 %v3394_v48 }
 0x4db   : > { %v3396_v55 = vpop.xlane.xlu0 %3395 }
 0x4dc   : > { %3397 = vst.msk [vmem:[%s457_s12] sm:$0xff] %vm1129_vm9, %v3396_v55 }
 0x4dd PF: > { %s18_s28 = sadd.s32 1, %s4154_s28   ;;  %s6159_s24 = smov %s4146_s26 }
 0x4de   : > { %p15_p7 = scmp.ge.s32.totalorder %s18_s28, 10   ;;  %s6160_s25 = smov %s4150_s27 }
 0x4df   : > { %s6161_s26 = smov %s6164_s29  ;;  %s6162_s27 = smov %s6168_s30 }
 0x4e0   :  { %17 = sbr.rel (!%p15_p7) target bundleno = 3 (0x3), region = 105 }

</bundles_post_ra>
